<compile_context>
chip_gen: v7x
topology: tpu7x:2x2x1
jax: 0.10.0
libtpu: 0.0.40
codegen_flags: <defaults>
</compile_context>

<pallas_src>
import functools
import math

import jax
import jax.numpy as jnp
from jax.experimental import pallas as pl
from jax.experimental.pallas import tpu as pltpu

# ----------------------------- config ---------------------------------------
CFG = dict(
    vocab=64,
    max_pos=32,
    hidden=128,        # stands in for 768
    heads=4,
    layers=2,
    intermediate=512,  # 4 * hidden
    seq=16,
    batch=2,
    feat=64,           # stands in for the 256 in fc_request / fc_control_flow / fc_response
    num_classes=10,
)
LN_EPS = 1e-12
WDTYPE = jnp.bfloat16   # weight storage / MXU-input dtype (f32 accumulation)
FFN_CHUNK = 256         # fills the 256-wide MXU on v6e/v7x; use 128 on v5e


def _vmem_specs(n):
    return [pl.BlockSpec(memory_space=pltpu.MemorySpace.VMEM) for _ in range(n)]


_VMEM_OUT = pl.BlockSpec(memory_space=pltpu.MemorySpace.VMEM)


def _bf(x):
    return x.astype(WDTYPE)


# ----------------------------- in-kernel helpers -----------------------------
def _gelu(x):
    # TODO(synk): HF BERT uses exact erf-GELU; tanh approximation used here (erf
    # lowering in Mosaic is not guaranteed).
    c = math.sqrt(2.0 / math.pi)
    return 0.5 * x * (1.0 + jnp.tanh(c * (x + 0.044715 * x * x * x)))


def _layernorm(x, g, b):
    mu = jnp.mean(x, axis=-1, keepdims=True)
    var = jnp.mean((x - mu) * (x - mu), axis=-1, keepdims=True)
    return (x - mu) * jax.lax.rsqrt(var + LN_EPS) * g + b


# ----------------------------- encoder kernel --------------------------------
# One gridded kernel for the full encoder: grid=(num_layers,).  Each grid step
# runs fused-QKV + per-head attention + out-projection + residual + LN1, then
# chunked FFN (GELU) + residual + LN2.  The activation is the revisited output
# block (VMEM-resident across layers); per-layer weights stream in per step.
def _encoder_kernel(emb_ref, seqr_ref, keyc_ref, embg_ref, embb_ref,
                    wqkv_ref, bqkv_ref, wo_ref, bo_ref, ln1g_ref, ln1b_ref,
                    wi_ref, bi_ref, wd_ref, bd_ref, ln2g_ref, ln2b_ref,
                    h_ref, mask_scr, *, nh, hd, chunk):
    l = pl.program_id(0)
    M, H = h_ref.shape
    hdim = nh * hd

    @pl.when(l == 0)
    def _init():
        # fused embedding LayerNorm (first grid step only)
        h_ref[...] = _layernorm(emb_ref[...], embg_ref[...], embb_ref[...])
        # additive attention bias built in-kernel (no (M,M) HBM DMA):
        # allowed iff query row's sequence id == key column's sequence id and
        # the key is not padded (padded keys carry id -1 -> never match).
        ok = seqr_ref[...] == keyc_ref[...]                   # (M,1)==(1,M) -> (M,M)
        mask_scr[...] = jnp.where(ok, 0.0, -1e9).astype(jnp.float32)

    h = h_ref[...]                                            # (M, H) f32, VMEM-resident
    bias = mask_scr[...]

    # ---- attention: fused QKV -> per-head softmax attention -> out proj ----
    qkv = (jnp.dot(_bf(h), wqkv_ref[...], preferred_element_type=jnp.float32)
           + bqkv_ref[...])                                   # (M, 3H); Q pre-scaled
    qkv16 = _bf(qkv)
    ctx_heads = []                                            # head outputs stay in registers
    for i in range(nh):                                       # nh=4, unrolled
        qh = qkv16[:, i * hd:(i + 1) * hd]
        kh = qkv16[:, hdim + i * hd:hdim + (i + 1) * hd]
        vh = qkv16[:, 2 * hdim + i * hd:2 * hdim + (i + 1) * hd]
        s = jax.lax.dot_general(
            qh, kh, dimension_numbers=(((1,), (1,)), ((), ())),
            preferred_element_type=jnp.float32) + bias        # (M, M)
        s = s - jnp.max(s, axis=-1, keepdims=True)
        e = jnp.exp(s)
        p = e * pl.reciprocal(jnp.sum(e, axis=-1, keepdims=True), approx=True)
        ctx_heads.append(jnp.dot(_bf(p), vh, preferred_element_type=jnp.float32))
    ctx = jnp.concatenate(ctx_heads, axis=-1)                 # (M, H), no partial stores
    attn = (jnp.dot(_bf(ctx), wo_ref[...], preferred_element_type=jnp.float32)
            + bo_ref[...])
    h = _layernorm(attn + h, ln1g_ref[...], ln1b_ref[...])

    # ---- FFN: intermediate matmul (GELU) + down matmul, K-chunked ----
    h16 = _bf(h)
    inter = wi_ref.shape[1]
    acc = jnp.zeros((M, H), jnp.float32)
    for c0 in range(0, inter, chunk):
        ic = _gelu(jnp.dot(h16, wi_ref[:, c0:c0 + chunk],
                           preferred_element_type=jnp.float32)
                   + bi_ref[:, c0:c0 + chunk])
        acc = acc + jnp.dot(_bf(ic), wd_ref[c0:c0 + chunk, :],
                            preferred_element_type=jnp.float32)
    h_ref[...] = _layernorm(acc + bd_ref[...] + h, ln2g_ref[...], ln2b_ref[...])


def encoder(emb, seq_row, key_col, emb_g, emb_b, stk, *, nh, hd, chunk):
    M, H = emb.shape
    L = stk["wqkv"].shape[0]
    I = stk["wi"].shape[2]

    def _rep(shape):                 # replicated block (same tile every grid step)
        return pl.BlockSpec(shape, lambda l: (0, 0))

    def _lyr(shape2d):               # per-layer weight: leading layer axis squeezed
        return pl.BlockSpec((None,) + tuple(shape2d), lambda l: (l, 0, 0))

    in_specs = [
        _rep((M, H)),                # emb
        _rep((M, 1)),                # seq_row ids (int32)
        _rep((1, M)),                # key seq ids, -1 where padded (int32)
        _rep((1, H)),                # emb LN gamma
        _rep((1, H)),                # emb LN beta
        _lyr((H, 3 * H)),            # wqkv (bf16)
        _lyr((1, 3 * H)),            # bqkv
        _lyr((H, H)),                # wo (bf16)
        _lyr((1, H)),                # bo
        _lyr((1, H)),                # ln1 gamma
        _lyr((1, H)),                # ln1 beta
        _lyr((H, I)),                # wi (bf16)
        _lyr((1, I)),                # bi
        _lyr((I, H)),                # wd (bf16)
        _lyr((1, H)),                # bd
        _lyr((1, H)),                # ln2 gamma
        _lyr((1, H)),                # ln2 beta
    ]

    flops = L * (8 * M * H * H + 4 * M * M * H + 4 * M * H * I)
    transc = L * (nh * M * M + M * I)
    bytes_acc = (L * 2 * (3 * H * H + H * H + 2 * H * I)      # bf16 weights
                 + 4 * (2 * M * H + M + M))                   # activations + id vectors

    # TODO(synk): on v7x a second ("parallel") grid axis over row tiles would
    # engage the 2nd TensorCore; omitted here because full attention needs all
    # rows of a sequence resident and the toy M=96 fits one core trivially.
    return pl.pallas_call(
        functools.partial(_encoder_kernel, nh=nh, hd=hd, chunk=chunk),
        out_shape=jax.ShapeDtypeStruct((M, H), jnp.float32),
        grid_spec=pltpu.PrefetchScalarGridSpec(
            num_scalar_prefetch=0,
            grid=(L,),
            in_specs=in_specs,
            out_specs=pl.BlockSpec((M, H), lambda l: (0, 0)),   # revisited -> VMEM-resident
            scratch_shapes=[pltpu.VMEM((M, M), jnp.float32)],   # cached attention bias
        ),
        compiler_params=pltpu.CompilerParams(
            dimension_semantics=("arbitrary",)),
        cost_estimate=pl.CostEstimate(flops=flops, transcendentals=transc,
                                      bytes_accessed=bytes_acc),
    )(emb, seq_row, key_col, emb_g, emb_b,
      stk["wqkv"], stk["bqkv"], stk["wo"], stk["bo"], stk["ln1g"], stk["ln1b"],
      stk["wi"], stk["bi"], stk["wd"], stk["bd"], stk["ln2g"], stk["ln2b"])


# ----------------------------- head kernel -----------------------------------
# pooler(tanh) on the batched (3B, H) CLS rows + the three per-stream fc heads
# (dense stacked (3,H,F) weights, no block-diagonal zeros) + concat + fc_final.
def _head_kernel(cls_ref, wp_ref, bp_ref, fcw_ref, fcb_ref, wf_ref, bf_ref, o_ref):
    BT = cls_ref.shape[0]
    B = BT // 3
    pooled = jnp.tanh(
        jnp.dot(_bf(cls_ref[...]), wp_ref[...], preferred_element_type=jnp.float32)
        + bp_ref[...])                                        # (3B, H)
    feats = []
    for s in range(3):                                        # [request | control_flow | response]
        ps = _bf(pooled[s * B:(s + 1) * B, :])
        feats.append(jnp.dot(ps, fcw_ref[s], preferred_element_type=jnp.float32)
                     + fcb_ref[s])                            # (B, F)
    combined = _bf(jnp.concatenate(feats, axis=-1))           # (B, 3F) implicit torch.cat
    o_ref[...] = (jnp.dot(combined, wf_ref[...], preferred_element_type=jnp.float32)
                  + bf_ref[...])


def head_block(cls, wp, bp, fcw, fcb, wf, bf, num_classes):
    B = cls.shape[0] // 3
    return pl.pallas_call(
        _head_kernel,
        out_shape=jax.ShapeDtypeStruct((B, num_classes), jnp.float32),
        in_specs=_vmem_specs(7),
        out_specs=_VMEM_OUT,
    )(cls, wp, bp, fcw, fcb, wf, bf)


# ----------------------------- parameters ------------------------------------
def init_params(key, cfg):
    H, I, F, C = cfg["hidden"], cfg["intermediate"], cfg["feat"], cfg["num_classes"]
    keys = iter(jax.random.split(key, 256))

    def w(shape):
        return (0.02 * jax.random.normal(next(keys), shape)).astype(jnp.float32)

    zeros = lambda s: jnp.zeros(s, jnp.float32)
    ones = lambda s: jnp.ones(s, jnp.float32)

    p = dict(
        word_emb=w((cfg["vocab"], H)),
        pos_emb=w((cfg["max_pos"], H)),
        type_emb=w((2, H)),
        emb_ln_g=ones((1, H)), emb_ln_b=zeros((1, H)),
        pool_w=w((H, H)), pool_b=zeros((1, H)),
        fc_req_w=w((H, F)), fc_req_b=zeros((1, F)),
        fc_cf_w=w((H, F)), fc_cf_b=zeros((1, F)),
        fc_resp_w=w((H, F)), fc_resp_b=zeros((1, F)),
        fc_final_w=w((3 * F, C)), fc_final_b=zeros((1, C)),
        layers=[],
    )
    for _ in range(cfg["layers"]):
        p["layers"].append(dict(
            q_w=w((H, H)), q_b=zeros((1, H)),
            k_w=w((H, H)), k_b=zeros((1, H)),
            v_w=w((H, H)), v_b=zeros((1, H)),
            o_w=w((H, H)), o_b=zeros((1, H)),
            ln1_g=ones((1, H)), ln1_b=zeros((1, H)),
            i_w=w((H, I)), i_b=zeros((1, I)),
            d_w=w((I, H)), d_b=zeros((1, H)),
            ln2_g=ones((1, H)), ln2_b=zeros((1, H)),
        ))
    return p


def prepare_params(p, cfg):
    """One-time host-side packing: fused QKV with the 1/sqrt(hd) scale folded
    into Q, per-layer weights stacked on a leading axis for the gridded encoder,
    bf16 weight matrices, and dense-stacked (not block-diagonal) head weights."""
    hd = cfg["hidden"] // cfg["heads"]
    scale = 1.0 / math.sqrt(hd)
    names = ("wqkv", "bqkv", "wo", "bo", "ln1g", "ln1b",
             "wi", "bi", "wd", "bd", "ln2g", "ln2b")
    stk = {k: [] for k in names}
    for layer in p["layers"]:
        stk["wqkv"].append(_bf(jnp.concatenate(
            [layer["q_w"] * scale, layer["k_w"], layer["v_w"]], axis=1)))
        stk["bqkv"].append(jnp.concatenate(
            [layer["q_b"] * scale, layer["k_b"], layer["v_b"]], axis=1))
        stk["wo"].append(_bf(layer["o_w"])); stk["bo"].append(layer["o_b"])
        stk["ln1g"].append(layer["ln1_g"]); stk["ln1b"].append(layer["ln1_b"])
        stk["wi"].append(_bf(layer["i_w"])); stk["bi"].append(layer["i_b"])
        stk["wd"].append(_bf(layer["d_w"])); stk["bd"].append(layer["d_b"])
        stk["ln2g"].append(layer["ln2_g"]); stk["ln2b"].append(layer["ln2_b"])

    return dict(
        word_emb=p["word_emb"], pos_emb=p["pos_emb"], type_emb=p["type_emb"],
        emb_ln_g=p["emb_ln_g"], emb_ln_b=p["emb_ln_b"],
        stk={k: jnp.stack(v, axis=0) for k, v in stk.items()},
        pool_w=_bf(p["pool_w"]), pool_b=p["pool_b"],
        fc_w_stk=_bf(jnp.stack([p["fc_req_w"], p["fc_cf_w"], p["fc_resp_w"]], axis=0)),
        fc_b_stk=jnp.stack([p["fc_req_b"], p["fc_cf_b"], p["fc_resp_b"]], axis=0),
        fc_final_w=_bf(p["fc_final_w"]), fc_final_b=p["fc_final_b"],
    )


# ----------------------------- model forward ---------------------------------
def iast_bert_forward(p, req_ids, req_mask, cf_ids, cf_mask, resp_ids, resp_mask, cfg):
    B, S = req_ids.shape
    H, nh = cfg["hidden"], cfg["heads"]
    hd = H // nh

    # batch the three BERT passes into one encoder pass: rows = [req(B) | cf(B) | resp(B)]
    ids = jnp.concatenate([req_ids, cf_ids, resp_ids], axis=0)      # (3B, S)
    mask = jnp.concatenate([req_mask, cf_mask, resp_mask], axis=0)  # (3B, S)
    BT = 3 * B
    M = BT * S

    # embeddings (table lookup = glue); LayerNorm is fused into the encoder kernel
    emb = (p["word_emb"][ids]
           + p["pos_emb"][None, :S, :]
           + p["type_emb"][0][None, None, :]).reshape(M, H).astype(jnp.float32)

    # tiny id vectors from which the (M, M) additive attention bias is rebuilt
    # in-kernel: key columns carry their sequence id, or -1 if padded.
    seq_ids = jnp.repeat(jnp.arange(BT, dtype=jnp.int32), S)        # (M,)
    seq_row = seq_ids.reshape(M, 1)
    key_col = jnp.where(mask.reshape(M) > 0, seq_ids, -1).reshape(1, M)

    h = encoder(emb, seq_row, key_col, p["emb_ln_g"], p["emb_ln_b"], p["stk"],
                nh=nh, hd=hd, chunk=min(FFN_CHUNK, cfg["intermediate"]))

    # [CLS] token of each sequence (rows ordered [req | cf | resp]); JAX glue
    cls = h.reshape(BT, S, H)[:, 0, :]                              # (3B, H)

    logits = head_block(cls, p["pool_w"], p["pool_b"], p["fc_w_stk"], p["fc_b_stk"],
                        p["fc_final_w"], p["fc_final_b"], cfg["num_classes"])
    return logits


# ----------------------------- main -------------------------------------------
if __name__ == "__main__":
    cfg = CFG
    B, S = cfg["batch"], cfg["seq"]

    root = jax.random.PRNGKey(0)
    k_param, k_req, k_cf, k_resp = jax.random.split(root, 4)
    params = prepare_params(init_params(k_param, cfg), cfg)

    req_ids = jax.random.randint(k_req, (B, S), 0, cfg["vocab"], dtype=jnp.int32)
    cf_ids = jax.random.randint(k_cf, (B, S), 0, cfg["vocab"], dtype=jnp.int32)
    resp_ids = jax.random.randint(k_resp, (B, S), 0, cfg["vocab"], dtype=jnp.int32)

    req_mask = jnp.ones((B, S), jnp.int32).at[1, S - 4:].set(0)
    cf_mask = jnp.ones((B, S), jnp.int32).at[0, S - 2:].set(0)
    resp_mask = jnp.ones((B, S), jnp.int32)

    fwd = jax.jit(functools.partial(iast_bert_forward, cfg=cfg))
    logits = fwd(params, req_ids, req_mask, cf_ids, cf_mask, resp_ids, resp_mask)
    jax.block_until_ready(logits)
    assert logits.shape == (B, cfg["num_classes"])
    print("KERNEL_OK")
</pallas_src>

<mosaic_0001>
module attributes {stable_mosaic.version = 11 : i64} {
  func.func @_head_kernel(%arg0: memref<6x128xf32, #tpu.memory_space<vmem>>, %arg1: memref<128x128xbf16, #tpu.memory_space<vmem>>, %arg2: memref<1x128xf32, #tpu.memory_space<vmem>>, %arg3: memref<3x128x64xbf16, #tpu.memory_space<vmem>>, %arg4: memref<3x1x64xf32, #tpu.memory_space<vmem>>, %arg5: memref<192x10xbf16, #tpu.memory_space<vmem>>, %arg6: memref<1x10xf32, #tpu.memory_space<vmem>>, %arg7: memref<2x10xf32, #tpu.memory_space<vmem>>) attributes {dimension_semantics = [], scalar_prefetch = 0 : i64, scratch_operands = 0 : i64, tpu.core_type = #tpu.core_type<tc>} {
    %c0 = arith.constant 0 : index
    %c0_0 = arith.constant 0 : index
    %0 = vector.load %arg0[%c0, %c0_0] : memref<6x128xf32, #tpu.memory_space<vmem>>, vector<6x128xf32>
    %1 = arith.truncf %0 : vector<6x128xf32> to vector<6x128xbf16>
    %c0_1 = arith.constant 0 : index
    %c0_2 = arith.constant 0 : index
    %2 = vector.load %arg1[%c0_1, %c0_2] : memref<128x128xbf16, #tpu.memory_space<vmem>>, vector<128x128xbf16>
    %cst = arith.constant dense<0.000000e+00> : vector<6x128xf32>
    %3 = tpu.matmul %1, %2, %cst {dimension_numbers = #tpu.dot_dimension_numbers<[1], [0], [0], [1], [0, 0, 1, 1], [], []>} : vector<6x128xbf16>, vector<128x128xbf16>, vector<6x128xf32> -> vector<6x128xf32>
    %c0_3 = arith.constant 0 : index
    %c0_4 = arith.constant 0 : index
    %4 = vector.load %arg2[%c0_3, %c0_4] : memref<1x128xf32, #tpu.memory_space<vmem>>, vector<1x128xf32>
    %5 = vector.broadcast %4 : vector<1x128xf32> to vector<6x128xf32>
    %6 = arith.addf %3, %5 : vector<6x128xf32>
    %7 = math.tanh %6 : vector<6x128xf32>
    %8 = vector.extract_strided_slice %7 {offsets = [0, 0], sizes = [2, 128], strides = [1, 1]} : vector<6x128xf32> to vector<2x128xf32>
    %9 = arith.truncf %8 : vector<2x128xf32> to vector<2x128xbf16>
    %c0_5 = arith.constant 0 : index
    %c0_6 = arith.constant 0 : index
    %c0_7 = arith.constant 0 : index
    %10 = vector.load %arg3[%c0_5, %c0_6, %c0_7] : memref<3x128x64xbf16, #tpu.memory_space<vmem>>, vector<1x128x64xbf16>
    %11 = vector.shape_cast %10 : vector<1x128x64xbf16> to vector<128x64xbf16>
    %cst_8 = arith.constant dense<0.000000e+00> : vector<2x64xf32>
    %12 = tpu.matmul %9, %11, %cst_8 {dimension_numbers = #tpu.dot_dimension_numbers<[1], [0], [0], [1], [0, 0, 1, 1], [], []>} : vector<2x128xbf16>, vector<128x64xbf16>, vector<2x64xf32> -> vector<2x64xf32>
    %c0_9 = arith.constant 0 : index
    %c0_10 = arith.constant 0 : index
    %c0_11 = arith.constant 0 : index
    %13 = vector.load %arg4[%c0_9, %c0_10, %c0_11] : memref<3x1x64xf32, #tpu.memory_space<vmem>>, vector<1x1x64xf32>
    %14 = vector.shape_cast %13 : vector<1x1x64xf32> to vector<1x64xf32>
    %15 = vector.broadcast %14 : vector<1x64xf32> to vector<2x64xf32>
    %16 = arith.addf %12, %15 : vector<2x64xf32>
    %17 = vector.extract_strided_slice %7 {offsets = [2, 0], sizes = [2, 128], strides = [1, 1]} : vector<6x128xf32> to vector<2x128xf32>
    %18 = arith.truncf %17 : vector<2x128xf32> to vector<2x128xbf16>
    %c1 = arith.constant 1 : index
    %c0_12 = arith.constant 0 : index
    %c0_13 = arith.constant 0 : index
    %19 = vector.load %arg3[%c1, %c0_12, %c0_13] : memref<3x128x64xbf16, #tpu.memory_space<vmem>>, vector<1x128x64xbf16>
    %20 = vector.shape_cast %19 : vector<1x128x64xbf16> to vector<128x64xbf16>
    %cst_14 = arith.constant dense<0.000000e+00> : vector<2x64xf32>
    %21 = tpu.matmul %18, %20, %cst_14 {dimension_numbers = #tpu.dot_dimension_numbers<[1], [0], [0], [1], [0, 0, 1, 1], [], []>} : vector<2x128xbf16>, vector<128x64xbf16>, vector<2x64xf32> -> vector<2x64xf32>
    %c1_15 = arith.constant 1 : index
    %c0_16 = arith.constant 0 : index
    %c0_17 = arith.constant 0 : index
    %22 = vector.load %arg4[%c1_15, %c0_16, %c0_17] : memref<3x1x64xf32, #tpu.memory_space<vmem>>, vector<1x1x64xf32>
    %23 = vector.shape_cast %22 : vector<1x1x64xf32> to vector<1x64xf32>
    %24 = vector.broadcast %23 : vector<1x64xf32> to vector<2x64xf32>
    %25 = arith.addf %21, %24 : vector<2x64xf32>
    %26 = vector.extract_strided_slice %7 {offsets = [4, 0], sizes = [2, 128], strides = [1, 1]} : vector<6x128xf32> to vector<2x128xf32>
    %27 = arith.truncf %26 : vector<2x128xf32> to vector<2x128xbf16>
    %c2 = arith.constant 2 : index
    %c0_18 = arith.constant 0 : index
    %c0_19 = arith.constant 0 : index
    %28 = vector.load %arg3[%c2, %c0_18, %c0_19] : memref<3x128x64xbf16, #tpu.memory_space<vmem>>, vector<1x128x64xbf16>
    %29 = vector.shape_cast %28 : vector<1x128x64xbf16> to vector<128x64xbf16>
    %cst_20 = arith.constant dense<0.000000e+00> : vector<2x64xf32>
    %30 = tpu.matmul %27, %29, %cst_20 {dimension_numbers = #tpu.dot_dimension_numbers<[1], [0], [0], [1], [0, 0, 1, 1], [], []>} : vector<2x128xbf16>, vector<128x64xbf16>, vector<2x64xf32> -> vector<2x64xf32>
    %c2_21 = arith.constant 2 : index
    %c0_22 = arith.constant 0 : index
    %c0_23 = arith.constant 0 : index
    %31 = vector.load %arg4[%c2_21, %c0_22, %c0_23] : memref<3x1x64xf32, #tpu.memory_space<vmem>>, vector<1x1x64xf32>
    %32 = vector.shape_cast %31 : vector<1x1x64xf32> to vector<1x64xf32>
    %33 = vector.broadcast %32 : vector<1x64xf32> to vector<2x64xf32>
    %34 = arith.addf %30, %33 : vector<2x64xf32>
    %35 = tpu.concatenate %16, %25, %34 in 1 : vector<2x64xf32>, vector<2x64xf32>, vector<2x64xf32> -> vector<2x192xf32>
    %36 = arith.truncf %35 : vector<2x192xf32> to vector<2x192xbf16>
    %c0_24 = arith.constant 0 : index
    %c0_25 = arith.constant 0 : index
    %37 = vector.load %arg5[%c0_24, %c0_25] : memref<192x10xbf16, #tpu.memory_space<vmem>>, vector<192x10xbf16>
    %cst_26 = arith.constant dense<0.000000e+00> : vector<2x10xf32>
    %38 = tpu.matmul %36, %37, %cst_26 {dimension_numbers = #tpu.dot_dimension_numbers<[1], [0], [0], [1], [0, 0, 1, 1], [], []>} : vector<2x192xbf16>, vector<192x10xbf16>, vector<2x10xf32> -> vector<2x10xf32>
    %c0_27 = arith.constant 0 : index
    %c0_28 = arith.constant 0 : index
    %39 = vector.load %arg6[%c0_27, %c0_28] : memref<1x10xf32, #tpu.memory_space<vmem>>, vector<1x10xf32>
    %40 = vector.broadcast %39 : vector<1x10xf32> to vector<2x10xf32>
    %41 = arith.addf %38, %40 : vector<2x10xf32>
    %c0_29 = arith.constant 0 : index
    %c0_30 = arith.constant 0 : index
    %42 = vector.load %arg7[%c0_29, %c0_30] : memref<2x10xf32, #tpu.memory_space<vmem>>, vector<2x10xf32>
    tpu.vector_store %arg7[%c0_29, %c0_30], %41 {strides = array<i32>} : memref<2x10xf32, #tpu.memory_space<vmem>>, vector<2x10xf32>,
    return
  }
}

module attributes {stable_mosaic.version = 11 : i64} {
  func.func @_encoder_kernel(%arg0: i32, %arg1: memref<96x128xf32, #tpu.memory_space<vmem>>, %arg2: memref<96x1xi32, #tpu.memory_space<vmem>>, %arg3: memref<1x96xi32, #tpu.memory_space<vmem>>, %arg4: memref<1x128xf32, #tpu.memory_space<vmem>>, %arg5: memref<1x128xf32, #tpu.memory_space<vmem>>, %arg6: memref<1x128x384xbf16, #tpu.memory_space<vmem>>, %arg7: memref<1x1x384xf32, #tpu.memory_space<vmem>>, %arg8: memref<1x128x128xbf16, #tpu.memory_space<vmem>>, %arg9: memref<1x1x128xf32, #tpu.memory_space<vmem>>, %arg10: memref<1x1x128xf32, #tpu.memory_space<vmem>>, %arg11: memref<1x1x128xf32, #tpu.memory_space<vmem>>, %arg12: memref<1x128x512xbf16, #tpu.memory_space<vmem>>, %arg13: memref<1x1x512xf32, #tpu.memory_space<vmem>>, %arg14: memref<1x512x128xbf16, #tpu.memory_space<vmem>>, %arg15: memref<1x1x128xf32, #tpu.memory_space<vmem>>, %arg16: memref<1x1x128xf32, #tpu.memory_space<vmem>>, %arg17: memref<1x1x128xf32, #tpu.memory_space<vmem>>, %arg18: memref<96x128xf32, #tpu.memory_space<vmem>>, %arg19: memref<96x96xf32, #tpu.memory_space<vmem>>) attributes {dimension_semantics = [#tpu.dimension_semantics<arbitrary>], iteration_bounds = array<i64: 2>, scalar_prefetch = 0 : i64, scratch_operands = 1 : i64, tpu.core_type = #tpu.core_type<tc>, window_params = [{pipeline_mode = #tpu.pipeline_mode<synchronous>, transform_indices = @transform_0, window_bounds = array<i64: 96, 128>}, {pipeline_mode = #tpu.pipeline_mode<synchronous>, transform_indices = @transform_1, window_bounds = array<i64: 96, 1>}, {pipeline_mode = #tpu.pipeline_mode<synchronous>, transform_indices = @transform_2, window_bounds = array<i64: 1, 96>}, {pipeline_mode = #tpu.pipeline_mode<synchronous>, transform_indices = @transform_3, window_bounds = array<i64: 1, 128>}, {pipeline_mode = #tpu.pipeline_mode<synchronous>, transform_indices = @transform_4, window_bounds = array<i64: 1, 128>}, {transform_indices = @transform_5, window_bounds = array<i64: 1, 128, 384>}, {transform_indices = @transform_6, window_bounds = array<i64: 1, 1, 384>}, {transform_indices = @transform_7, window_bounds = array<i64: 1, 128, 128>}, {transform_indices = @transform_8, window_bounds = array<i64: 1, 1, 128>}, {transform_indices = @transform_9, window_bounds = array<i64: 1, 1, 128>}, {transform_indices = @transform_10, window_bounds = array<i64: 1, 1, 128>}, {transform_indices = @transform_11, window_bounds = array<i64: 1, 128, 512>}, {transform_indices = @transform_12, window_bounds = array<i64: 1, 1, 512>}, {transform_indices = @transform_13, window_bounds = array<i64: 1, 512, 128>}, {transform_indices = @transform_14, window_bounds = array<i64: 1, 1, 128>}, {transform_indices = @transform_15, window_bounds = array<i64: 1, 1, 128>}, {transform_indices = @transform_16, window_bounds = array<i64: 1, 1, 128>}, {pipeline_mode = #tpu.pipeline_mode<synchronous>, transform_indices = @transform_17, window_bounds = array<i64: 96, 128>}]} {
    %c0_i32 = arith.constant 0 : i32
    %0 = arith.cmpi eq, %arg0, %c0_i32 : i32
    %1 = arith.extui %0 : i1 to i32
    %c0_i32_0 = arith.constant 0 : i32
    %2 = arith.cmpi ne, %1, %c0_i32_0 : i32
    scf.if %2 {
      %c0_90 = arith.constant 0 : index
      %c0_91 = arith.constant 0 : index
      %206 = vector.load %arg1[%c0_90, %c0_91] : memref<96x128xf32, #tpu.memory_space<vmem>>, vector<96x128xf32>
      %c0_92 = arith.constant 0 : index
      %c0_93 = arith.constant 0 : index
      %207 = vector.load %arg4[%c0_92, %c0_93] : memref<1x128xf32, #tpu.memory_space<vmem>>, vector<1x128xf32>
      %c0_94 = arith.constant 0 : index
      %c0_95 = arith.constant 0 : index
      %208 = vector.load %arg5[%c0_94, %c0_95] : memref<1x128xf32, #tpu.memory_space<vmem>>, vector<1x128xf32>
      %cst_96 = arith.constant dense<0.000000e+00> : vector<96xf32>
      %209 = vector.multi_reduction <add>, %206, %cst_96 [1] : vector<96x128xf32> to vector<96xf32>
      %210 = vector.shape_cast %209 : vector<96xf32> to vector<96x1xf32>
      %cst_97 = arith.constant 1.280000e+02 : f32
      %211 = vector.broadcast %cst_97 : f32 to vector<96x1xf32>
      %212 = arith.divf %210, %211 : vector<96x1xf32>
      %213 = vector.broadcast %212 : vector<96x1xf32> to vector<96x128xf32>
      %214 = arith.subf %206, %213 : vector<96x128xf32>
      %215 = vector.broadcast %212 : vector<96x1xf32> to vector<96x128xf32>
      %216 = arith.subf %206, %215 : vector<96x128xf32>
      %217 = arith.mulf %214, %216 : vector<96x128xf32>
      %cst_98 = arith.constant dense<0.000000e+00> : vector<96xf32>
      %218 = vector.multi_reduction <add>, %217, %cst_98 [1] : vector<96x128xf32> to vector<96xf32>
      %219 = vector.shape_cast %218 : vector<96xf32> to vector<96x1xf32>
      %cst_99 = arith.constant 1.280000e+02 : f32
      %220 = vector.broadcast %cst_99 : f32 to vector<96x1xf32>
      %221 = arith.divf %219, %220 : vector<96x1xf32>
      %222 = vector.broadcast %212 : vector<96x1xf32> to vector<96x128xf32>
      %223 = arith.subf %206, %222 : vector<96x128xf32>
      %cst_100 = arith.constant 9.99999996E-13 : f32
      %224 = vector.broadcast %cst_100 : f32 to vector<96x1xf32>
      %225 = arith.addf %221, %224 : vector<96x1xf32>
      %226 = math.rsqrt %225 : vector<96x1xf32>
      %227 = vector.broadcast %226 : vector<96x1xf32> to vector<96x128xf32>
      %228 = arith.mulf %223, %227 : vector<96x128xf32>
      %229 = vector.broadcast %207 : vector<1x128xf32> to vector<96x128xf32>
      %230 = arith.mulf %228, %229 : vector<96x128xf32>
      %231 = vector.broadcast %208 : vector<1x128xf32> to vector<96x128xf32>
      %232 = arith.addf %230, %231 : vector<96x128xf32>
      %c0_101 = arith.constant 0 : index
      %c0_102 = arith.constant 0 : index
      %233 = vector.load %arg18[%c0_101, %c0_102] : memref<96x128xf32, #tpu.memory_space<vmem>>, vector<96x128xf32>
      tpu.vector_store %arg18[%c0_101, %c0_102], %232 {strides = array<i32>} : memref<96x128xf32, #tpu.memory_space<vmem>>, vector<96x128xf32>,
      %c0_103 = arith.constant 0 : index
      %c0_104 = arith.constant 0 : index
      %234 = vector.load %arg2[%c0_103, %c0_104] : memref<96x1xi32, #tpu.memory_space<vmem>>, vector<96x1xi32>
      %c0_105 = arith.constant 0 : index
      %c0_106 = arith.constant 0 : index
      %235 = vector.load %arg3[%c0_105, %c0_106] : memref<1x96xi32, #tpu.memory_space<vmem>>, vector<1x96xi32>
      %236 = vector.broadcast %234 : vector<96x1xi32> to vector<96x96xi32>
      %237 = vector.broadcast %235 : vector<1x96xi32> to vector<96x96xi32>
      %238 = arith.cmpi eq, %236, %237 : vector<96x96xi32>
      %cst_107 = arith.constant 0.000000e+00 : f32
      %cst_108 = arith.constant -1.000000e+09 : f32
      %239 = vector.broadcast %cst_107 : f32 to vector<96x96xf32>
      %240 = vector.broadcast %cst_108 : f32 to vector<96x96xf32>
      %241 = arith.select %238, %239, %240 : vector<96x96xi1>, vector<96x96xf32>
      %c0_109 = arith.constant 0 : index
      %c0_110 = arith.constant 0 : index
      %242 = vector.load %arg19[%c0_109, %c0_110] : memref<96x96xf32, #tpu.memory_space<vmem>>, vector<96x96xf32>
      tpu.vector_store %arg19[%c0_109, %c0_110], %241 {strides = array<i32>} : memref<96x96xf32, #tpu.memory_space<vmem>>, vector<96x96xf32>,
    } else {
    }
    %c0 = arith.constant 0 : index
    %c0_1 = arith.constant 0 : index
    %3 = vector.load %arg18[%c0, %c0_1] : memref<96x128xf32, #tpu.memory_space<vmem>>, vector<96x128xf32>
    %c0_2 = arith.constant 0 : index
    %c0_3 = arith.constant 0 : index
    %4 = vector.load %arg19[%c0_2, %c0_3] : memref<96x96xf32, #tpu.memory_space<vmem>>, vector<96x96xf32>
    %5 = arith.truncf %3 : vector<96x128xf32> to vector<96x128xbf16>
    %c0_4 = arith.constant 0 : index
    %c0_5 = arith.constant 0 : index
    %c0_6 = arith.constant 0 : index
    %6 = vector.load %arg6[%c0_4, %c0_5, %c0_6] : memref<1x128x384xbf16, #tpu.memory_space<vmem>>, vector<1x128x384xbf16>
    %7 = vector.shape_cast %6 : vector<1x128x384xbf16> to vector<128x384xbf16>
    %cst = arith.constant dense<0.000000e+00> : vector<96x384xf32>
    %8 = tpu.matmul %5, %7, %cst {dimension_numbers = #tpu.dot_dimension_numbers<[1], [0], [0], [1], [0, 0, 1, 1], [], []>} : vector<96x128xbf16>, vector<128x384xbf16>, vector<96x384xf32> -> vector<96x384xf32>
    %c0_7 = arith.constant 0 : index
    %c0_8 = arith.constant 0 : index
    %c0_9 = arith.constant 0 : index
    %9 = vector.load %arg7[%c0_7, %c0_8, %c0_9] : memref<1x1x384xf32, #tpu.memory_space<vmem>>, vector<1x1x384xf32>
    %10 = vector.shape_cast %9 : vector<1x1x384xf32> to vector<1x384xf32>
    %11 = vector.broadcast %10 : vector<1x384xf32> to vector<96x384xf32>
    %12 = arith.addf %8, %11 : vector<96x384xf32>
    %13 = arith.truncf %12 : vector<96x384xf32> to vector<96x384xbf16>
    %14 = vector.extract_strided_slice %13 {offsets = [0, 0], sizes = [96, 32], strides = [1, 1]} : vector<96x384xbf16> to vector<96x32xbf16>
    %15 = vector.extract_strided_slice %13 {offsets = [0, 128], sizes = [96, 32], strides = [1, 1]} : vector<96x384xbf16> to vector<96x32xbf16>
    %16 = vector.extract_strided_slice %13 {offsets = [0, 256], sizes = [96, 32], strides = [1, 1]} : vector<96x384xbf16> to vector<96x32xbf16>
    %cst_10 = arith.constant dense<0.000000e+00> : vector<96x96xf32>
    %17 = tpu.matmul %14, %15, %cst_10 {dimension_numbers = #tpu.dot_dimension_numbers<[1], [1], [0], [0], [0, 0, 1, 0], [], []>} : vector<96x32xbf16>, vector<96x32xbf16>, vector<96x96xf32> -> vector<96x96xf32>
    %18 = arith.addf %17, %4 : vector<96x96xf32>
    %cst_11 = arith.constant dense<0xFF800000> : vector<96xf32>
    %19 = vector.multi_reduction <maximumf>, %18, %cst_11 [1] : vector<96x96xf32> to vector<96xf32>
    %20 = vector.shape_cast %19 : vector<96xf32> to vector<96x1xf32>
    %21 = vector.broadcast %20 : vector<96x1xf32> to vector<96x96xf32>
    %22 = arith.subf %18, %21 : vector<96x96xf32>
    %23 = math.exp %22 : vector<96x96xf32>
    %cst_12 = arith.constant dense<0.000000e+00> : vector<96xf32>
    %24 = vector.multi_reduction <add>, %23, %cst_12 [1] : vector<96x96xf32> to vector<96xf32>
    %25 = vector.shape_cast %24 : vector<96xf32> to vector<96x1xf32>
    %26 = tpu.reciprocal %25 {approx = true} : vector<96x1xf32> -> vector<96x1xf32>
    %27 = vector.broadcast %26 : vector<96x1xf32> to vector<96x96xf32>
    %28 = arith.mulf %23, %27 : vector<96x96xf32>
    %29 = arith.truncf %28 : vector<96x96xf32> to vector<96x96xbf16>
    %cst_13 = arith.constant dense<0.000000e+00> : vector<96x32xf32>
    %30 = tpu.matmul %29, %16, %cst_13 {dimension_numbers = #tpu.dot_dimension_numbers<[1], [0], [0], [1], [0, 0, 1, 1], [], []>} : vector<96x96xbf16>, vector<96x32xbf16>, vector<96x32xf32> -> vector<96x32xf32>
    %31 = vector.extract_strided_slice %13 {offsets = [0, 32], sizes = [96, 32], strides = [1, 1]} : vector<96x384xbf16> to vector<96x32xbf16>
    %32 = vector.extract_strided_slice %13 {offsets = [0, 160], sizes = [96, 32], strides = [1, 1]} : vector<96x384xbf16> to vector<96x32xbf16>
    %33 = vector.extract_strided_slice %13 {offsets = [0, 288], sizes = [96, 32], strides = [1, 1]} : vector<96x384xbf16> to vector<96x32xbf16>
    %cst_14 = arith.constant dense<0.000000e+00> : vector<96x96xf32>
    %34 = tpu.matmul %31, %32, %cst_14 {dimension_numbers = #tpu.dot_dimension_numbers<[1], [1], [0], [0], [0, 0, 1, 0], [], []>} : vector<96x32xbf16>, vector<96x32xbf16>, vector<96x96xf32> -> vector<96x96xf32>
    %35 = arith.addf %34, %4 : vector<96x96xf32>
    %cst_15 = arith.constant dense<0xFF800000> : vector<96xf32>
    %36 = vector.multi_reduction <maximumf>, %35, %cst_15 [1] : vector<96x96xf32> to vector<96xf32>
    %37 = vector.shape_cast %36 : vector<96xf32> to vector<96x1xf32>
    %38 = vector.broadcast %37 : vector<96x1xf32> to vector<96x96xf32>
    %39 = arith.subf %35, %38 : vector<96x96xf32>
    %40 = math.exp %39 : vector<96x96xf32>
    %cst_16 = arith.constant dense<0.000000e+00> : vector<96xf32>
    %41 = vector.multi_reduction <add>, %40, %cst_16 [1] : vector<96x96xf32> to vector<96xf32>
    %42 = vector.shape_cast %41 : vector<96xf32> to vector<96x1xf32>
    %43 = tpu.reciprocal %42 {approx = true} : vector<96x1xf32> -> vector<96x1xf32>
    %44 = vector.broadcast %43 : vector<96x1xf32> to vector<96x96xf32>
    %45 = arith.mulf %40, %44 : vector<96x96xf32>
    %46 = arith.truncf %45 : vector<96x96xf32> to vector<96x96xbf16>
    %cst_17 = arith.constant dense<0.000000e+00> : vector<96x32xf32>
    %47 = tpu.matmul %46, %33, %cst_17 {dimension_numbers = #tpu.dot_dimension_numbers<[1], [0], [0], [1], [0, 0, 1, 1], [], []>} : vector<96x96xbf16>, vector<96x32xbf16>, vector<96x32xf32> -> vector<96x32xf32>
    %48 = vector.extract_strided_slice %13 {offsets = [0, 64], sizes = [96, 32], strides = [1, 1]} : vector<96x384xbf16> to vector<96x32xbf16>
    %49 = vector.extract_strided_slice %13 {offsets = [0, 192], sizes = [96, 32], strides = [1, 1]} : vector<96x384xbf16> to vector<96x32xbf16>
    %50 = vector.extract_strided_slice %13 {offsets = [0, 320], sizes = [96, 32], strides = [1, 1]} : vector<96x384xbf16> to vector<96x32xbf16>
    %cst_18 = arith.constant dense<0.000000e+00> : vector<96x96xf32>
    %51 = tpu.matmul %48, %49, %cst_18 {dimension_numbers = #tpu.dot_dimension_numbers<[1], [1], [0], [0], [0, 0, 1, 0], [], []>} : vector<96x32xbf16>, vector<96x32xbf16>, vector<96x96xf32> -> vector<96x96xf32>
    %52 = arith.addf %51, %4 : vector<96x96xf32>
    %cst_19 = arith.constant dense<0xFF800000> : vector<96xf32>
    %53 = vector.multi_reduction <maximumf>, %52, %cst_19 [1] : vector<96x96xf32> to vector<96xf32>
    %54 = vector.shape_cast %53 : vector<96xf32> to vector<96x1xf32>
    %55 = vector.broadcast %54 : vector<96x1xf32> to vector<96x96xf32>
    %56 = arith.subf %52, %55 : vector<96x96xf32>
    %57 = math.exp %56 : vector<96x96xf32>
    %cst_20 = arith.constant dense<0.000000e+00> : vector<96xf32>
    %58 = vector.multi_reduction <add>, %57, %cst_20 [1] : vector<96x96xf32> to vector<96xf32>
    %59 = vector.shape_cast %58 : vector<96xf32> to vector<96x1xf32>
    %60 = tpu.reciprocal %59 {approx = true} : vector<96x1xf32> -> vector<96x1xf32>
    %61 = vector.broadcast %60 : vector<96x1xf32> to vector<96x96xf32>
    %62 = arith.mulf %57, %61 : vector<96x96xf32>
    %63 = arith.truncf %62 : vector<96x96xf32> to vector<96x96xbf16>
    %cst_21 = arith.constant dense<0.000000e+00> : vector<96x32xf32>
    %64 = tpu.matmul %63, %50, %cst_21 {dimension_numbers = #tpu.dot_dimension_numbers<[1], [0], [0], [1], [0, 0, 1, 1], [], []>} : vector<96x96xbf16>, vector<96x32xbf16>, vector<96x32xf32> -> vector<96x32xf32>
    %65 = vector.extract_strided_slice %13 {offsets = [0, 96], sizes = [96, 32], strides = [1, 1]} : vector<96x384xbf16> to vector<96x32xbf16>
    %66 = vector.extract_strided_slice %13 {offsets = [0, 224], sizes = [96, 32], strides = [1, 1]} : vector<96x384xbf16> to vector<96x32xbf16>
    %67 = vector.extract_strided_slice %13 {offsets = [0, 352], sizes = [96, 32], strides = [1, 1]} : vector<96x384xbf16> to vector<96x32xbf16>
    %cst_22 = arith.constant dense<0.000000e+00> : vector<96x96xf32>
    %68 = tpu.matmul %65, %66, %cst_22 {dimension_numbers = #tpu.dot_dimension_numbers<[1], [1], [0], [0], [0, 0, 1, 0], [], []>} : vector<96x32xbf16>, vector<96x32xbf16>, vector<96x96xf32> -> vector<96x96xf32>
    %69 = arith.addf %68, %4 : vector<96x96xf32>
    %cst_23 = arith.constant dense<0xFF800000> : vector<96xf32>
    %70 = vector.multi_reduction <maximumf>, %69, %cst_23 [1] : vector<96x96xf32> to vector<96xf32>
    %71 = vector.shape_cast %70 : vector<96xf32> to vector<96x1xf32>
    %72 = vector.broadcast %71 : vector<96x1xf32> to vector<96x96xf32>
    %73 = arith.subf %69, %72 : vector<96x96xf32>
    %74 = math.exp %73 : vector<96x96xf32>
    %cst_24 = arith.constant dense<0.000000e+00> : vector<96xf32>
    %75 = vector.multi_reduction <add>, %74, %cst_24 [1] : vector<96x96xf32> to vector<96xf32>
    %76 = vector.shape_cast %75 : vector<96xf32> to vector<96x1xf32>
    %77 = tpu.reciprocal %76 {approx = true} : vector<96x1xf32> -> vector<96x1xf32>
    %78 = vector.broadcast %77 : vector<96x1xf32> to vector<96x96xf32>
    %79 = arith.mulf %74, %78 : vector<96x96xf32>
    %80 = arith.truncf %79 : vector<96x96xf32> to vector<96x96xbf16>
    %cst_25 = arith.constant dense<0.000000e+00> : vector<96x32xf32>
    %81 = tpu.matmul %80, %67, %cst_25 {dimension_numbers = #tpu.dot_dimension_numbers<[1], [0], [0], [1], [0, 0, 1, 1], [], []>} : vector<96x96xbf16>, vector<96x32xbf16>, vector<96x32xf32> -> vector<96x32xf32>
    %82 = tpu.concatenate %30, %47, %64, %81 in 1 : vector<96x32xf32>, vector<96x32xf32>, vector<96x32xf32>, vector<96x32xf32> -> vector<96x128xf32>
    %83 = arith.truncf %82 : vector<96x128xf32> to vector<96x128xbf16>
    %c0_26 = arith.constant 0 : index
    %c0_27 = arith.constant 0 : index
    %c0_28 = arith.constant 0 : index
    %84 = vector.load %arg8[%c0_26, %c0_27, %c0_28] : memref<1x128x128xbf16, #tpu.memory_space<vmem>>, vector<1x128x128xbf16>
    %85 = vector.shape_cast %84 : vector<1x128x128xbf16> to vector<128x128xbf16>
    %cst_29 = arith.constant dense<0.000000e+00> : vector<96x128xf32>
    %86 = tpu.matmul %83, %85, %cst_29 {dimension_numbers = #tpu.dot_dimension_numbers<[1], [0], [0], [1], [0, 0, 1, 1], [], []>} : vector<96x128xbf16>, vector<128x128xbf16>, vector<96x128xf32> -> vector<96x128xf32>
    %c0_30 = arith.constant 0 : index
    %c0_31 = arith.constant 0 : index
    %c0_32 = arith.constant 0 : index
    %87 = vector.load %arg9[%c0_30, %c0_31, %c0_32] : memref<1x1x128xf32, #tpu.memory_space<vmem>>, vector<1x1x128xf32>
    %88 = vector.shape_cast %87 : vector<1x1x128xf32> to vector<1x128xf32>
    %89 = vector.broadcast %88 : vector<1x128xf32> to vector<96x128xf32>
    %90 = arith.addf %86, %89 : vector<96x128xf32>
    %91 = arith.addf %90, %3 : vector<96x128xf32>
    %c0_33 = arith.constant 0 : index
    %c0_34 = arith.constant 0 : index
    %c0_35 = arith.constant 0 : index
    %92 = vector.load %arg10[%c0_33, %c0_34, %c0_35] : memref<1x1x128xf32, #tpu.memory_space<vmem>>, vector<1x1x128xf32>
    %93 = vector.shape_cast %92 : vector<1x1x128xf32> to vector<1x128xf32>
    %c0_36 = arith.constant 0 : index
    %c0_37 = arith.constant 0 : index
    %c0_38 = arith.constant 0 : index
    %94 = vector.load %arg11[%c0_36, %c0_37, %c0_38] : memref<1x1x128xf32, #tpu.memory_space<vmem>>, vector<1x1x128xf32>
    %95 = vector.shape_cast %94 : vector<1x1x128xf32> to vector<1x128xf32>
    %cst_39 = arith.constant dense<0.000000e+00> : vector<96xf32>
    %96 = vector.multi_reduction <add>, %91, %cst_39 [1] : vector<96x128xf32> to vector<96xf32>
    %97 = vector.shape_cast %96 : vector<96xf32> to vector<96x1xf32>
    %cst_40 = arith.constant 1.280000e+02 : f32
    %98 = vector.broadcast %cst_40 : f32 to vector<96x1xf32>
    %99 = arith.divf %97, %98 : vector<96x1xf32>
    %100 = vector.broadcast %99 : vector<96x1xf32> to vector<96x128xf32>
    %101 = arith.subf %91, %100 : vector<96x128xf32>
    %102 = vector.broadcast %99 : vector<96x1xf32> to vector<96x128xf32>
    %103 = arith.subf %91, %102 : vector<96x128xf32>
    %104 = arith.mulf %101, %103 : vector<96x128xf32>
    %cst_41 = arith.constant dense<0.000000e+00> : vector<96xf32>
    %105 = vector.multi_reduction <add>, %104, %cst_41 [1] : vector<96x128xf32> to vector<96xf32>
    %106 = vector.shape_cast %105 : vector<96xf32> to vector<96x1xf32>
    %cst_42 = arith.constant 1.280000e+02 : f32
    %107 = vector.broadcast %cst_42 : f32 to vector<96x1xf32>
    %108 = arith.divf %106, %107 : vector<96x1xf32>
    %109 = vector.broadcast %99 : vector<96x1xf32> to vector<96x128xf32>
    %110 = arith.subf %91, %109 : vector<96x128xf32>
    %cst_43 = arith.constant 9.99999996E-13 : f32
    %111 = vector.broadcast %cst_43 : f32 to vector<96x1xf32>
    %112 = arith.addf %108, %111 : vector<96x1xf32>
    %113 = math.rsqrt %112 : vector<96x1xf32>
    %114 = vector.broadcast %113 : vector<96x1xf32> to vector<96x128xf32>
    %115 = arith.mulf %110, %114 : vector<96x128xf32>
    %116 = vector.broadcast %93 : vector<1x128xf32> to vector<96x128xf32>
    %117 = arith.mulf %115, %116 : vector<96x128xf32>
    %118 = vector.broadcast %95 : vector<1x128xf32> to vector<96x128xf32>
    %119 = arith.addf %117, %118 : vector<96x128xf32>
    %120 = arith.truncf %119 : vector<96x128xf32> to vector<96x128xbf16>
    %cst_44 = arith.constant 0.000000e+00 : f32
    %121 = vector.broadcast %cst_44 : f32 to vector<96x128xf32>
    %c0_45 = arith.constant 0 : index
    %c0_46 = arith.constant 0 : index
    %c0_47 = arith.constant 0 : index
    %122 = vector.load %arg12[%c0_45, %c0_46, %c0_47] : memref<1x128x512xbf16, #tpu.memory_space<vmem>>, vector<1x128x256xbf16>
    %123 = vector.shape_cast %122 : vector<1x128x256xbf16> to vector<128x256xbf16>
    %cst_48 = arith.constant dense<0.000000e+00> : vector<96x256xf32>
    %124 = tpu.matmul %120, %123, %cst_48 {dimension_numbers = #tpu.dot_dimension_numbers<[1], [0], [0], [1], [0, 0, 1, 1], [], []>} : vector<96x128xbf16>, vector<128x256xbf16>, vector<96x256xf32> -> vector<96x256xf32>
    %c0_49 = arith.constant 0 : index
    %c0_50 = arith.constant 0 : index
    %c0_51 = arith.constant 0 : index
    %125 = vector.load %arg13[%c0_49, %c0_50, %c0_51] : memref<1x1x512xf32, #tpu.memory_space<vmem>>, vector<1x1x256xf32>
    %126 = vector.shape_cast %125 : vector<1x1x256xf32> to vector<1x256xf32>
    %127 = vector.broadcast %126 : vector<1x256xf32> to vector<96x256xf32>
    %128 = arith.addf %124, %127 : vector<96x256xf32>
    %cst_52 = arith.constant 5.000000e-01 : f32
    %129 = vector.broadcast %cst_52 : f32 to vector<96x256xf32>
    %130 = arith.mulf %129, %128 : vector<96x256xf32>
    %cst_53 = arith.constant 4.471500e-02 : f32
    %131 = vector.broadcast %cst_53 : f32 to vector<96x256xf32>
    %132 = arith.mulf %131, %128 : vector<96x256xf32>
    %133 = arith.mulf %132, %128 : vector<96x256xf32>
    %134 = arith.mulf %133, %128 : vector<96x256xf32>
    %135 = arith.addf %128, %134 : vector<96x256xf32>
    %cst_54 = arith.constant 0.797884583 : f32
    %136 = vector.broadcast %cst_54 : f32 to vector<96x256xf32>
    %137 = arith.mulf %136, %135 : vector<96x256xf32>
    %138 = math.tanh %137 : vector<96x256xf32>
    %cst_55 = arith.constant 1.000000e+00 : f32
    %139 = vector.broadcast %cst_55 : f32 to vector<96x256xf32>
    %140 = arith.addf %139, %138 : vector<96x256xf32>
    %141 = arith.mulf %130, %140 : vector<96x256xf32>
    %142 = arith.truncf %141 : vector<96x256xf32> to vector<96x256xbf16>
    %c0_56 = arith.constant 0 : index
    %c0_57 = arith.constant 0 : index
    %c0_58 = arith.constant 0 : index
    %143 = vector.load %arg14[%c0_56, %c0_57, %c0_58] : memref<1x512x128xbf16, #tpu.memory_space<vmem>>, vector<1x256x128xbf16>
    %144 = vector.shape_cast %143 : vector<1x256x128xbf16> to vector<256x128xbf16>
    %cst_59 = arith.constant dense<0.000000e+00> : vector<96x128xf32>
    %145 = tpu.matmul %142, %144, %cst_59 {dimension_numbers = #tpu.dot_dimension_numbers<[1], [0], [0], [1], [0, 0, 1, 1], [], []>} : vector<96x256xbf16>, vector<256x128xbf16>, vector<96x128xf32> -> vector<96x128xf32>
    %146 = arith.addf %121, %145 : vector<96x128xf32>
    %c0_60 = arith.constant 0 : index
    %c0_61 = arith.constant 0 : index
    %c256 = arith.constant 256 : index
    %147 = vector.load %arg12[%c0_60, %c0_61, %c256] : memref<1x128x512xbf16, #tpu.memory_space<vmem>>, vector<1x128x256xbf16>
    %148 = vector.shape_cast %147 : vector<1x128x256xbf16> to vector<128x256xbf16>
    %cst_62 = arith.constant dense<0.000000e+00> : vector<96x256xf32>
    %149 = tpu.matmul %120, %148, %cst_62 {dimension_numbers = #tpu.dot_dimension_numbers<[1], [0], [0], [1], [0, 0, 1, 1], [], []>} : vector<96x128xbf16>, vector<128x256xbf16>, vector<96x256xf32> -> vector<96x256xf32>
    %c0_63 = arith.constant 0 : index
    %c0_64 = arith.constant 0 : index
    %c256_65 = arith.constant 256 : index
    %150 = vector.load %arg13[%c0_63, %c0_64, %c256_65] : memref<1x1x512xf32, #tpu.memory_space<vmem>>, vector<1x1x256xf32>
    %151 = vector.shape_cast %150 : vector<1x1x256xf32> to vector<1x256xf32>
    %152 = vector.broadcast %151 : vector<1x256xf32> to vector<96x256xf32>
    %153 = arith.addf %149, %152 : vector<96x256xf32>
    %cst_66 = arith.constant 5.000000e-01 : f32
    %154 = vector.broadcast %cst_66 : f32 to vector<96x256xf32>
    %155 = arith.mulf %154, %153 : vector<96x256xf32>
    %cst_67 = arith.constant 4.471500e-02 : f32
    %156 = vector.broadcast %cst_67 : f32 to vector<96x256xf32>
    %157 = arith.mulf %156, %153 : vector<96x256xf32>
    %158 = arith.mulf %157, %153 : vector<96x256xf32>
    %159 = arith.mulf %158, %153 : vector<96x256xf32>
    %160 = arith.addf %153, %159 : vector<96x256xf32>
    %cst_68 = arith.constant 0.797884583 : f32
    %161 = vector.broadcast %cst_68 : f32 to vector<96x256xf32>
    %162 = arith.mulf %161, %160 : vector<96x256xf32>
    %163 = math.tanh %162 : vector<96x256xf32>
    %cst_69 = arith.constant 1.000000e+00 : f32
    %164 = vector.broadcast %cst_69 : f32 to vector<96x256xf32>
    %165 = arith.addf %164, %163 : vector<96x256xf32>
    %166 = arith.mulf %155, %165 : vector<96x256xf32>
    %167 = arith.truncf %166 : vector<96x256xf32> to vector<96x256xbf16>
    %c0_70 = arith.constant 0 : index
    %c256_71 = arith.constant 256 : index
    %c0_72 = arith.constant 0 : index
    %168 = vector.load %arg14[%c0_70, %c256_71, %c0_72] : memref<1x512x128xbf16, #tpu.memory_space<vmem>>, vector<1x256x128xbf16>
    %169 = vector.shape_cast %168 : vector<1x256x128xbf16> to vector<256x128xbf16>
    %cst_73 = arith.constant dense<0.000000e+00> : vector<96x128xf32>
    %170 = tpu.matmul %167, %169, %cst_73 {dimension_numbers = #tpu.dot_dimension_numbers<[1], [0], [0], [1], [0, 0, 1, 1], [], []>} : vector<96x256xbf16>, vector<256x128xbf16>, vector<96x128xf32> -> vector<96x128xf32>
    %171 = arith.addf %146, %170 : vector<96x128xf32>
    %c0_74 = arith.constant 0 : index
    %c0_75 = arith.constant 0 : index
    %c0_76 = arith.constant 0 : index
    %172 = vector.load %arg15[%c0_74, %c0_75, %c0_76] : memref<1x1x128xf32, #tpu.memory_space<vmem>>, vector<1x1x128xf32>
    %173 = vector.shape_cast %172 : vector<1x1x128xf32> to vector<1x128xf32>
    %174 = vector.broadcast %173 : vector<1x128xf32> to vector<96x128xf32>
    %175 = arith.addf %171, %174 : vector<96x128xf32>
    %176 = arith.addf %175, %119 : vector<96x128xf32>
    %c0_77 = arith.constant 0 : index
    %c0_78 = arith.constant 0 : index
    %c0_79 = arith.constant 0 : index
    %177 = vector.load %arg16[%c0_77, %c0_78, %c0_79] : memref<1x1x128xf32, #tpu.memory_space<vmem>>, vector<1x1x128xf32>
    %178 = vector.shape_cast %177 : vector<1x1x128xf32> to vector<1x128xf32>
    %c0_80 = arith.constant 0 : index
    %c0_81 = arith.constant 0 : index
    %c0_82 = arith.constant 0 : index
    %179 = vector.load %arg17[%c0_80, %c0_81, %c0_82] : memref<1x1x128xf32, #tpu.memory_space<vmem>>, vector<1x1x128xf32>
    %180 = vector.shape_cast %179 : vector<1x1x128xf32> to vector<1x128xf32>
    %cst_83 = arith.constant dense<0.000000e+00> : vector<96xf32>
    %181 = vector.multi_reduction <add>, %176, %cst_83 [1] : vector<96x128xf32> to vector<96xf32>
    %182 = vector.shape_cast %181 : vector<96xf32> to vector<96x1xf32>
    %cst_84 = arith.constant 1.280000e+02 : f32
    %183 = vector.broadcast %cst_84 : f32 to vector<96x1xf32>
    %184 = arith.divf %182, %183 : vector<96x1xf32>
    %185 = vector.broadcast %184 : vector<96x1xf32> to vector<96x128xf32>
    %186 = arith.subf %176, %185 : vector<96x128xf32>
    %187 = vector.broadcast %184 : vector<96x1xf32> to vector<96x128xf32>
    %188 = arith.subf %176, %187 : vector<96x128xf32>
    %189 = arith.mulf %186, %188 : vector<96x128xf32>
    %cst_85 = arith.constant dense<0.000000e+00> : vector<96xf32>
    %190 = vector.multi_reduction <add>, %189, %cst_85 [1] : vector<96x128xf32> to vector<96xf32>
    %191 = vector.shape_cast %190 : vector<96xf32> to vector<96x1xf32>
    %cst_86 = arith.constant 1.280000e+02 : f32
    %192 = vector.broadcast %cst_86 : f32 to vector<96x1xf32>
    %193 = arith.divf %191, %192 : vector<96x1xf32>
    %194 = vector.broadcast %184 : vector<96x1xf32> to vector<96x128xf32>
    %195 = arith.subf %176, %194 : vector<96x128xf32>
    %cst_87 = arith.constant 9.99999996E-13 : f32
    %196 = vector.broadcast %cst_87 : f32 to vector<96x1xf32>
    %197 = arith.addf %193, %196 : vector<96x1xf32>
    %198 = math.rsqrt %197 : vector<96x1xf32>
    %199 = vector.broadcast %198 : vector<96x1xf32> to vector<96x128xf32>
    %200 = arith.mulf %195, %199 : vector<96x128xf32>
    %201 = vector.broadcast %178 : vector<1x128xf32> to vector<96x128xf32>
    %202 = arith.mulf %200, %201 : vector<96x128xf32>
    %203 = vector.broadcast %180 : vector<1x128xf32> to vector<96x128xf32>
    %204 = arith.addf %202, %203 : vector<96x128xf32>
    %c0_88 = arith.constant 0 : index
    %c0_89 = arith.constant 0 : index
    %205 = vector.load %arg18[%c0_88, %c0_89] : memref<96x128xf32, #tpu.memory_space<vmem>>, vector<96x128xf32>
    tpu.vector_store %arg18[%c0_88, %c0_89], %204 {strides = array<i32>} : memref<96x128xf32, #tpu.memory_space<vmem>>, vector<96x128xf32>,
    return
  }
  func.func @transform_0(%arg0: i32) -> (i32, i32) {
    %c0_i32 = arith.constant 0 : i32
    %c0_i32_0 = arith.constant 0 : i32
    %c0_i32_1 = arith.constant 0 : i32
    return %c0_i32, %c0_i32_0 : i32, i32
  }
  func.func @transform_1(%arg0: i32) -> (i32, i32) {
    %c0_i32 = arith.constant 0 : i32
    %c0_i32_0 = arith.constant 0 : i32
    %c0_i32_1 = arith.constant 0 : i32
    return %c0_i32, %c0_i32_0 : i32, i32
  }
  func.func @transform_2(%arg0: i32) -> (i32, i32) {
    %c0_i32 = arith.constant 0 : i32
    %c0_i32_0 = arith.constant 0 : i32
    %c0_i32_1 = arith.constant 0 : i32
    return %c0_i32, %c0_i32_0 : i32, i32
  }
  func.func @transform_3(%arg0: i32) -> (i32, i32) {
    %c0_i32 = arith.constant 0 : i32
    %c0_i32_0 = arith.constant 0 : i32
    %c0_i32_1 = arith.constant 0 : i32
    return %c0_i32, %c0_i32_0 : i32, i32
  }
  func.func @transform_4(%arg0: i32) -> (i32, i32) {
    %c0_i32 = arith.constant 0 : i32
    %c0_i32_0 = arith.constant 0 : i32
    %c0_i32_1 = arith.constant 0 : i32
    return %c0_i32, %c0_i32_0 : i32, i32
  }
  func.func @transform_5(%arg0: i32) -> (i32, i32, i32) {
    %c0_i32 = arith.constant 0 : i32
    %c0_i32_0 = arith.constant 0 : i32
    %c0_i32_1 = arith.constant 0 : i32
    return %arg0, %c0_i32, %c0_i32_0 : i32, i32, i32
  }
  func.func @transform_6(%arg0: i32) -> (i32, i32, i32) {
    %c0_i32 = arith.constant 0 : i32
    %c0_i32_0 = arith.constant 0 : i32
    %c0_i32_1 = arith.constant 0 : i32
    return %arg0, %c0_i32, %c0_i32_0 : i32, i32, i32
  }
  func.func @transform_7(%arg0: i32) -> (i32, i32, i32) {
    %c0_i32 = arith.constant 0 : i32
    %c0_i32_0 = arith.constant 0 : i32
    %c0_i32_1 = arith.constant 0 : i32
    return %arg0, %c0_i32, %c0_i32_0 : i32, i32, i32
  }
  func.func @transform_8(%arg0: i32) -> (i32, i32, i32) {
    %c0_i32 = arith.constant 0 : i32
    %c0_i32_0 = arith.constant 0 : i32
    %c0_i32_1 = arith.constant 0 : i32
    return %arg0, %c0_i32, %c0_i32_0 : i32, i32, i32
  }
  func.func @transform_9(%arg0: i32) -> (i32, i32, i32) {
    %c0_i32 = arith.constant 0 : i32
    %c0_i32_0 = arith.constant 0 : i32
    %c0_i32_1 = arith.constant 0 : i32
    return %arg0, %c0_i32, %c0_i32_0 : i32, i32, i32
  }
  func.func @transform_10(%arg0: i32) -> (i32, i32, i32) {
    %c0_i32 = arith.constant 0 : i32
    %c0_i32_0 = arith.constant 0 : i32
    %c0_i32_1 = arith.constant 0 : i32
    return %arg0, %c0_i32, %c0_i32_0 : i32, i32, i32
  }
  func.func @transform_11(%arg0: i32) -> (i32, i32, i32) {
    %c0_i32 = arith.constant 0 : i32
    %c0_i32_0 = arith.constant 0 : i32
    %c0_i32_1 = arith.constant 0 : i32
    return %arg0, %c0_i32, %c0_i32_0 : i32, i32, i32
  }
  func.func @transform_12(%arg0: i32) -> (i32, i32, i32) {
    %c0_i32 = arith.constant 0 : i32
    %c0_i32_0 = arith.constant 0 : i32
    %c0_i32_1 = arith.constant 0 : i32
    return %arg0, %c0_i32, %c0_i32_0 : i32, i32, i32
  }
  func.func @transform_13(%arg0: i32) -> (i32, i32, i32) {
    %c0_i32 = arith.constant 0 : i32
    %c0_i32_0 = arith.constant 0 : i32
    %c0_i32_1 = arith.constant 0 : i32
    return %arg0, %c0_i32, %c0_i32_0 : i32, i32, i32
  }
  func.func @transform_14(%arg0: i32) -> (i32, i32, i32) {
    %c0_i32 = arith.constant 0 : i32
    %c0_i32_0 = arith.constant 0 : i32
    %c0_i32_1 = arith.constant 0 : i32
    return %arg0, %c0_i32, %c0_i32_0 : i32, i32, i32
  }
  func.func @transform_15(%arg0: i32) -> (i32, i32, i32) {
    %c0_i32 = arith.constant 0 : i32
    %c0_i32_0 = arith.constant 0 : i32
    %c0_i32_1 = arith.constant 0 : i32
    return %arg0, %c0_i32, %c0_i32_0 : i32, i32, i32
  }
  func.func @transform_16(%arg0: i32) -> (i32, i32, i32) {
    %c0_i32 = arith.constant 0 : i32
    %c0_i32_0 = arith.constant 0 : i32
    %c0_i32_1 = arith.constant 0 : i32
    return %arg0, %c0_i32, %c0_i32_0 : i32, i32, i32
  }
  func.func @transform_17(%arg0: i32) -> (i32, i32) {
    %c0_i32 = arith.constant 0 : i32
    %c0_i32_0 = arith.constant 0 : i32
    %c0_i32_1 = arith.constant 0 : i32
    return %c0_i32, %c0_i32_0 : i32, i32
  }
}

</mosaic_0001>

<bundles_post_ra>
// kernel: iast_bert_forward.3
= control target key start
LH: loop header
LB: loop body
LE: loop exit
PB: predicated region body
PF: predicated region fallthrough
CT: control target
= control target key end

     0   :  { %v930_v1 = vmov 0.0   ;;  %vm931_vm0 = vmmov 0   ;;  %s1177_s0 = inlined_call_operand.vmem [shape: f32[6,128], index: 0, kind: input, shape index: {}]   ;;  %s1178_s1 = inlined_call_operand.vmem [shape: bf16[128,128], index: 1, kind: input, shape index: {}]   ;;  %s1179_s2 = inlined_call_operand.vmem [shape: f32[1,128], index: 2, kind: input, shape index: {}]   ;;  %s1180_s3 = inlined_call_operand.vmem [shape: bf16[3,128,64], index: 3, kind: input, shape index: {}]   ;;  %s1181_s4 = inlined_call_operand.vmem [shape: f32[3,1,64], index: 4, kind: input, shape index: {}]   ;;  %s1182_s5 = inlined_call_operand.vmem [shape: bf16[192,10], index: 5, kind: input, shape index: {}]   ;;  %s1183_s6 = inlined_call_operand.vmem [shape: f32[1,10], index: 6, kind: input, shape index: {}]   ;;  %s1184_s7 = inlined_call_operand.hbm [shape: f32[2,10], index: 7, kind: output, shape index: {}]  }
   0x1   :  { %v860_v0 = vld [vmem:[%s1178_s1] sm:$0xff]   ;;  %775 = vmatprep.subr.bf16.mxu1 %v930_v1  ;;  %815 = vmatprep.subr.bf16.mxu0 %v930_v1  ;;  %v861_v2 = vld [vmem:[%s1178_s1 + $0x8] sm:$0xff]   ;;  %v862_v3 = vld [vmem:[%s1178_s1 + $0x10] sm:$0xff]  }
   0x2   :  { %776 = vmatpush3.bf16.msra.mxu1 %v860_v0  ;;  %791 = vmatprep.mubr.msk.bf16.mxu1 %vm931_vm0, %v930_v1  ;;  %v863_v4 = vld [vmem:[%s1178_s1 + $0x18] sm:$0xff]   ;;  %v869_v5 = vld [vmem:[%s1180_s3 + $0x40] sm:$0xff]   ;;  %v871_v6 = vld [vmem:[%s1180_s3 + $0x48] sm:$0xff]  }
   0x3   :  { %777 = vmatprep.subr.bf16.mxu1 %v930_v1  ;;  %831 = vmatprep.mubr.msk.bf16.mxu0 %vm931_vm0, %v930_v1  ;;  %v864_v7 = vld [vmem:[%s1178_s1 + $0x20] sm:$0xff]   ;;  %v865_v8 = vld [vmem:[%s1178_s1 + $0x28] sm:$0xff]   ;;  %v873_v9 = vld [vmem:[%s1180_s3 + $0x50] sm:$0xff]  }
   0x4   :  { %816 = vmatpush3.bf16.msra.mxu0 %v869_v5  ;;  %v875_v10 = vld [vmem:[%s1180_s3 + $0x58] sm:$0xff]   ;;  %v866_v11 = vld [vmem:[%s1178_s1 + $0x30] sm:$0xff]   ;;  %v28_v13 = vld [vmem:[%s1177_s0] sm:$0x3f] }
   0x5   :  { %817 = vmatprep.subr.bf16.mxu0 %v930_v1  ;;  %v867_v12 = vld [vmem:[%s1178_s1 + $0x38] sm:$0xff]   ;;  %v868_v14 = vld [vmem:[%s1180_s3] sm:$0xff]   ;;  %v29_v15 = vpack.c.bf16 %v28_v13, %v28_v13  ;;  %v870_v16 = vld [vmem:[%s1180_s3 + $0x8] sm:$0xff]  }
   0x6   :  { %778 = vmatpush3.bf16.msra.mxu1 %v861_v2 }
   0x7   :  { %779 = vmatprep.subr.bf16.mxu1 %v930_v1 }
   0x8   :  { %818 = vmatpush3.bf16.msra.mxu0 %v871_v6 }
   0x9   :  { %819 = vmatprep.subr.bf16.mxu0 %v930_v1 }
   0xa   :  { %780 = vmatpush3.bf16.msra.mxu1 %v862_v3 }
   0xb   :  { %781 = vmatprep.subr.bf16.mxu1 %v930_v1 }
   0xc   :  { %820 = vmatpush3.bf16.msra.mxu0 %v873_v9 }
   0xd   :  { %821 = vmatprep.subr.bf16.mxu0 %v930_v1 }
   0xe   :  { %782 = vmatpush3.bf16.msra.mxu1 %v863_v4 }
   0xf   :  { %783 = vmatprep.subr.bf16.mxu1 %v930_v1 }
  0x10   :  { %822 = vmatpush3.bf16.msra.mxu0 %v875_v10 }
  0x11   :  { %823 = vmatprep.subr.bf16.mxu0 %v930_v1 }
  0x12   :  { %784 = vmatpush3.bf16.msra.mxu1 %v864_v7 }
  0x13   :  { %785 = vmatprep.subr.bf16.mxu1 %v930_v1 }
  0x16   :  { %786 = vmatpush3.bf16.msra.mxu1 %v865_v8 }
  0x17   :  { %787 = vmatprep.subr.bf16.mxu1 %v930_v1 }
  0x1a   :  { %788 = vmatpush3.bf16.msra.mxu1 %v866_v11 }
  0x1b   :  { %789 = vmatprep.subr.bf16.mxu1 %v930_v1 }
  0x1e   :  { %790 = vmatpush3.bf16.msra.mxu1 %v867_v12 }
  0x1f   :  { %795 = vmatprep.subr.bf16.mxu1 %v930_v1 }
  0x21   :  { %792 = vmatmul.mubr.bf16.vlgmr.msra.gmra.mrb[0].mxu1 %v29_v15 }
  0x22   :  { %796 = vmatpush3.bf16.msra.mxu1 %v868_v14  ;;  %811 = vmatprep.mubr.msk.bf16.mxu1 %vm931_vm0, %v930_v1 }
  0x23   :  { %797 = vmatprep.subr.bf16.mxu1 %v930_v1 }
  0x24   :  { %12 = vsyncpa [#allocation3], 0  ;;  %v872_v17 = vld [vmem:[%s1180_s3 + $0x10] sm:$0xff]   ;;  %v874_v18 = vld [vmem:[%s1180_s3 + $0x18] sm:$0xff]   ;;  %v932_v46 = vmov 0   ;;  %s933_s17 = smov 64  }
  0x25   :  { %v876_v19 = vld [vmem:[%s1180_s3 + $0x20] sm:$0xff]   ;;  %v878_v21 = vld [vmem:[%s1180_s3 + $0x28] sm:$0xff]   ;;  %v880_v23 = vld [vmem:[%s1180_s3 + $0x30] sm:$0xff]   ;;  %vm489_vm1 = vcmask 523264   ;;  %vm639_vm2 = vcmask 74752  }
  0x26   :  { %798 = vmatpush3.bf16.msra.mxu1 %v870_v16  ;;  %v877_v20 = vld [vmem:[%s1180_s3 + $0x60] sm:$0xff]   ;;  %v879_v22 = vld [vmem:[%s1180_s3 + $0x68] sm:$0xff]   ;;  %v881_v24 = vld [vmem:[%s1180_s3 + $0x70] sm:$0xff]  }
  0x27   :  { %799 = vmatprep.subr.bf16.mxu1 %v930_v1  ;;  %824 = vmatpush3.bf16.msra.mxu0 %v877_v20  ;;  %v882_v25 = vld [vmem:[%s1180_s3 + $0x38] sm:$0xff]   ;;  %v655_v27 = vld [vmem:[%s1179_s2] ss:$0 sm:$0xff]  ;;  %v885_v37 = vld [vmem:[%s1180_s3 + $0x88] sm:$0xff]  }
  0x28   :  { %825 = vmatprep.subr.bf16.mxu0 %v930_v1  ;;  %v883_v26 = vld [vmem:[%s1180_s3 + $0x78] sm:$0xff]   ;;  %v884_v34 = vld [vmem:[%s1180_s3 + $0x80] sm:$0xff]   ;;  %v886_v38 = vld [vmem:[%s1180_s3 + $0x90] sm:$0xff]  }
  0x29   :  { %v887_v39 = vld [vmem:[%s1180_s3 + $0x98] sm:$0xff]   ;;  %v888_v40 = vld [vmem:[%s1180_s3 + $0xa0] sm:$0xff]   ;;  %v889_v41 = vld [vmem:[%s1180_s3 + $0xa8] sm:$0xff]  }
  0x2a   :  { %800 = vmatpush3.bf16.msra.mxu1 %v872_v17  ;;  %v890_v42 = vld [vmem:[%s1180_s3 + $0xb0] sm:$0xff]   ;;  %v891_v43 = vld [vmem:[%s1180_s3 + $0xb8] sm:$0xff]   ;;  %v892_v45 = vld [vmem:[%s1182_s5] sm:$0xff]   ;;  %s934_s3 = smov [#allocation2]  }
  0x2b   :  { %801 = vmatprep.subr.bf16.mxu1 %v930_v1  ;;  %826 = vmatpush3.bf16.msra.mxu0 %v879_v22  ;;  %v893_v47 = vld [vmem:[%s1182_s5 + $0x8] sm:$0xff]   ;;  %v894_v48 = vld [vmem:[%s1182_s5 + $0x10] sm:$0xff]   ;;  %v895_v49 = vld [vmem:[%s1182_s5 + $0x18] sm:$0xff]   ;;  %s647_s23 = sshll.u32 %s934_s3, 4  ;;  %s648_s23 = int_to_ptr.vmem [resolvable:$true] %s647_s23 }
  0x2c   :  { %827 = vmatprep.subr.bf16.mxu0 %v930_v1  ;;  %v896_v50 = vld [vmem:[%s1182_s5 + $0x20] sm:$0xff]   ;;  %v897_v51 = vld [vmem:[%s1182_s5 + $0x28] sm:$0xff]   ;;  %v898_v52 = vld [vmem:[%s1182_s5 + $0x30] sm:$0xff]   ;;  %p911_p1 = scmp.lt.s32.totalorder %s648_s23, %s648_s23 }
  0x2d   :  { %v899_v53 = vld [vmem:[%s1182_s5 + $0x38] sm:$0xff]   ;;  %v900_v54 = vld [vmem:[%s1182_s5 + $0x40] sm:$0xff]   ;;  %v901_v55 = vld [vmem:[%s1182_s5 + $0x48] sm:$0xff]  }
  0x2e   :  { %802 = vmatpush3.bf16.msra.mxu1 %v874_v18  ;;  %v902_v56 = vld [vmem:[%s1182_s5 + $0x50] sm:$0xff]   ;;  %v903_v57 = vld [vmem:[%s1182_s5 + $0x58] sm:$0xff]   ;;  %v690_v59 = vld [vmem:[%s1181_s4 + $0x1] ss:$0 sm:$0xff] }
  0x2f   :  { %803 = vmatprep.subr.bf16.mxu1 %v930_v1  ;;  %828 = vmatpush3.bf16.msra.mxu0 %v881_v24  ;;  %v716_v4 = vld [vmem:[%s1181_s4 + $0x2] ss:$0 sm:$0xff]  ;;  %v664_v11 = vld [vmem:[%s1181_s4] ss:$0 sm:$0xff]  ;;  %s906_s4 = scalar_lea.vmem %s648_s23, 32 }
  0x30   :  { %829 = vmatprep.subr.bf16.mxu0 %v930_v1  ;;  %v725_v16 = vld [vmem:[%s1183_s6] ss:$0 sm:$0xff]  ;;  %p907_p0 = scmp.ne.s32.totalorder %s648_s23, %s906_s4  ;;  %p912_p2 = scmp.lt.s32.totalorder %s906_s4, %s906_s4 }
  0x32   :  { %804 = vmatpush3.bf16.msra.mxu1 %v876_v19  ;;  %p913_p3 = por %p912_p2, %p911_p1 }
  0x33   :  { %805 = vmatprep.subr.bf16.mxu1 %v930_v1  ;;  %830 = vmatpush3.bf16.msra.mxu0 %v883_v26 }
  0x34   :  { %599 = vmatprep.subr.bf16.mxu0 %v932_v46  ;;  %p914_p4 = pnand %p913_p3, %p907_p0 }
  0x36   :  { %806 = vmatpush3.bf16.msra.mxu1 %v878_v21 }
  0x37   :  { %807 = vmatprep.subr.bf16.mxu1 %v930_v1 }
  0x3a   :  { %808 = vmatpush3.bf16.msra.mxu1 %v880_v23 }
  0x3b   :  { %809 = vmatprep.subr.bf16.mxu1 %v930_v1 }
  0x3e   :  { %810 = vmatpush3.bf16.msra.mxu1 %v882_v25 }
  0x3f   :  { %835 = vmatprep.subr.bf16.mxu1 %v930_v1 }
  0xf4   :  { %v135_v28 = vpop.f32.mrb[0].mxu1 }
  0xf5   :  { %v136_v29 = vadd.f32 %v655_v27, %v135_v28  ;;  %v793_v30 = vpop.f32.mrb[1].mxu1 }
  0xf6   :  { %v138_v31 = vpop.f32.mrb[2].mxu1 }
  0xf7   :  { %904 = vtanh.f32 %v136_v29  ;;  %v794_v32 = vpop.f32.mrb[3].mxu1 }
 0x101   :  { %v905_v33 = vpop.eup %904 }
 0x102   :  { %v142_v35 = vpack.c.bf16 %v905_v33, %v905_v33 }
 0x104   :  { %812 = vmatmul.mubr.bf16.vlgmr.msra.gmra.mrb[4].mxu1 %v142_v35  ;;  %v280_v36 = vrot.slane %v142_v35, 1  ;;  %v395_v44 = vrot.slane %v142_v35, 2 }
 0x105   :  { %836 = vmatpush3.bf16.msra.mxu1 %v884_v34  ;;  %851 = vmatprep.mubr.msk.bf16.mxu1 %vm931_vm0, %v930_v1 }
 0x106   :  { %832 = vmatmul.mubr.bf16.vlgmr.msra.gmra.mrb[0].mxu0 %v280_v36  ;;  %837 = vmatprep.subr.bf16.mxu1 %v930_v1 }
 0x107   :  { %600 = vmatpush1.bf16.msra.mxu0 %v892_v45 }
 0x108   :  { %601 = vmatprep.subr.bf16.mxu0 %v932_v46 }
 0x109   :  { %838 = vmatpush3.bf16.msra.mxu1 %v885_v37 }
 0x10a   :  { %839 = vmatprep.subr.bf16.mxu1 %v930_v1 }
 0x10b   :  { %602 = vmatpush1.bf16.msra.mxu0 %v893_v47 }
 0x10c   :  { %603 = vmatprep.subr.bf16.mxu0 %v932_v46 }
 0x10d   :  { %840 = vmatpush3.bf16.msra.mxu1 %v886_v38 }
 0x10e   :  { %841 = vmatprep.subr.bf16.mxu1 %v930_v1 }
 0x10f   :  { %604 = vmatpush1.bf16.msra.mxu0 %v894_v48 }
 0x110   :  { %605 = vmatprep.subr.bf16.mxu0 %v932_v46 }
 0x111   :  { %842 = vmatpush3.bf16.msra.mxu1 %v887_v39 }
 0x112   :  { %843 = vmatprep.subr.bf16.mxu1 %v930_v1 }
 0x113   :  { %606 = vmatpush1.bf16.msra.mxu0 %v895_v49 }
 0x114   :  { %607 = vmatprep.subr.bf16.mxu0 %v932_v46 }
 0x115   :  { %844 = vmatpush3.bf16.msra.mxu1 %v888_v40 }
 0x116   :  { %845 = vmatprep.subr.bf16.mxu1 %v930_v1 }
 0x117   :  { %608 = vmatpush1.bf16.msra.mxu0 %v896_v50 }
 0x118   :  { %609 = vmatprep.subr.bf16.mxu0 %v932_v46 }
 0x119   :  { %846 = vmatpush3.bf16.msra.mxu1 %v889_v41 }
 0x11a   :  { %847 = vmatprep.subr.bf16.mxu1 %v930_v1 }
 0x11b   :  { %610 = vmatpush1.bf16.msra.mxu0 %v897_v51 }
 0x11c   :  { %611 = vmatprep.subr.bf16.mxu0 %v932_v46 }
 0x11d   :  { %848 = vmatpush3.bf16.msra.mxu1 %v890_v42 }
 0x11e   :  { %849 = vmatprep.subr.bf16.mxu1 %v930_v1 }
 0x11f   :  { %612 = vmatpush1.bf16.msra.mxu0 %v898_v52 }
 0x120   :  { %613 = vmatprep.subr.bf16.mxu0 %v932_v46 }
 0x121   :  { %850 = vmatpush3.bf16.msra.mxu1 %v891_v43 }
 0x123   :  { %614 = vmatpush1.bf16.msra.mxu0 %v899_v53 }
 0x124   :  { %852 = vmatmul.mubr.bf16.vlgmr.msra.gmra.mrb[8].mxu1 %v395_v44  ;;  %615 = vmatprep.subr.bf16.mxu0 %v932_v46 }
 0x127   :  { %616 = vmatpush1.bf16.msra.mxu0 %v900_v54 }
 0x128   :  { %617 = vmatprep.subr.bf16.mxu0 %v932_v46 }
 0x12b   :  { %618 = vmatpush1.bf16.msra.mxu0 %v901_v55 }
 0x12c   :  { %619 = vmatprep.subr.bf16.mxu0 %v932_v46 }
 0x12f   :  { %620 = vmatpush1.bf16.msra.mxu0 %v902_v56 }
 0x130   :  { %621 = vmatprep.subr.bf16.mxu0 %v932_v46 }
 0x133   :  { %622 = vmatpush1.bf16.msra.mxu0 %v903_v57 }
 0x1d7   :  { %v248_v58 = vpop.f32.mrb[4].mxu1 }
 0x1d8   :  { %v813_v60 = vpop.f32.mrb[5].mxu1  ;;  %v249_v12 = vadd.f32 %v664_v11, %v248_v58 }
 0x1d9   :  { %v251_v61 = vpop.f32.mrb[6].mxu1  ;;  %v364_v62 = vpop.f32.mrb[0].mxu0 }
 0x1da   :  { %v365_v63 = vadd.f32 %v690_v59, %v364_v62  ;;  %v814_v0 = vpop.f32.mrb[7].mxu1  ;;  %v833_v1 = vpop.f32.mrb[1].mxu0 }
 0x1db   :  { %v367_v2 = vpop.f32.mrb[2].mxu0 }
 0x1dc   :  { %v834_v3 = vpop.f32.mrb[3].mxu0  ;;  %486 = vrot.lane.b32.xlu0 %v365_v63, %s933_s17 }
 0x1f7   :  { %v479_v5 = vpop.f32.mrb[8].mxu1 }
 0x1f8   :  { %v480_v6 = vadd.f32 %v716_v4, %v479_v5  ;;  %v853_v7 = vpop.f32.mrb[9].mxu1 }
 0x1f9   :  { %v482_v8 = vpop.f32.mrb[10].mxu1 }
 0x1fa   :  { %v492_v9 = vpack.c.bf16 %v480_v6, %v480_v6  ;;  %v854_v10 = vpop.f32.mrb[11].mxu1 }
 0x1fc   :  { %738 = vmatprep.mubr.msk.bf16.mxu0 %vm489_vm1, %v492_v9 }
 0x24e   :  { %v487_v13 = vpop.permute.xlu0 %486 }
 0x24f   :  { %v490_v14 = vsel %vm489_vm1, %v249_v12, %v487_v13 }
 0x250   :  { %v491_v15 = vpack.c.bf16 %v490_v14, %v490_v14 }
 0x252   :  { %632 = vmatmul.mubr.bf16.vlgmr.msra.gmra.mrb[4].mxu0 %v491_v15 }
 0x325   :  { %v633_v17 = vpop.f32.mrb[4].mxu0 }
 0x326   :  { %v634_v18 = vadd.f32 %v725_v16, %v633_v17  ;;  %v635_v19 = vpop.f32.mrb[5].mxu0 }
 0x327   :  { %v636_v20 = vpop.f32.mrb[6].mxu0 }
 0x328   :  { %v637_v21 = vpop.f32.mrb[7].mxu0  ;;  %640 = vst.msk [vmem:[#allocation2] sm:$0x3] %vm639_vm2, %v634_v18 }
 0x329   :  { %917 = shalt.err (!%p914_p4)
}
 0x32a   :  { %s918_s6 = scalar_lea.hbm %s1184_s7, 32 }
 0x32b   :  { %p919_p5 = scmp.ne.s32.totalorder %s1184_s7, %s918_s6  ;;  %p922_p6 = scmp.lt.u32.totalorder %s918_s6, %s1184_s7 }
 0x32d   :  { %p924_p7 = pnand %p922_p6, %p919_p5 }
 0x32f   :  { %927 = shalt.err (!%p924_p7)
}
 0x330   :  { %650 = dma.vmem_to_hbm [thread:$0]  %s648_s23, 32, %s1184_s7, [#allocation3]  }
 0x331   :  { %928 = dma.done.wait [#allocation3], 32  }
 0x332   :  { %929 = vsyncadd [#allocation3], 4294967264 }
 0x333   :  { %654 = vsyncpa [#allocation3], 1 }

// kernel: iast_bert_forward.2
= control target key start
LH: loop header
LB: loop body
LE: loop exit
PB: predicated region body
PF: predicated region fallthrough
CT: control target
= control target key end

     0   :  { %s9301_s0 = inlined_call_operand.vmem [shape: f32[96,128], index: 0, kind: input, shape index: {}]   ;;  %s9302_s1 = inlined_call_operand.vmem [shape: s32[96,1], index: 1, kind: input, shape index: {}]   ;;  %s9303_s2 = inlined_call_operand.vmem [shape: s32[1,96], index: 2, kind: input, shape index: {}]   ;;  %s9304_s3 = inlined_call_operand.vmem [shape: f32[1,128], index: 3, kind: input, shape index: {}]   ;;  %s9305_s4 = inlined_call_operand.vmem [shape: f32[1,128], index: 4, kind: input, shape index: {}]   ;;  %s9306_s5 = inlined_call_operand.vmem [shape: bf16[2,128,384], index: 5, kind: input, shape index: {}]   ;;  %s9307_s6 = inlined_call_operand.vmem [shape: f32[2,1,384], index: 6, kind: input, shape index: {}]   ;;  %s9308_s7 = inlined_call_operand.hbm [shape: bf16[2,128,128], index: 7, kind: input, shape index: {}]   ;;  %s9309_s8 = inlined_call_operand.vmem [shape: f32[2,1,128], index: 8, kind: input, shape index: {}]   ;;  %s9310_s9 = inlined_call_operand.vmem [shape: f32[2,1,128], index: 9, kind: input, shape index: {}]   ;;  %s9311_s10 = inlined_call_operand.vmem [shape: f32[2,1,128], index: 10, kind: input, shape index: {}]   ;;  %s9312_s11 = inlined_call_operand.vmem [shape: bf16[2,128,512], index: 11, kind: input, shape index: {}]   ;;  %s9313_s12 = inlined_call_operand.vmem [shape: f32[2,1,512], index: 12, kind: input, shape index: {}]   ;;  %s9314_s13 = inlined_call_operand.vmem [shape: bf16[2,512,128], index: 13, kind: input, shape index: {}]   ;;  %s9315_s14 = inlined_call_operand.vmem [shape: f32[2,1,128], index: 14, kind: input, shape index: {}]   ;;  %s9316_s15 = inlined_call_operand.vmem [shape: f32[2,1,128], index: 15, kind: input, shape index: {}]   ;;  %s9317_s16 = inlined_call_operand.vmem [shape: f32[2,1,128], index: 16, kind: input, shape index: {}]   ;;  %s9318_s17 = inlined_call_operand.vmem [shape: f32[96,128], index: 17, kind: output, shape index: {}]  }
   0x1   :  { %9379 = sst [smem:[#allocation51_spill]] %s9301_s0 }
   0x2   :  { %9380 = sst [smem:[#allocation52_spill]] %s9302_s1 }
   0x3   :  { %9381 = sst [smem:[#allocation53_spill]] %s9304_s3 }
   0x4   :  { %9382 = sst [smem:[#allocation54_spill]] %s9305_s4 }
   0x5   :  { %9383 = sst [smem:[#allocation55_spill]] %s9306_s5 }
   0x6   :  { %9384 = sst [smem:[#allocation56_spill]] %s9307_s6 }
   0x7   :  { %9385 = sst [smem:[#allocation57_spill]] %s9308_s7 }
   0x8   :  { %9386 = sst [smem:[#allocation58_spill]] %s9312_s11 }
   0x9   :  { %9387 = sst [smem:[#allocation59_spill]] %s9318_s17 }
   0xa   :  { %22 = vsyncpa [#allocation4], 0 }
   0xb   :  { %24 = vsyncpa [#allocation4 + $0x1], 0  ;;  %s6652_s24 = smov 0   ;;  %s6654_s25 = smov 0  }
   0xc   :  { %s6656_s26 = smov 0   ;;  %s6658_s27 = smov 0  }
   0xd LB: > { %9388 = sst [smem:[#allocation6_spill]] %s6543_s25  ;;  %s6671_s28 = sadd.s32 4294967295, %s6551_s27   ;;  %s6551_s27 = sphi %s6658_s27, %s9530_s27   ;;  %s6547_s26 = sphi %s6656_s26, %s9533_s26   ;;  %s6543_s25 = sphi %s6654_s25, %s9532_s25   ;;  %s6539_s24 = sphi %s6652_s24, %s9531_s24  }
   0xe   : > { %9389 = sst [smem:[#allocation7_spill]] %s6547_s26  ;;  %s6674_s29 = sadd.s32 1, %s6551_s27  }
   0xf   : > { %9390 = sst [smem:[#allocation8_spill]] %s6674_s29  ;;  %s191_s0 = ssub.s32 %s6551_s27, %s6674_s29 }
  0x10   : > { %s194_s30 = sadd.s32 1, %s6547_s26  ;;  %p192_p0 = scmp.eq.s32.totalorder %s191_s0, 0 }
  0x11   : > { %p201_p1 = scmp.ne.s32.totalorder %s6547_s26, %s6543_s25  ;;  %p202_p2 = scmp.eq.s32.totalorder %s6551_s27, 0 }
  0x12   : > { %p207_p3 = scmp.ne.s32.totalorder %s6543_s25, %s6539_s24  ;;  %p208_p5 = scmp.eq.s32.totalorder %s6671_s28, 0 }
  0x13   : > { %s6684_s18 = scalar_select %p192_p0, %s6547_s26, %s194_s30  }
  0x14   : > { %p203_p4 = por %p202_p2, %p201_p1  ;;  %p5850_p6 = scmp.lt.s32.totalorder %s6551_s27, 2 }
  0x15   : > { %9391 = sst [smem:[#allocation9_spill]] %s6684_s18  ;;  %p6688_p7 = por %p208_p5, %p207_p3 }
  0x16   : > { %s516_s1 = sand.u32 1, %s6547_s26   ;;  %s5323_s21 = sshll.u32 %s6551_s27, 10 }
  0x17   : > { %s5156_s20 = sshll.u32 %s516_s1, 6  ;;  %s9393_s7 = sld [smem:[#allocation57_spill]] }
  0x18   : > { %s520_s24 = scalar_lea.vmem [#allocation3], %s5156_s20  ;;  %p6701_p8 = pnand %p5850_p6, %p203_p4 }
  0x19   : > { %s527_s30 = sshll.u32 %s520_s24, 4  ;;  %s6706_s26 = scalar_lea.sflag [#allocation4], %s516_s1  ;;  %s6699_s30 = int_to_ptr.vmem [resolvable:$true] %s527_s30 }
  0x1a   : > { %p6489_p11 = pneg %p6701_p8 }
  0x1d   : > { %s6697_s0 = scalar_lea.hbm %s9393_s7, %s5323_s21  ;;  %s6492_s23 = scalar_lea.hbm %s9393_s7, 2048 }
  0x1e   : > { %s6487_s22 = scalar_lea.hbm %s6697_s0, 1024  ;;  %p6493_p0 = scmp.lt.u32.totalorder %s6697_s0, %s9393_s7 }
  0x1f   : > { %p6488_p10 = scmp.ne.s32.totalorder %s6697_s0, %s6487_s22  ;;  %p6494_p1 = scmp.lt.u32.totalorder %s6492_s23, %s6487_s22 }
  0x20   : > { %p6496_p3 = scmp.lt.u32.totalorder %s6487_s22, %s6697_s0 }
  0x21   : > { %p6490_p12 = pnand %p6489_p11, %p6488_p10  ;;  %p6495_p2 = por %p6494_p1, %p6493_p0 }
  0x23   : > { %p6491_p13 = pneg %p6490_p12  ;;  %p6497_p4 = por %p6496_p3, %p6495_p2 }
  0x25   : > { %p6498_p5 = pnand %p6497_p4, %p6491_p13 }
  0x27   : > { %6501 = shalt.err (!%p6498_p5)
}
  0x28   : > { %s6502_s1 = scalar_lea.vmem %s6699_s30, 1024  ;;  %s6553_s20 = smov [#allocation3]  }
  0x29   : > { %p6503_p6 = scmp.ne.s32.totalorder %s6699_s30, %s6502_s1  ;;  %s6507_s21 = sshll.u32 %s6553_s20, 4  ;;  %s6508_s21 = int_to_ptr.vmem [resolvable:$false] %s6507_s21 }
  0x2a   : > { %s6509_s29 = scalar_lea.vmem %s6508_s21, 2048  ;;  %p6510_p9 = scmp.lt.s32.totalorder %s6699_s30, %s6508_s21 }
  0x2b   : > { %p6505_p10 = pnand %p6503_p6, %p6489_p11  ;;  %p6511_p0 = scmp.lt.s32.totalorder %s6509_s29, %s6502_s1 }
  0x2d   : > { %p6506_p12 = pneg %p6505_p10  ;;  %p6512_p1 = por %p6511_p0, %p6510_p9 }
  0x2f   : > { %p6513_p2 = pnand %p6512_p1, %p6506_p12 }
  0x31   : > { %6516 = shalt.err (!%p6513_p2)
}
  0x32   : > { %s6554_s22 = smov 64   ;;  %s6555_s23 = smov 4  }
  0x33   : > { %5849 = dma.hbm_to_vmem [thread:$0]  (!%p6701_p8), %s6697_s0, 1024, %s6699_s30, %s6706_s26, %s6554_s22, %s6554_s22, %s6555_s23  }
  0x34   : > { %p594_p11 = scmp.lt.s32.totalorder %s6551_s27, 3  ;;  %p9395_p13 = scmp.ge.s32.totalorder %s6551_s27, 1 }
  0x36   : > { %p595_p3 = pnand %p9395_p13, %p594_p11 }
  0x38   : > { %598 = sbr.rel (%p595_p3) target bundleno = 4910 (0x132e), region = 88 }
  0x3f   : > { %s600_s24 = sand.u32 1, %s6543_s25  }
  0x40   : > { %s5160_s1 = sshll.u32 %s600_s24, 6  ;;  %s601_s20 = scalar_lea.sflag [#allocation4], %s600_s24 }
  0x41   : > { %s6738_s21 = scalar_lea.vmem [#allocation3], %s5160_s1 }
  0x42   : > { %9396 = sst [smem:[#allocation10_spill]] %s6738_s21 }
  0x43   : > { %6534 = dma.done.wait (%p6688_p7), %s601_s20, 1024  }
  0x44   : > { %6536 = vsyncadd (%p6688_p7), %s601_s20, 4294966272  ;;  %p691_p9 = scmp.lt.s32.totalorder %s6671_s28, 1  ;;  %s9397_s5 = sld [smem:[#allocation55_spill]] }
  0x45   : > { %s9398_s6 = sld [smem:[#allocation56_spill]]  ;;  %s9399_s11 = sld [smem:[#allocation58_spill]] }
  0x46   : > { %s6746_s26 = scalar_select %p691_p9, %s6671_s28, 1 }
  0x47   : > { %p5167_p7 = scmp.ne.s32.totalorder %s6671_s28, 0 }
  0x48   : > { %s5842_s27 = smul.u32 192, %s6746_s26  ;;  %s5324_s18 = sshll.u32 %s6746_s26, 8  ;;  %v6556_v4 = vmov (!%p5167_p7), 0   ;;  %vm1009_vm0 = vcmask (!%p5167_p7), 785408  }
  0x49   : > { %s5843_s30 = smul.u32 3, %s6746_s26  ;;  %s5164_s22 = sshll.u32 %s6746_s26, 2  ;;  %5892 = vset.pattern.permute.xlu1 (!%p5167_p7), %v6556_v4  ;;  %5891 = vset.pattern.permute.xlu0 (!%p5167_p7), %v6556_v4 }
  0x4a   : > { %s6761_s20 = scalar_lea.vmem %s9397_s5, %s5842_s27  ;;  %s6782_s27 = scalar_lea.vmem %s9313_s12, %s5164_s22 }
  0x4b   : > { %s6770_s3 = scalar_lea.vmem %s9398_s6, %s5843_s30  ;;  %s6776_s29 = scalar_lea.vmem %s9399_s11, %s5324_s18 }
  0x4c   : > { %s6787_s25 = scalar_lea.vmem %s9314_s13, %s5324_s18  ;;  %s725_s30 = scalar_lea.vmem %s9315_s14, %s6746_s26 }
  0x4d   : > { %s728_s19 = scalar_lea.vmem %s9316_s15, %s6746_s26  ;;  %s731_s11 = scalar_lea.vmem %s9317_s16, %s6746_s26 }
  0x4e   : > { %736 = sbr.rel (%p5167_p7) target bundleno = 421 (0x1a5), region = 96  ;;  %s9400_s24 = sld [smem:[#allocation51_spill]] (!%p5167_p7) }
  0x4f   : > { %s9402_s18 = sld [smem:[#allocation52_spill]] (!%p5167_p7)  ;;  %s9403_s6 = sld [smem:[#allocation53_spill]] (!%p5167_p7) }
  0x50   : > { %s9404_s0 = sld [smem:[#allocation54_spill]] (!%p5167_p7) }
  0x54   : > { %s9401_s1 = smov (!%p5167_p7), %s9400_s24  ;;  %v737_v0 = vld [vmem:[%s9400_s24] sm:$0xff] (!%p5167_p7)  ;;  %s9405_s24 = sld [smem:[#allocation59_spill]] (!%p5167_p7) }
  0x55   : > { %v739_v1 = vld [vmem:[%s9401_s1 + $0x10] sm:$0xff]  ;;  %751 = vadd.xlane.f32.xlu0 %v737_v0  ;;  %v738_v2 = vld [vmem:[%s9401_s1 + $0x8] sm:$0xff]  ;;  %v740_v3 = vld [vmem:[%s9401_s1 + $0x18] sm:$0xff] }
  0x56   : > { %755 = vadd.xlane.f32.xlu1 %v739_v1  ;;  %v741_v5 = vld [vmem:[%s9401_s1 + $0x20] sm:$0xff]  ;;  %v742_v6 = vld [vmem:[%s9401_s1 + $0x28] sm:$0xff]  ;;  %v743_v7 = vld [vmem:[%s9401_s1 + $0x30] sm:$0xff] }
  0x57   : > { %v6826_v8 = vld [vmem:[%s9401_s1 + $0x38] sm:$0xff]  ;;  %v6832_v9 = vld [vmem:[%s9401_s1 + $0x40] sm:$0xff]  ;;  %v6837_v10 = vld [vmem:[%s9401_s1 + $0x48] sm:$0xff] }
  0x58   : > { %v6844_v11 = vld [vmem:[%s9401_s1 + $0x50] sm:$0xff]  ;;  %v6849_v12 = vld [vmem:[%s9401_s1 + $0x58] sm:$0xff]  ;;  %v933_v13 = vld [vmem:[%s9402_s18 + $0x8] sm:$0xff] }
  0x59   : > { %753 = vadd.xlane.f32.xlu0 %v738_v2  ;;  %v934_v14 = vld [vmem:[%s9402_s18 + $0x10] sm:$0xff]  ;;  %v932_v15 = vld [vmem:[%s9402_s18] sm:$0xff]  ;;  %v935_v16 = vld [vmem:[%s9402_s18 + $0x18] sm:$0xff] }
  0x5a   : > { %757 = vadd.xlane.f32.xlu1 %v740_v3  ;;  %v941_v17 = vld [vmem:[%s9402_s18 + $0x48] sm:$0xff]  ;;  %v936_v18 = vld [vmem:[%s9402_s18 + $0x20] sm:$0xff]  ;;  %v938_v20 = vld [vmem:[%s9402_s18 + $0x30] sm:$0xff] }
  0x5b   : > { %v937_v19 = vld [vmem:[%s9402_s18 + $0x28] sm:$0xff]  ;;  %v939_v21 = vld [vmem:[%s9402_s18 + $0x38] sm:$0xff]  ;;  %v940_v22 = vld [vmem:[%s9402_s18 + $0x40] sm:$0xff] }
  0x5d   : > { %759 = vadd.xlane.f32.xlu0 %v741_v5 }
  0x5e   : > { %761 = vadd.xlane.f32.xlu1 %v742_v6 }
  0x61   : > { %763 = vadd.xlane.f32.xlu0 %v743_v7 }
  0x62   : > { %765 = vadd.xlane.f32.xlu1 %v6826_v8 }
  0x65   : > { %767 = vadd.xlane.f32.xlu0 %v6832_v9 }
  0x66   : > { %769 = vadd.xlane.f32.xlu1 %v6837_v10 }
  0x69   : > { %771 = vadd.xlane.f32.xlu0 %v6844_v11 }
  0x6a   : > { %773 = vadd.xlane.f32.xlu1 %v6849_v12 }
  0x7b   : > { %949 = vperm.xlu1 %5892, %v933_v13  }
  0x7f   : > { %952 = vperm.xlu1 %5892, %v934_v14   ;;  %946 = vperm.xlu0 %5891, %v932_v15  }
  0x83   : > { %955 = vperm.xlu1 %5892, %v935_v16   ;;  %973 = vperm.xlu0 %5891, %v941_v17  }
  0x87   : > { %958 = vperm.xlu1 %5892, %v936_v18  }
  0x8b   : > { %961 = vperm.xlu1 %5892, %v937_v19  }
  0x8f   : > { %964 = vperm.xlu1 %5892, %v938_v20  }
  0x93   : > { %967 = vperm.xlu1 %5892, %v939_v21  }
  0x97   : > { %970 = vperm.xlu1 %5892, %v940_v22  }
  0xe2   : > { %v752_v23 = vpop.xlane.xlu0 %751 }
  0xe3   : > { %v756_v24 = vpop.xlane.xlu1 %755  ;;  %v776_v25 = vmul.f32 0.0078125, %v752_v23 }
  0xe4   : > { %v778_v26 = vmul.f32 0.0078125, %v756_v24  ;;  %v942_v24 = vld [vmem:[%s9402_s18 + $0x50] sm:$0xff] }
  0xe5   : > { %v6883_v27 = vsub.f32 %v737_v0, %v776_v25  ;;  %v943_v25 = vld [vmem:[%s9402_s18 + $0x58] sm:$0xff] }
  0xe6   : > { %v6885_v28 = vsub.f32 %v739_v1, %v778_v26  ;;  %v754_v29 = vpop.xlane.xlu0 %753 }
  0xe7   : > { %v758_v30 = vpop.xlane.xlu1 %757  ;;  %v777_v31 = vmul.f32 0.0078125, %v754_v29  ;;  %v800_v32 = vmul.f32 %v6883_v27, %v6883_v27 }
  0xe8   : > { %v779_v33 = vmul.f32 0.0078125, %v758_v30  ;;  %v802_v36 = vmul.f32 %v6885_v28, %v6885_v28 }
  0xe9   : > { %v6889_v34 = vsub.f32 %v738_v2, %v777_v31  ;;  %812 = vadd.xlane.f32.xlu0 %v800_v32  ;;  %v6927_v2 = vld [vmem:[%s9303_s2] ss:$0 sm:$0xff] }
  0xea   : > { %v6891_v35 = vsub.f32 %v740_v3, %v779_v33  ;;  %v760_v37 = vpop.xlane.xlu0 %759 }
  0xeb   : > { %v762_v38 = vpop.xlane.xlu1 %761  ;;  %v780_v39 = vmul.f32 0.0078125, %v760_v37  ;;  %v801_v40 = vmul.f32 %v6889_v34, %v6889_v34 }
  0xec   : > { %v781_v41 = vmul.f32 0.0078125, %v762_v38  ;;  %v803_v44 = vmul.f32 %v6891_v35, %v6891_v35 }
  0xed   : > { %v6897_v42 = vsub.f32 %v741_v5, %v780_v39  ;;  %816 = vadd.xlane.f32.xlu0 %v802_v36  ;;  %814 = vadd.xlane.f32.xlu1 %v801_v40 }
  0xee   : > { %v6899_v43 = vsub.f32 %v742_v6, %v781_v41  ;;  %v764_v45 = vpop.xlane.xlu0 %763 }
  0xef   : > { %v766_v46 = vpop.xlane.xlu1 %765  ;;  %v782_v47 = vmul.f32 0.0078125, %v764_v45  ;;  %v804_v48 = vmul.f32 %v6897_v42, %v6897_v42 }
  0xf0   : > { %v783_v49 = vmul.f32 0.0078125, %v766_v46  ;;  %v805_v52 = vmul.f32 %v6899_v43, %v6899_v43 }
  0xf1   : > { %v6905_v50 = vsub.f32 %v743_v7, %v782_v47  ;;  %818 = vadd.xlane.f32.xlu1 %v803_v44  ;;  %820 = vadd.xlane.f32.xlu0 %v804_v48 }
  0xf2   : > { %v6908_v51 = vsub.f32 %v6826_v8, %v783_v49  ;;  %v768_v53 = vpop.xlane.xlu0 %767  ;;  %v6557_v8 = vmov -1e+09  }
  0xf3   : > { %v770_v54 = vpop.xlane.xlu1 %769  ;;  %v784_v55 = vmul.f32 0.0078125, %v768_v53  ;;  %v806_v56 = vmul.f32 %v6905_v50, %v6905_v50 }
  0xf4   : > { %v785_v57 = vmul.f32 0.0078125, %v770_v54  ;;  %v807_v60 = vmul.f32 %v6908_v51, %v6908_v51 }
  0xf5   : > { %v6915_v58 = vsub.f32 %v6832_v9, %v784_v55  ;;  %822 = vadd.xlane.f32.xlu1 %v805_v52  ;;  %824 = vadd.xlane.f32.xlu0 %v806_v56 }
  0xf6   : > { %v6918_v59 = vsub.f32 %v6837_v10, %v785_v57  ;;  %v772_v61 = vpop.xlane.xlu0 %771 }
  0xf7   : > { %v774_v62 = vpop.xlane.xlu1 %773  ;;  %v786_v63 = vmul.f32 0.0078125, %v772_v61  ;;  %v808_v0 = vmul.f32 %v6915_v58, %v6915_v58  ;;  %v6980_v61 = vld [vmem:[%s9403_s6] ss:$0 sm:$0xff] }
  0xf8   : > { %v787_v1 = vmul.f32 0.0078125, %v774_v62  ;;  %v809_v5 = vmul.f32 %v6918_v59, %v6918_v59 }
  0xf9   : > { %v6930_v3 = vsub.f32 %v6844_v11, %v786_v63  ;;  %826 = vadd.xlane.f32.xlu1 %v807_v60  ;;  %828 = vadd.xlane.f32.xlu0 %v808_v0 }
  0xfa   : > { %v6933_v4 = vsub.f32 %v6849_v12, %v787_v1 }
  0xfb   : > { %v950_v6 = vpop.permute.xlu1 %949  ;;  %v810_v7 = vmul.f32 %v6930_v3, %v6930_v3 }
  0xfc   : > { %vm986_vm1 = vcmp.eq.s32.totalorder %v950_v6, %v6927_v2  ;;  %v811_v10 = vmul.f32 %v6933_v4, %v6933_v4  ;;  %v6986_v6 = vld [vmem:[%s9404_s0] ss:$0 sm:$0xff] }
  0xfd   : > { %v998_v9 = vsel %vm986_vm1, 0.0, %v6557_v8  ;;  %830 = vadd.xlane.f32.xlu1 %v809_v5  ;;  %832 = vadd.xlane.f32.xlu0 %v810_v7 }
  0xfe   : > { %1011 = vst.msk [vmem:[#allocation2 + $0x8] sm:$0xff] %vm1009_vm0, %v998_v9  ;;  %v947_v12 = vpop.permute.xlu0 %946 }
  0xff   : > { %v953_v11 = vpop.permute.xlu1 %952  ;;  %vm985_vm3 = vcmp.eq.s32.totalorder %v947_v12, %v6927_v2 }
 0x100   : > { %vm987_vm2 = vcmp.eq.s32.totalorder %v953_v11, %v6927_v2  ;;  %v997_v14 = vsel %vm985_vm3, 0.0, %v6557_v8 }
 0x101   : > { %v999_v13 = vsel %vm987_vm2, 0.0, %v6557_v8  ;;  %834 = vadd.xlane.f32.xlu1 %v811_v10  ;;  %1010 = vst.msk [vmem:[#allocation2] sm:$0xff] %vm1009_vm0, %v997_v14 }
 0x102   : > { %1012 = vst.msk [vmem:[#allocation2 + $0x10] sm:$0xff] %vm1009_vm0, %v999_v13  ;;  %v974_v16 = vpop.permute.xlu0 %973 }
 0x103   : > { %v956_v15 = vpop.permute.xlu1 %955  ;;  %vm994_vm5 = vcmp.eq.s32.totalorder %v974_v16, %v6927_v2 }
 0x104   : > { %vm988_vm4 = vcmp.eq.s32.totalorder %v956_v15, %v6927_v2  ;;  %v1006_v18 = vsel %vm994_vm5, 0.0, %v6557_v8 }
 0x105   : > { %v1000_v17 = vsel %vm988_vm4, 0.0, %v6557_v8  ;;  %1019 = vst.msk [vmem:[#allocation2 + $0x48] sm:$0xff] %vm1009_vm0, %v1006_v18 }
 0x106   : > { %1013 = vst.msk [vmem:[#allocation2 + $0x18] sm:$0xff] %vm1009_vm0, %v1000_v17 }
 0x107   : > { %v959_v19 = vpop.permute.xlu1 %958 }
 0x108   : > { %vm989_vm6 = vcmp.eq.s32.totalorder %v959_v19, %v6927_v2 }
 0x109   : > { %v1001_v20 = vsel %vm989_vm6, 0.0, %v6557_v8 }
 0x10a   : > { %1014 = vst.msk [vmem:[#allocation2 + $0x20] sm:$0xff] %vm1009_vm0, %v1001_v20 }
 0x10b   : > { %v962_v21 = vpop.permute.xlu1 %961 }
 0x10c   : > { %vm990_vm7 = vcmp.eq.s32.totalorder %v962_v21, %v6927_v2 }
 0x10d   : > { %v1002_v22 = vsel %vm990_vm7, 0.0, %v6557_v8 }
 0x10e   : > { %1015 = vst.msk [vmem:[#allocation2 + $0x28] sm:$0xff] %vm1009_vm0, %v1002_v22 }
 0x10f   : > { %v965_v23 = vpop.permute.xlu1 %964 }
 0x110   : > { %vm991_vm8 = vcmp.eq.s32.totalorder %v965_v23, %v6927_v2 }
 0x111   : > { %v1003_v26 = vsel %vm991_vm8, 0.0, %v6557_v8 }
 0x112   : > { %1016 = vst.msk [vmem:[#allocation2 + $0x30] sm:$0xff] %vm1009_vm0, %v1003_v26  ;;  %976 = vperm.xlu1 %5892, %v942_v24  }
 0x113   : > { %v968_v29 = vpop.permute.xlu1 %967  ;;  %979 = vperm.xlu0 %5891, %v943_v25  }
 0x114   : > { %vm992_vm9 = vcmp.eq.s32.totalorder %v968_v29, %v6927_v2 }
 0x115   : > { %v1004_v30 = vsel %vm992_vm9, 0.0, %v6557_v8 }
 0x116   : > { %1017 = vst.msk [vmem:[#allocation2 + $0x38] sm:$0xff] %vm1009_vm0, %v1004_v30 }
 0x117   : > { %v971_v31 = vpop.permute.xlu1 %970 }
 0x118   : > { %vm993_vm10 = vcmp.eq.s32.totalorder %v971_v31, %v6927_v2 }
 0x119   : > { %v1005_v32 = vsel %vm993_vm10, 0.0, %v6557_v8 }
 0x11a   : > { %1018 = vst.msk [vmem:[#allocation2 + $0x40] sm:$0xff] %vm1009_vm0, %v1005_v32 }
 0x176   : > { %v813_v33 = vpop.xlane.xlu0 %812 }
 0x177   : > { %v836_v36 = vmul.f32 0.0078125, %v813_v33 }
 0x179   : > { %v848_v37 = vadd.f32 1e-12, %v836_v36 }
 0x17a   : > { %v815_v38 = vpop.xlane.xlu1 %814  ;;  %v817_v39 = vpop.xlane.xlu0 %816 }
 0x17b   : > { %5893 = vrsqrt.f32 %v848_v37  ;;  %v837_v40 = vmul.f32 0.0078125, %v815_v38  ;;  %v838_v41 = vmul.f32 0.0078125, %v817_v39 }
 0x17d   : > { %v849_v44 = vadd.f32 1e-12, %v837_v40  ;;  %v850_v45 = vadd.f32 1e-12, %v838_v41 }
 0x17e   : > { %v819_v46 = vpop.xlane.xlu1 %818  ;;  %v821_v47 = vpop.xlane.xlu0 %820 }
 0x17f   : > { %5895 = vrsqrt.f32 %v849_v44  ;;  %v839_v48 = vmul.f32 0.0078125, %v819_v46  ;;  %v840_v49 = vmul.f32 0.0078125, %v821_v47 }
 0x180   : > { %5897 = vrsqrt.f32 %v850_v45 }
 0x181   : > { %v851_v52 = vadd.f32 1e-12, %v839_v48  ;;  %v852_v53 = vadd.f32 1e-12, %v840_v49 }
 0x182   : > { %v823_v54 = vpop.xlane.xlu1 %822  ;;  %v825_v55 = vpop.xlane.xlu0 %824 }
 0x183   : > { %5899 = vrsqrt.f32 %v851_v52  ;;  %v841_v56 = vmul.f32 0.0078125, %v823_v54  ;;  %v842_v57 = vmul.f32 0.0078125, %v825_v55 }
 0x184   : > { %5901 = vrsqrt.f32 %v852_v53 }
 0x185   : > { %v5894_v60 = vpop.eup %5893  ;;  %v853_v62 = vadd.f32 1e-12, %v841_v56  ;;  %v854_v63 = vadd.f32 1e-12, %v842_v57 }
 0x186   : > { %v872_v0 = vmul.f32 %v5894_v60, %v6883_v27  ;;  %v827_v1 = vpop.xlane.xlu1 %826  ;;  %v829_v5 = vpop.xlane.xlu0 %828 }
 0x187   : > { %5903 = vrsqrt.f32 %v853_v62  ;;  %v843_v7 = vmul.f32 0.0078125, %v827_v1  ;;  %v844_v9 = vmul.f32 0.0078125, %v829_v5 }
 0x188   : > { %v890_v10 = vmul.f32 %v6980_v61, %v872_v0  ;;  %5905 = vrsqrt.f32 %v854_v63 }
 0x189   : > { %v5896_v11 = vpop.eup %5895  ;;  %v855_v12 = vadd.f32 1e-12, %v843_v7  ;;  %v856_v13 = vadd.f32 1e-12, %v844_v9 }
 0x18a   : > { %v5898_v14 = vpop.eup %5897  ;;  %v908_v15 = vadd.f32 %v6986_v6, %v890_v10  ;;  %v873_v27 = vmul.f32 %v5896_v11, %v6889_v34  ;;  %v831_v16 = vpop.xlane.xlu1 %830 }
 0x18b   : > { %v833_v17 = vpop.xlane.xlu0 %832  ;;  %v874_v18 = vmul.f32 %v5898_v14, %v6885_v28  ;;  %5907 = vrsqrt.f32 %v855_v12  ;;  %v845_v19 = vmul.f32 0.0078125, %v831_v16 }
 0x18c   : > { %v846_v20 = vmul.f32 0.0078125, %v833_v17  ;;  %920 = vst [vmem:[%s9405_s24] sm:$0xff] %v908_v15  ;;  %v891_v21 = vmul.f32 %v6980_v61, %v873_v27  ;;  %5909 = vrsqrt.f32 %v856_v13 }
 0x18d   : > { %v5900_v22 = vpop.eup %5899  ;;  %v892_v23 = vmul.f32 %v6980_v61, %v874_v18  ;;  %v857_v24 = vadd.f32 1e-12, %v845_v19 }
 0x18e   : > { %v858_v25 = vadd.f32 1e-12, %v846_v20  ;;  %v5902_v34 = vpop.eup %5901  ;;  %v909_v26 = vadd.f32 %v6986_v6, %v891_v21  ;;  %v875_v28 = vmul.f32 %v5900_v22, %v6891_v35  ;;  %v835_v29 = vpop.xlane.xlu1 %834 }
 0x18f   : > { %v910_v30 = vadd.f32 %v6986_v6, %v892_v23  ;;  %v876_v31 = vmul.f32 %v5902_v34, %v6897_v42  ;;  %5911 = vrsqrt.f32 %v857_v24  ;;  %v847_v32 = vmul.f32 0.0078125, %v835_v29 }
 0x190   : > { %921 = vst [vmem:[%s9405_s24 + $0x8] sm:$0xff] %v909_v26  ;;  %v893_v33 = vmul.f32 %v6980_v61, %v875_v28  ;;  %5913 = vrsqrt.f32 %v858_v25 }
 0x191   : > { %v5904_v36 = vpop.eup %5903  ;;  %922 = vst [vmem:[%s9405_s24 + $0x10] sm:$0xff] %v910_v30  ;;  %v894_v35 = vmul.f32 %v6980_v61, %v876_v31  ;;  %v859_v37 = vadd.f32 1e-12, %v847_v32 }
 0x192   : > { %v5906_v38 = vpop.eup %5905  ;;  %v911_v42 = vadd.f32 %v6986_v6, %v893_v33  ;;  %v877_v39 = vmul.f32 %v5904_v36, %v6899_v43  ;;  %v977_v40 = vpop.permute.xlu1 %976 }
 0x193   : > { %v980_v41 = vpop.permute.xlu0 %979  ;;  %v912_v44 = vadd.f32 %v6986_v6, %v894_v35  ;;  %v878_v45 = vmul.f32 %v5906_v38, %v6905_v50  ;;  %5915 = vrsqrt.f32 %v859_v37  ;;  %vm995_vm11 = vcmp.eq.s32.totalorder %v977_v40, %v6927_v2 }
 0x194   : > { %923 = vst [vmem:[%s9405_s24 + $0x18] sm:$0xff] %v911_v42  ;;  %v895_v46 = vmul.f32 %v6980_v61, %v877_v39  ;;  %v1007_v47 = vsel %vm995_vm11, 0.0, %v6557_v8  ;;  %vm996_vm12 = vcmp.eq.s32.totalorder %v980_v41, %v6927_v2 }
 0x195   : > { %v5908_v43 = vpop.eup %5907  ;;  %924 = vst [vmem:[%s9405_s24 + $0x20] sm:$0xff] %v912_v44  ;;  %v896_v50 = vmul.f32 %v6980_v61, %v878_v45  ;;  %1020 = vst.msk [vmem:[#allocation2 + $0x50] sm:$0xff] %vm1009_vm0, %v1007_v47  ;;  %v1008_v48 = vsel %vm996_vm12, 0.0, %v6557_v8 }
 0x196   : > { %v5910_v49 = vpop.eup %5909  ;;  %v913_v52 = vadd.f32 %v6986_v6, %v895_v46  ;;  %v879_v53 = vmul.f32 %v5908_v43, %v6908_v51  ;;  %1021 = vst.msk [vmem:[#allocation2 + $0x58] sm:$0xff] %vm1009_vm0, %v1008_v48 }
 0x197   : > { %v914_v2 = vadd.f32 %v6986_v6, %v896_v50  ;;  %v880_v54 = vmul.f32 %v5910_v49, %v6915_v58 }
 0x198   : > { %925 = vst [vmem:[%s9405_s24 + $0x28] sm:$0xff] %v913_v52  ;;  %v897_v55 = vmul.f32 %v6980_v61, %v879_v53 }
 0x199   : > { %v5912_v56 = vpop.eup %5911  ;;  %926 = vst [vmem:[%s9405_s24 + $0x30] sm:$0xff] %v914_v2  ;;  %v898_v8 = vmul.f32 %v6980_v61, %v880_v54 }
 0x19a   : > { %v5914_v51 = vpop.eup %5913  ;;  %v915_v57 = vadd.f32 %v6986_v6, %v897_v55  ;;  %v881_v60 = vmul.f32 %v5912_v56, %v6918_v59 }
 0x19b   : > { %v916_v58 = vadd.f32 %v6986_v6, %v898_v8  ;;  %v882_v62 = vmul.f32 %v5914_v51, %v6930_v3 }
 0x19c   : > { %927 = vst [vmem:[%s9405_s24 + $0x38] sm:$0xff] %v915_v57  ;;  %v899_v63 = vmul.f32 %v6980_v61, %v881_v60 }
 0x19d   : > { %v5916_v0 = vpop.eup %5915  ;;  %928 = vst [vmem:[%s9405_s24 + $0x40] sm:$0xff] %v916_v58  ;;  %v900_v1 = vmul.f32 %v6980_v61, %v882_v62 }
 0x19e   : > { %v917_v5 = vadd.f32 %v6986_v6, %v899_v63  ;;  %v883_v59 = vmul.f32 %v5916_v0, %v6933_v4 }
 0x19f   : > { %v918_v7 = vadd.f32 %v6986_v6, %v900_v1 }
 0x1a0   : > { %929 = vst [vmem:[%s9405_s24 + $0x48] sm:$0xff] %v917_v5  ;;  %v901_v3 = vmul.f32 %v6980_v61, %v883_v59 }
 0x1a1   : > { %930 = vst [vmem:[%s9405_s24 + $0x50] sm:$0xff] %v918_v7 }
 0x1a2   : > { %v919_v9 = vadd.f32 %v6986_v6, %v901_v3 }
 0x1a4   : > { %931 = vst [vmem:[%s9405_s24 + $0x58] sm:$0xff] %v919_v9 }
 0x1a5 PF: > { %v6007_v4 = vld [vmem:[%s6761_s20 + $0x4] ss:$12 sps:$4 sm:$0xff]   ;;  %v6009_v61 = vld [vmem:[%s6761_s20] ss:$12 sps:$4 sm:$0xff]   ;;  %v9328_v10 = vmov 0   ;;  %s9406_s21 = sld [smem:[#allocation59_spill]]  ;;  %v1086_v49 = vlaneseq  ;;  %s9445_s7 = scalar_lea.vmem %s9309_s8, %s6746_s26 }
 0x1a6   : > { %1261 = vmatprep.mubr.bf16.mxu0 %v9328_v10  ;;  %1229 = vmatprep.subr.bf16.mxu0 %v6007_v4  ;;  %v6010_v6 = vld [vmem:[%s6761_s20 + $0x1c] ss:$12 sps:$4 sm:$0xff]   ;;  %v6012_v11 = vld [vmem:[%s6761_s20 + $0x18] ss:$12 sps:$4 sm:$0xff]   ;;  %v6013_v12 = vld [vmem:[%s6761_s20 + $0x34] ss:$12 sps:$4 sm:$0xff]   ;;  %s9446_s24 = scalar_lea.vmem %s9310_s9, %s6746_s26  ;;  %s9447_s28 = scalar_lea.vmem %s9311_s10, %s6746_s26 }
 0x1a7   : > { %1230 = vmatpush1.bf16.msra.mxu0 %v6009_v61  ;;  %v6015_v13 = vld [vmem:[%s6761_s20 + $0x30] ss:$12 sps:$4 sm:$0xff]   ;;  %v6016_v14 = vld [vmem:[%s6761_s20 + $0x4c] ss:$12 sps:$4 sm:$0xff]   ;;  %v6018_v27 = vld [vmem:[%s6761_s20 + $0x48] ss:$12 sps:$4 sm:$0xff]  }
 0x1a8   : > { %1231 = vmatprep.subr.bf16.mxu0 %v6010_v6  ;;  %v6019_v17 = vld [vmem:[%s6761_s20 + $0x64] ss:$12 sps:$4 sm:$0xff]   ;;  %v6021_v19 = vld [vmem:[%s6761_s20 + $0x60] ss:$12 sps:$4 sm:$0xff]   ;;  %v6022_v20 = vld [vmem:[%s6761_s20 + $0x7c] ss:$12 sps:$4 sm:$0xff]  }
 0x1a9   : > { %v6024_v21 = vld [vmem:[%s6761_s20 + $0x78] ss:$12 sps:$4 sm:$0xff]   ;;  %v6025_v22 = vld [vmem:[%s6761_s20 + $0x94] ss:$12 sps:$4 sm:$0xff]   ;;  %v6027_v23 = vld [vmem:[%s6761_s20 + $0x90] ss:$12 sps:$4 sm:$0xff]  }
 0x1aa   : > { %v6028_v24 = vld [vmem:[%s6761_s20 + $0xac] ss:$12 sps:$4 sm:$0xff]   ;;  %v6030_v25 = vld [vmem:[%s6761_s20 + $0xa8] ss:$12 sps:$4 sm:$0xff]   ;;  %v6034_v46 = vld [vmem:[%s6761_s20 + $0x50] ss:$12 sps:$4 sm:$0xff]  }
 0x1ab   : > { %1232 = vmatpush1.bf16.msra.mxu0 %v6012_v11  ;;  %v1022_v15 = vld [vmem:[%s9406_s21] sm:$0xff]  ;;  %v1023_v16 = vld [vmem:[%s9406_s21 + $0x8] sm:$0xff]  ;;  %v1024_v34 = vld [vmem:[%s9406_s21 + $0x10] sm:$0xff]  ;;  %v7131_v52 = vshrl.u32 %v1086_v49, 7  ;;  %vm1421_vm13 = vcmask 261120   ;;  %vm1539_vm14 = vcmask 785408  }
 0x1ac   : > { %1233 = vmatprep.subr.bf16.mxu0 %v6013_v12  ;;  %v1046_v18 = vpack.c.bf16 %v1023_v16, %v1022_v15  ;;  %v1025_v26 = vld [vmem:[%s9406_s21 + $0x18] sm:$0xff]  ;;  %v1026_v29 = vld [vmem:[%s9406_s21 + $0x20] sm:$0xff]  ;;  %v1027_v30 = vld [vmem:[%s9406_s21 + $0x28] sm:$0xff]  ;;  %s6561_s17 = smov 32   ;;  %s9426_s0 = sld [smem:[#allocation10_spill]]  ;;  %vm3139_vm15 = vcmask 523264  }
 0x1ad   : > { %v1047_v28 = vpack.c.bf16 %v1025_v26, %v1024_v34  ;;  %v1048_v31 = vpack.c.bf16 %v1027_v30, %v1026_v29  ;;  %v1028_v32 = vld [vmem:[%s9406_s21 + $0x30] sm:$0xff]  ;;  %v1029_v33 = vld [vmem:[%s9406_s21 + $0x38] sm:$0xff]  ;;  %v1030_v35 = vld [vmem:[%s9406_s21 + $0x40] sm:$0xff]  ;;  %v7134_v53 = vsub.s32 0, %v7131_v52  ;;  %v7140_v54 = vsub.s32 1, %v7131_v52 }
 0x1ae   : > { %5570 = vmatprep.mubr.bf16.mxu1 %v1046_v18  ;;  %v1049_v36 = vpack.c.bf16 %v1029_v33, %v1028_v32  ;;  %v1031_v37 = vld [vmem:[%s9406_s21 + $0x48] sm:$0xff]  ;;  %v1032_v42 = vld [vmem:[%s9406_s21 + $0x50] sm:$0xff]  ;;  %v1033_v39 = vld [vmem:[%s9406_s21 + $0x58] sm:$0xff] }
 0x1af   : > { %1234 = vmatpush1.bf16.msra.mxu0 %v6015_v13  ;;  %v1050_v38 = vpack.c.bf16 %v1031_v37, %v1030_v35  ;;  %v1051_v40 = vpack.c.bf16 %v1033_v39, %v1032_v42  ;;  %v6031_v41 = vld [vmem:[%s6761_s20 + $0x8] ss:$12 sps:$4 sm:$0xff]   ;;  %v6032_v44 = vld [vmem:[%s6761_s20 + $0x20] ss:$12 sps:$4 sm:$0xff]   ;;  %v6033_v45 = vld [vmem:[%s6761_s20 + $0x38] ss:$12 sps:$4 sm:$0xff]  }
 0x1b0   : > { %1235 = vmatprep.subr.bf16.mxu0 %v6016_v14  ;;  %5554 = vmatprep.subr.bf16.mxu1 %v6031_v41  ;;  %v6035_v47 = vld [vmem:[%s6761_s20 + $0x68] ss:$12 sps:$4 sm:$0xff]   ;;  %v6036_v43 = vld [vmem:[%s6761_s20 + $0x80] ss:$12 sps:$4 sm:$0xff]   ;;  %v6037_v50 = vld [vmem:[%s6761_s20 + $0x98] ss:$12 sps:$4 sm:$0xff]  }
 0x1b1   : > { %5555 = vmatpush3.bf16.msra.mxu1 %v6031_v41  ;;  %v6038_v48 = vld [vmem:[%s6761_s20 + $0xb0] ss:$12 sps:$4 sm:$0xff]   ;;  %9407 = vst [vmem:[#allocation11_spill] sm:$0xff] %v7134_v53  ;;  %v7137_v2 = vld [vmem:[%s6770_s3] sm:$0x7]  ;;  %9408 = vst [vmem:[#allocation12_spill] sm:$0xff] %v7140_v54 }
 0x1b2   : > { %5556 = vmatprep.subr.bf16.mxu1 %v6032_v44  ;;  %v7144_v55 = vrot.slane %v7137_v2, %v7134_v53  ;;  %v7148_v8 = vrot.slane %v7137_v2, %v7140_v54  ;;  %s6559_s3 = smov 96   ;;  %s6560_s20 = smov 64   ;;  %v7766_v53 = vld [vmem:[#allocation2 + $0x58] sm:$0xff] }
 0x1b3   : > { %1236 = vmatpush1.bf16.msra.mxu0 %v6018_v27 }
 0x1b4   : > { %1237 = vmatprep.subr.bf16.mxu0 %v6019_v17 }
 0x1b5   : > { %5557 = vmatpush3.bf16.msra.mxu1 %v6032_v44 }
 0x1b6   : > { %5558 = vmatprep.subr.bf16.mxu1 %v6033_v45 }
 0x1b7   : > { %1238 = vmatpush1.bf16.msra.mxu0 %v6021_v19 }
 0x1b8   : > { %1239 = vmatprep.subr.bf16.mxu0 %v6022_v20 }
 0x1b9   : > { %5559 = vmatpush3.bf16.msra.mxu1 %v6033_v45 }
 0x1ba   : > { %5560 = vmatprep.subr.bf16.mxu1 %v6034_v46 }
 0x1bb   : > { %1240 = vmatpush1.bf16.msra.mxu0 %v6024_v21 }
 0x1bc   : > { %1241 = vmatprep.subr.bf16.mxu0 %v6025_v22 }
 0x1bd   : > { %5561 = vmatpush3.bf16.msra.mxu1 %v6034_v46 }
 0x1be   : > { %5562 = vmatprep.subr.bf16.mxu1 %v6035_v47 }
 0x1bf   : > { %1242 = vmatpush1.bf16.msra.mxu0 %v6027_v23 }
 0x1c0   : > { %1243 = vmatprep.subr.bf16.mxu0 %v6028_v24 }
 0x1c1   : > { %5563 = vmatpush3.bf16.msra.mxu1 %v6035_v47 }
 0x1c2   : > { %5564 = vmatprep.subr.bf16.mxu1 %v6036_v43 }
 0x1c3   : > { %1244 = vmatpush1.bf16.msra.mxu0 %v6030_v25 }
 0x1c5   : > { %5565 = vmatpush3.bf16.msra.mxu1 %v6036_v43 }
 0x1c6   : > { %1262 = vmatmul.mubr.bf16.vlgmr.msra.gmra.mrb[0].mxu0 %v1046_v18  ;;  %5566 = vmatprep.subr.bf16.mxu1 %v6037_v50 }
 0x1c7   : > { %1271 = vmatprep.mubr.bf16.mxu0 %v9328_v10 }
 0x1c9   : > { %5567 = vmatpush3.bf16.msra.mxu1 %v6037_v50 }
 0x1ca   : > { %5568 = vmatprep.subr.bf16.mxu1 %v6038_v48 }
 0x1cd   : > { %5569 = vmatpush3.bf16.msra.mxu1 %v6038_v48 }
 0x1ce   : > { %1272 = vmatmul.mubr.bf16.gmra.mrb[4].mxu0 %v1047_v28 }
 0x1cf   : > { %1281 = vmatprep.mubr.bf16.mxu0 %v9328_v10 }
 0x1d0   : > { %5571 = vmatmul.mubr.bf16.vlgmr.msra.gmra.mrb[0].mxu1 %v1047_v28 }
 0x1d1   : > { %5574 = vmatprep.mubr.bf16.mxu1 %v1048_v31 }
 0x1d6   : > { %1282 = vmatmul.mubr.bf16.gmra.mrb[8].mxu0 %v1048_v31 }
 0x1d7   : > { %1291 = vmatprep.mubr.bf16.mxu0 %v9328_v10 }
 0x1d8   : > { %5575 = vmatmul.mubr.bf16.gmra.mrb[4].mxu1 %v1049_v36 }
 0x1d9   : > { %5578 = vmatprep.mubr.bf16.mxu1 %v1050_v38 }
 0x1de   : > { %1292 = vmatmul.mubr.bf16.gmra.mrb[12].mxu0 %v1049_v36 }
 0x1df   : > { %1301 = vmatprep.mubr.bf16.mxu0 %v9328_v10 }
 0x1e0   : > { %5579 = vmatmul.mubr.bf16.gmra.mrb[8].mxu1 %v1051_v40 }
 0x1e6   : > { %1302 = vmatmul.mubr.bf16.gmra.mrb[16].mxu0 %v1050_v38 }
 0x1e7   : > { %1311 = vmatprep.mubr.bf16.mxu0 %v9328_v10 }
 0x1ee   : > { %1312 = vmatmul.mubr.bf16.gmra.mrb[20].mxu0 %v1051_v40 }
 0x299   : > { %v1263_v56 = vpop.f32.mrb[0].mxu0 }
 0x29a   : > { %v1265_v51 = vpop.f32.mrb[1].mxu0  ;;  %v1264_v60 = vadd.f32 %v1263_v56, %v7144_v55 }
 0x29b   : > { %v1267_v57 = vpop.f32.mrb[2].mxu0  ;;  %v1266_v63 = vadd.f32 %v1265_v51, %v7148_v8 }
 0x29c   : > { %v1268_v58 = vadd.f32 %v1267_v57, %v7144_v55  ;;  %v1269_v62 = vpop.f32.mrb[3].mxu0 }
 0x29d   : > { %v1270_v0 = vadd.f32 %v1269_v62, %v7148_v8 }
 0x29e   : > { %v7154_v1 = vpack.c.bf16 %v1268_v58, %v1264_v60 }
 0x29f   : > { %v7156_v5 = vpack.c.bf16 %v1270_v0, %v1266_v63 }
 0x2a0   : > { %5594 = vmatprep.mubr.msk.bf16.mxu0 %vm1421_vm13, %v7154_v1 }
 0x2a1   : > { %v1273_v59 = vpop.f32.mrb[4].mxu0  ;;  %5818 = vmatprep.subr.msk.bf16.mxu0 %vm1421_vm13, %v7156_v5  ;;  %v1441_v7 = vsel %vm1421_vm13, %v7156_v5, 0 }
 0x2a2   : > { %v1275_v3 = vpop.f32.mrb[5].mxu0  ;;  %5583 = vmatpush3.bf16.xpose.msra.mxu0 %v1441_v7  ;;  %v1274_v4 = vadd.f32 %v1273_v59, %v7144_v55 }
 0x2a3   : > { %v1277_v9 = vpop.f32.mrb[6].mxu0  ;;  %v1276_v11 = vadd.f32 %v1275_v3, %v7148_v8  ;;  %v5572_v7 = vpop.f32.mrb[0].mxu1 }
 0x2a4   : > { %v1278_v61 = vadd.f32 %v1277_v9, %v7144_v55  ;;  %v1279_v6 = vpop.f32.mrb[7].mxu0  ;;  %v1356_v9 = vpop.f32.mrb[1].mxu1 }
 0x2a5   : > { %v1280_v12 = vadd.f32 %v1279_v6, %v7148_v8 }
 0x2a6   : > { %v7168_v13 = vpack.c.bf16 %v1278_v61, %v1274_v4  ;;  %v5573_v61 = vpop.f32.mrb[2].mxu1 }
 0x2a7   : > { %v7170_v14 = vpack.c.bf16 %v1280_v12, %v1276_v11  ;;  %v1359_v11 = vpop.f32.mrb[3].mxu1 }
 0x2a9   : > { %v1283_v15 = vpop.f32.mrb[8].mxu0  ;;  %5819 = vmatprep.subr.msk.bf16.mxu0 %vm1421_vm13, %v7170_v14  ;;  %v1444_v27 = vsel %vm1421_vm13, %v7170_v14, 0 }
 0x2aa   : > { %v1285_v16 = vpop.f32.mrb[9].mxu0  ;;  %5585 = vmatpush3.bf16.xpose.msra.mxu0 %v1444_v27  ;;  %v1284_v18 = vadd.f32 %v1283_v15, %v7144_v55 }
 0x2ab   : > { %v1287_v17 = vpop.f32.mrb[10].mxu0  ;;  %v1286_v21 = vadd.f32 %v1285_v16, %v7148_v8 }
 0x2ac   : > { %v1288_v19 = vadd.f32 %v1287_v17, %v7144_v55  ;;  %v1289_v20 = vpop.f32.mrb[11].mxu0  ;;  %v7254_v17 = vld [vmem:[#allocation2 + $0x18] sm:$0xff] }
 0x2ad   : > { %v1290_v22 = vadd.f32 %v1289_v20, %v7148_v8  ;;  %v7259_v20 = vld [vmem:[#allocation2 + $0x8] sm:$0xff] }
 0x2ae   : > { %v7180_v23 = vpack.c.bf16 %v1288_v19, %v1284_v18 }
 0x2af   : > { %v7182_v24 = vpack.c.bf16 %v1290_v22, %v1286_v21 }
 0x2b1   : > { %v1293_v25 = vpop.f32.mrb[12].mxu0  ;;  %5820 = vmatprep.subr.msk.bf16.mxu0 %vm1421_vm13, %v7182_v24  ;;  %v1447_v34 = vsel %vm1421_vm13, %v7182_v24, 0 }
 0x2b2   : > { %v1295_v26 = vpop.f32.mrb[13].mxu0  ;;  %5587 = vmatpush3.bf16.xpose.msra.mxu0 %v1447_v34  ;;  %v1294_v29 = vadd.f32 %v1293_v25, %v7144_v55 }
 0x2b3   : > { %v1297_v28 = vpop.f32.mrb[14].mxu0  ;;  %v1296_v32 = vadd.f32 %v1295_v26, %v7148_v8 }
 0x2b4   : > { %v1298_v30 = vadd.f32 %v1297_v28, %v7144_v55  ;;  %v1299_v31 = vpop.f32.mrb[15].mxu0 }
 0x2b5   : > { %v1300_v33 = vadd.f32 %v1299_v31, %v7148_v8 }
 0x2b6   : > { %v7192_v36 = vpack.c.bf16 %v1298_v30, %v1294_v29  ;;  %v7274_v30 = vld [vmem:[#allocation2 + $0x30] sm:$0xff] }
 0x2b7   : > { %v7194_v35 = vpack.c.bf16 %v1300_v33, %v1296_v32 }
 0x2b9   : > { %v1303_v37 = vpop.f32.mrb[16].mxu0  ;;  %5821 = vmatprep.subr.msk.bf16.mxu0 %vm1421_vm13, %v7194_v35  ;;  %v1450_v38 = vsel %vm1421_vm13, %v7194_v35, 0 }
 0x2ba   : > { %v1305_v42 = vpop.f32.mrb[17].mxu0  ;;  %5589 = vmatpush3.bf16.xpose.msra.mxu0 %v1450_v38  ;;  %v1304_v40 = vadd.f32 %v1303_v37, %v7144_v55  ;;  %v7280_v37 = vld [vmem:[#allocation2 + $0x38] sm:$0xff] }
 0x2bb   : > { %v1307_v39 = vpop.f32.mrb[18].mxu0  ;;  %v1306_v45 = vadd.f32 %v1305_v42, %v7148_v8 }
 0x2bc   : > { %v1308_v41 = vadd.f32 %v1307_v39, %v7144_v55  ;;  %v1309_v44 = vpop.f32.mrb[19].mxu0  ;;  %v7285_v39 = vld [vmem:[#allocation2 + $0x20] sm:$0xff] }
 0x2bd   : > { %v1310_v46 = vadd.f32 %v1309_v44, %v7148_v8 }
 0x2be   : > { %v7204_v47 = vpack.c.bf16 %v1308_v41, %v1304_v40  ;;  %v7287_v41 = vld [vmem:[#allocation2 + $0x28] sm:$0xff] }
 0x2bf   : > { %v7206_v43 = vpack.c.bf16 %v1310_v46, %v1306_v45 }
 0x2c1   : > { %v1313_v50 = vpop.f32.mrb[20].mxu0  ;;  %5822 = vmatprep.subr.msk.bf16.mxu0 %vm1421_vm13, %v7206_v43  ;;  %v1453_v48 = vsel %vm1421_vm13, %v7206_v43, 0 }
 0x2c2   : > { %v1314_v49 = vadd.f32 %v1313_v50, %v7144_v55  ;;  %v1315_v56 = vpop.f32.mrb[21].mxu0  ;;  %5591 = vmatpush3.bf16.xpose.msra.mxu0 %v1453_v48 }
 0x2c3   : > { %v1317_v51 = vpop.f32.mrb[22].mxu0  ;;  %v1316_v58 = vadd.f32 %v1315_v56, %v7148_v8  ;;  %v7302_v56 = vld [vmem:[#allocation2 + $0x50] sm:$0xff] }
 0x2c4   : > { %v1318_v57 = vadd.f32 %v1317_v51, %v7144_v55  ;;  %v1319_v60 = vpop.f32.mrb[23].mxu0  ;;  %v1096_v55 = vsub.s32 2, %v7131_v52  ;;  %v7250_v52 = vld [vmem:[#allocation2 + $0x10] sm:$0xff] }
 0x2c5   : > { %v1320_v62 = vadd.f32 %v1319_v60, %v7148_v8  ;;  %v7306_v60 = vld [vmem:[#allocation2 + $0x58] sm:$0xff] }
 0x2c6   : > { %v7216_v63 = vpack.c.bf16 %v1318_v57, %v1314_v49  ;;  %v7236_v8 = vrot.slane %v7137_v2, %v1096_v55  ;;  %v7252_v2 = vld [vmem:[#allocation2] sm:$0xff] }
 0x2c7   : > { %v7218_v0 = vpack.c.bf16 %v1320_v62, %v1316_v58 }
 0x2c8   : > { %v1365_v3 = vadd.f32 %v5572_v7, %v7236_v8  ;;  %v1357_v4 = vadd.f32 %v1356_v9, %v7236_v8  ;;  %v1368_v6 = vadd.f32 %v5573_v61, %v7236_v8  ;;  %v1360_v12 = vadd.f32 %v1359_v11, %v7236_v8 }
 0x2c9   : > { %5823 = vmatprep.subr.msk.bf16.mxu0 %vm1421_vm13, %v7218_v0  ;;  %v1456_v59 = vsel %vm1421_vm13, %v7218_v0, 0 }
 0x2ca   : > { %5593 = vmatpush3.bf16.xpose.msra.mxu0 %v1456_v59  ;;  %v7242_v15 = vpack.c.bf16 %v1368_v6, %v1365_v3  ;;  %v7244_v27 = vpack.c.bf16 %v1360_v12, %v1357_v4  ;;  %v7311_v59 = vld [vmem:[#allocation2 + $0x40] sm:$0xff]  ;;  %v7315_v3 = vld [vmem:[#allocation2 + $0x48] sm:$0xff] }
 0x2cc   : > { %5606 = vmatprep.subr.bf16.mxu1 %v7244_v27 }
 0x2cd   : > { %5607 = vmatpush3.bf16.msra.mxu1 %v7244_v27 }
 0x2ce   : > { %5608 = vmatprep.subr.bf16.mxu1 %v7242_v15 }
 0x2d1   : > { %5595 = vmatmul.mubr.msk.bf16.vlgmr.msra.gmra.mrb[24].mxu0 %vm1421_vm13, %v7168_v13  ;;  %5609 = vmatpush3.bf16.msra.mxu1 %v7242_v15 }
 0x2d2   : > { %5598 = vmatprep.mubr.msk.bf16.mxu0 %vm1421_vm13, %v7180_v23 }
 0x2d9   : > { %5599 = vmatmul.mubr.msk.bf16.gmra.mrb[28].mxu0 %vm1421_vm13, %v7192_v36 }
 0x2da   : > { %5602 = vmatprep.mubr.msk.bf16.mxu0 %vm1421_vm13, %v7204_v47 }
 0x2e1   : > { %5603 = vmatmul.mubr.msk.bf16.gmra.mrb[32].mxu0 %vm1421_vm13, %v7216_v63 }
 0x3a4   : > { %v5596_v16 = vpop.f32.mrb[24].mxu0 }
 0x3a5   : > { %v7257_v18 = vadd.f32 %v5596_v16, %v7250_v52  ;;  %v1492_v19 = vpop.f32.mrb[25].mxu0  ;;  %v5576_v16 = vpop.f32.mrb[4].mxu1 }
 0x3a6   : > { %v7262_v21 = vadd.f32 %v1492_v19, %v7252_v2  ;;  %v5597_v22 = vpop.f32.mrb[26].mxu0  ;;  %v1372_v19 = vpop.f32.mrb[5].mxu1 }
 0x3a7   : > { %v7265_v25 = vadd.f32 %v5597_v22, %v7254_v17  ;;  %v1495_v34 = vpop.f32.mrb[27].mxu0  ;;  %v1546_v26 = vsel %vm1539_vm14, %v7257_v18, -inf  ;;  %v5577_v22 = vpop.f32.mrb[6].mxu1 }
 0x3a8   : > { %v7270_v28 = vadd.f32 %v1495_v34, %v7259_v20  ;;  %1547 = vmax.xlane.f32.xlu1 %v1546_v26  ;;  %v1540_v29 = vsel %vm1539_vm14, %v7262_v21, -inf  ;;  %v1375_v26 = vpop.f32.mrb[7].mxu1 }
 0x3a9   : > { %1541 = vmax.xlane.f32.xlu0 %v1540_v29  ;;  %v1549_v31 = vsel %vm1539_vm14, %v7265_v25, -inf }
 0x3aa   : > { %v1543_v33 = vsel %vm1539_vm14, %v7270_v28, -inf }
 0x3ac   : > { %1550 = vmax.xlane.f32.xlu1 %v1549_v31  ;;  %v5600_v32 = vpop.f32.mrb[28].mxu0  ;;  %v1381_v31 = vadd.f32 %v5576_v16, %v7236_v8 }
 0x3ad   : > { %v7283_v38 = vadd.f32 %v5600_v32, %v7274_v30  ;;  %v1508_v42 = vpop.f32.mrb[29].mxu0  ;;  %1544 = vmax.xlane.f32.xlu0 %v1543_v33  ;;  %v1373_v32 = vadd.f32 %v1372_v19, %v7236_v8  ;;  %v1376_v33 = vadd.f32 %v1375_v26, %v7236_v8 }
 0x3ae   : > { %v5601_v40 = vpop.f32.mrb[30].mxu0  ;;  %v7295_v50 = vadd.f32 %v1508_v42, %v7285_v39  ;;  %v1384_v42 = vadd.f32 %v5577_v22, %v7236_v8 }
 0x3af   : > { %v7290_v44 = vadd.f32 %v5601_v40, %v7280_v37  ;;  %v1511_v45 = vpop.f32.mrb[31].mxu0  ;;  %v1558_v46 = vsel %vm1539_vm14, %v7283_v38, -inf  ;;  %v7338_v40 = vpack.c.bf16 %v1376_v33, %v1373_v32 }
 0x3b0   : > { %v7298_v48 = vadd.f32 %v1511_v45, %v7287_v41  ;;  %v1552_v57 = vsel %vm1539_vm14, %v7295_v50, -inf  ;;  %v7340_v45 = vpack.c.bf16 %v1384_v42, %v1381_v31 }
 0x3b1   : > { %1559 = vmax.xlane.f32.xlu0 %v1558_v46  ;;  %v1561_v49 = vsel %vm1539_vm14, %v7290_v44, -inf  ;;  %v5580_v46 = vpop.f32.mrb[8].mxu1  ;;  %5610 = vmatprep.subr.bf16.mxu1 %v7338_v40 }
 0x3b2   : > { %1562 = vmax.xlane.f32.xlu1 %v1561_v49  ;;  %v1555_v55 = vsel %vm1539_vm14, %v7298_v48, -inf  ;;  %v1388_v49 = vpop.f32.mrb[9].mxu1  ;;  %5611 = vmatpush3.bf16.msra.mxu1 %v7338_v40 }
 0x3b3   : > { %5612 = vmatprep.subr.bf16.mxu1 %v7340_v45 }
 0x3b4   : > { %v5604_v51 = vpop.f32.mrb[32].mxu0 }
 0x3b5   : > { %v7309_v58 = vadd.f32 %v5604_v51, %v7302_v56  ;;  %v1524_v62 = vpop.f32.mrb[33].mxu0  ;;  %1553 = vmax.xlane.f32.xlu0 %v1552_v57  ;;  %v5581_v51 = vpop.f32.mrb[10].mxu1  ;;  %v1389_v57 = vadd.f32 %v1388_v49, %v7236_v8 }
 0x3b6   : > { %v5605_v7 = vpop.f32.mrb[34].mxu0  ;;  %1556 = vmax.xlane.f32.xlu1 %v1555_v55  ;;  %v7323_v6 = vadd.f32 %v1524_v62, %v7311_v59  ;;  %v1391_v62 = vpop.f32.mrb[11].mxu1  ;;  %v1397_v55 = vadd.f32 %v5580_v46, %v7236_v8  ;;  %5613 = vmatpush3.bf16.msra.mxu1 %v7340_v45 }
 0x3b7   : > { %v7318_v9 = vadd.f32 %v5605_v7, %v7306_v60  ;;  %v1527_v4 = vpop.f32.mrb[35].mxu0  ;;  %v1570_v61 = vsel %vm1539_vm14, %v7309_v58, -inf  ;;  %v1392_v7 = vadd.f32 %v1391_v62, %v7236_v8 }
 0x3b8   : > { %v7326_v11 = vadd.f32 %v1527_v4, %v7315_v3  ;;  %v1564_v34 = vsel %vm1539_vm14, %v7323_v6, -inf  ;;  %v1400_v4 = vadd.f32 %v5581_v51, %v7236_v8 }
 0x3b9   : > { %1571 = vmax.xlane.f32.xlu0 %v1570_v61  ;;  %v1573_v12 = vsel %vm1539_vm14, %v7318_v9, -inf  ;;  %v7350_v61 = vpack.c.bf16 %v1392_v7, %v1389_v57 }
 0x3ba   : > { %1574 = vmax.xlane.f32.xlu1 %v1573_v12  ;;  %v1567_v29 = vsel %vm1539_vm14, %v7326_v11, -inf  ;;  %v7352_v12 = vpack.c.bf16 %v1400_v4, %v1397_v55 }
 0x3bb   : > { %5614 = vmatprep.subr.bf16.mxu1 %v7350_v61 }
 0x3bc   : > { %5615 = vmatpush3.bf16.msra.mxu1 %v7350_v61 }
 0x3bd   : > { %1565 = vmax.xlane.f32.xlu0 %v1564_v34  ;;  %5616 = vmatprep.subr.bf16.mxu1 %v7352_v12 }
 0x3be   : > { %1568 = vmax.xlane.f32.xlu1 %v1567_v29 }
 0x3c0   : > { %5617 = vmatpush3.bf16.msra.mxu1 %v7352_v12 }
 0x3cf   : > { %1803 = vrot.lane.b32.xlu1 %v7170_v14, %s6559_s3 }
 0x3d3   : > { %1801 = vrot.lane.b32.xlu0 %v7156_v5, %s6559_s3 }
 0x435   : > { %v1548_v8 = vpop.xlane.xlu1 %1547 }
 0x436   : > { %v1578_v16 = vsub.f32 %v7257_v18, %v1548_v8  ;;  %v1542_v19 = vpop.xlane.xlu0 %1541 }
 0x437   : > { %v1576_v22 = vsub.f32 %v7262_v21, %v1542_v19 }
 0x438   : > { %v1592_v34 = vmul.f32 1.442695, %v1578_v16 }
 0x439   : > { %v1588_v26 = vmul.f32 1.442695, %v1576_v22  ;;  %v1551_v29 = vpop.xlane.xlu1 %1550 }
 0x43a   : > { %6127 = vpow2.f32 %v1592_v34  ;;  %v1579_v31 = vsub.f32 %v7265_v25, %v1551_v29  ;;  %v1545_v32 = vpop.xlane.xlu0 %1544 }
 0x43b   : > { %v1577_v33 = vsub.f32 %v7270_v28, %v1545_v32  ;;  %6129 = vpow2.f32 %v1588_v26 }
 0x43c   : > { %v1594_v42 = vmul.f32 1.442695, %v1579_v31 }
 0x43d   : > { %v1590_v46 = vmul.f32 1.442695, %v1577_v33 }
 0x43e   : > { %6131 = vpow2.f32 %v1594_v42  ;;  %v1560_v49 = vpop.xlane.xlu0 %1559 }
 0x43f   : > { %6133 = vpow2.f32 %v1590_v46  ;;  %v1563_v19 = vpop.xlane.xlu1 %1562  ;;  %v1582_v26 = vsub.f32 %v7283_v38, %v1560_v49 }
 0x441   : > { %v1600_v33 = vmul.f32 1.442695, %v1582_v26 }
 0x442   : > { %v1554_v51 = vpop.xlane.xlu0 %1553 }
 0x443   : > { %v1557_v22 = vpop.xlane.xlu1 %1556  ;;  %v1580_v42 = vsub.f32 %v7295_v50, %v1554_v51 }
 0x444   : > { %v7366_v18 = vpop.eup %6127  ;;  %v1581_v38 = vsub.f32 %v7298_v48, %v1557_v22 }
 0x445   : > { %v1618_v21 = vsel %vm1539_vm14, %v7366_v18, 0.0  ;;  %v7370_v57 = vpop.eup %6129 }
 0x446   : > { %1619 = vadd.xlane.f32.xlu0 %v1618_v21  ;;  %v1572_v62 = vpop.xlane.xlu0 %1571  ;;  %v1612_v55 = vsel %vm1539_vm14, %v7370_v57, 0.0  ;;  %v1598_v50 = vmul.f32 1.442695, %v1581_v38 }
 0x447   : > { %v1586_v34 = vsub.f32 %v7309_v58, %v1572_v62  ;;  %v1575_v32 = vpop.xlane.xlu1 %1574 }
 0x448   : > { %v7372_v25 = vpop.eup %6131  ;;  %v1587_v46 = vsub.f32 %v7318_v9, %v1575_v32 }
 0x449   : > { %v1621_v28 = vsel %vm1539_vm14, %v7372_v25, 0.0  ;;  %v7378_v7 = vpop.eup %6133  ;;  %v1608_v29 = vmul.f32 1.442695, %v1586_v34 }
 0x44a   : > { %1622 = vadd.xlane.f32.xlu1 %v1621_v28  ;;  %1613 = vadd.xlane.f32.xlu0 %v1612_v55  ;;  %v1566_v4 = vpop.xlane.xlu0 %1565  ;;  %v1615_v8 = vsel %vm1539_vm14, %v7378_v7, 0.0  ;;  %v1596_v28 = vmul.f32 1.442695, %v1580_v42  ;;  %v1583_v55 = vsub.f32 %v7290_v44, %v1563_v19 }
 0x44b   : > { %v1584_v31 = vsub.f32 %v7323_v6, %v1566_v4  ;;  %6135 = vpow2.f32 %v1608_v29  ;;  %v1569_v6 = vpop.xlane.xlu1 %1568 }
 0x44c   : > { %6137 = vpow2.f32 %v1600_v33  ;;  %v1602_v58 = vmul.f32 1.442695, %v1583_v55  ;;  %v1585_v51 = vsub.f32 %v7326_v11, %v1569_v6 }
 0x44d   : > { %v1604_v21 = vmul.f32 1.442695, %v1584_v31 }
 0x44e   : > { %1616 = vadd.xlane.f32.xlu1 %v1615_v8  ;;  %v7382_v16 = vpop.permute.xlu0 %1801  ;;  %v1610_v8 = vmul.f32 1.442695, %v1587_v46  ;;  %v1606_v4 = vmul.f32 1.442695, %v1585_v51 }
 0x44f   : > { %5824 = vmatprep.subr.msk.bf16.mxu1 %vm1421_vm13, %v7382_v16  ;;  %6139 = vpow2.f32 %v1604_v21  ;;  %v1804_v21 = vpop.permute.xlu1 %1803 }
 0x450   : > { %6141 = vpow2.f32 %v1596_v28 }
 0x451   : > { %6143 = vpow2.f32 %v1610_v8 }
 0x452   : > { %6145 = vpow2.f32 %v1602_v58 }
 0x453   : > { %6147 = vpow2.f32 %v1598_v50 }
 0x454   : > { %6149 = vpow2.f32 %v1606_v4 }
 0x455   : > { %v7397_v49 = vpop.eup %6135 }
 0x456   : > { %v7400_v9 = vpop.eup %6137  ;;  %v1642_v62 = vsel %vm1539_vm14, %v7397_v49, 0.0 }
 0x457   : > { %v1630_v48 = vsel %vm1539_vm14, %v7400_v9, 0.0 }
 0x459   : > { %v7404_v44 = vpop.eup %6139 }
 0x45a   : > { %v7406_v19 = vpop.eup %6141  ;;  %v1636_v22 = vsel %vm1539_vm14, %v7404_v44, 0.0 }
 0x45b   : > { %v7412_v34 = vpop.eup %6143  ;;  %v1624_v11 = vsel %vm1539_vm14, %v7406_v19, 0.0 }
 0x45c   : > { %v1645_v26 = vsel %vm1539_vm14, %v7412_v34, 0.0  ;;  %v7418_v29 = vpop.eup %6145 }
 0x45d   : > { %v1633_v31 = vsel %vm1539_vm14, %v7418_v29, 0.0  ;;  %v7422_v32 = vpop.eup %6147 }
 0x45e   : > { %v1627_v33 = vsel %vm1539_vm14, %v7422_v32, 0.0  ;;  %v7426_v42 = vpop.eup %6149 }
 0x45f   : > { %1807 = vrot.lane.b32.xlu1 %v7194_v35, %s6559_s3  ;;  %v1639_v46 = vsel %vm1539_vm14, %v7426_v42, 0.0 }
 0x460   : > { %1805 = vrot.lane.b32.xlu0 %v7182_v24, %s6559_s3 }
 0x47f   : > { %1643 = vadd.xlane.f32.xlu0 %v1642_v62 }
 0x483   : > { %1631 = vadd.xlane.f32.xlu1 %v1630_v48  ;;  %1637 = vadd.xlane.f32.xlu0 %v1636_v22 }
 0x487   : > { %1625 = vadd.xlane.f32.xlu1 %v1624_v11  ;;  %1646 = vadd.xlane.f32.xlu0 %v1645_v26 }
 0x48b   : > { %1634 = vadd.xlane.f32.xlu1 %v1633_v31  ;;  %v1832_v31 = vsel %vm1421_vm13, %v7382_v16, 0 }
 0x48f   : > { %1628 = vadd.xlane.f32.xlu1 %v1627_v33 }
 0x493   : > { %1640 = vadd.xlane.f32.xlu1 %v1639_v46 }
 0x49d   : > { %1809 = vrot.lane.b32.xlu0 %v7206_v43, %s6559_s3 }
 0x4a1   : > { %1783 = vrot.lane.b32.xlu0 %v7154_v1, %s6559_s3 }
 0x4a4   : > { %1811 = vrot.lane.b32.xlu1 %v7218_v0, %s6559_s3 }
 0x4a5   : > { %1787 = vrot.lane.b32.xlu0 %v7180_v23, %s6559_s3 }
 0x4a8   : > { %1785 = vrot.lane.b32.xlu1 %v7168_v13, %s6559_s3 }
 0x4a9   : > { %1791 = vrot.lane.b32.xlu0 %v7204_v47, %s6559_s3 }
 0x4ac   : > { %1789 = vrot.lane.b32.xlu1 %v7192_v36, %s6559_s3 }
 0x4ad   : > { %2074 = vrot.lane.b32.xlu0 %v7244_v27, %s6559_s3 }
 0x4b0   : > { %1793 = vrot.lane.b32.xlu1 %v7216_v63, %s6559_s3 }
 0x4b1   : > { %2078 = vrot.lane.b32.xlu0 %v7338_v40, %s6559_s3 }
 0x4b4   : > { %2076 = vrot.lane.b32.xlu1 %v7242_v15, %s6559_s3 }
 0x4b8   : > { %2080 = vrot.lane.b32.xlu1 %v7340_v45, %s6559_s3 }
 0x4bc   : > { %2084 = vrot.lane.b32.xlu1 %v7352_v12, %s6559_s3 }
 0x4d3   : > { %v1620_v28 = vpop.xlane.xlu0 %1619 }
 0x4d7   : > { %v1623_v55 = vpop.xlane.xlu1 %1622  ;;  %v1614_v8 = vpop.xlane.xlu0 %1613 }
 0x4d8   : > { %6151 = vrcp.f32 %v1623_v55 }
 0x4d9   : > { %6153 = vrcp.f32 %v1614_v8 }
 0x4da   : > { %6155 = vrcp.f32 %v1620_v28 }
 0x4db   : > { %v1617_v58 = vpop.xlane.xlu1 %1616  ;;  %v1806_v33 = vpop.permute.xlu0 %1805 }
 0x4dc   : > { %6157 = vrcp.f32 %v1617_v58 }
 0x4e2   : > { %v6152_v38 = vpop.eup %6151 }
 0x4e3   : > { %v6154_v6 = vpop.eup %6153  ;;  %v1663_v62 = vmul.f32 %v6152_v38, %v7372_v25  ;;  %v1835_v25 = vsel %vm1421_vm13, %v1804_v21, 0 }
 0x4e4   : > { %v6156_v50 = vpop.eup %6155  ;;  %v1660_v4 = vmul.f32 %v6154_v6, %v7370_v57  ;;  %v1808_v57 = vpop.permute.xlu1 %1807 }
 0x4e5   : > { %v1662_v22 = vmul.f32 %v6156_v50, %v7366_v18  ;;  %v1838_v18 = vsel %vm1421_vm13, %v1806_v33, 0 }
 0x4e6   : > { %v6158_v51 = vpop.eup %6157 }
 0x4e7   : > { %v1661_v48 = vmul.f32 %v6158_v51, %v7378_v7  ;;  %v1673_v26 = vpack.c.bf16 %v1663_v62, %v1662_v22  ;;  %v1841_v7 = vsel %vm1421_vm13, %v1808_v57, 0 }
 0x4e9   : > { %v1672_v11 = vpack.c.bf16 %v1661_v48, %v1660_v4 }
 0x4eb   : > { %5618 = vmatprep.mubr.msk.bf16.mxu1 %vm1539_vm14, %v1672_v11 }
 0x4ec   : > { %5619 = vmatmul.mubr.msk.bf16.vlgmr.msra.gmra.mrb[12].mxu1 %vm1539_vm14, %v1673_v26 }
 0x4ed   : > { %5631 = vmatpush3.bf16.xpose.msra.mxu1 %v1832_v31 }
 0x4ee   : > { %5825 = vmatprep.subr.msk.bf16.mxu1 %vm1421_vm13, %v1804_v21 }
 0x4f5   : > { %5633 = vmatpush3.bf16.xpose.msra.mxu1 %v1835_v25 }
 0x4f6   : > { %5826 = vmatprep.subr.msk.bf16.mxu1 %vm1421_vm13, %v1806_v33 }
 0x4fd   : > { %5635 = vmatpush3.bf16.xpose.msra.mxu1 %v1838_v18 }
 0x4fe   : > { %5827 = vmatprep.subr.msk.bf16.mxu1 %vm1421_vm13, %v1808_v57 }
 0x505   : > { %5637 = vmatpush3.bf16.xpose.msra.mxu1 %v1841_v7 }
 0x50c   : > { %v1644_v46 = vpop.xlane.xlu0 %1643 }
 0x510   : > { %v1632_v16 = vpop.xlane.xlu1 %1631  ;;  %v1638_v28 = vpop.xlane.xlu0 %1637 }
 0x514   : > { %v1626_v55 = vpop.xlane.xlu1 %1625  ;;  %v1647_v8 = vpop.xlane.xlu0 %1646 }
 0x518   : > { %v1635_v58 = vpop.xlane.xlu1 %1634  ;;  %v1810_v21 = vpop.permute.xlu0 %1809 }
 0x519   : > { %5828 = vmatprep.subr.msk.bf16.mxu1 %vm1421_vm13, %v1810_v21  ;;  %v1844_v38 = vsel %vm1421_vm13, %v1810_v21, 0  ;;  %6159 = vrcp.f32 %v1635_v58 }
 0x51a   : > { %5639 = vmatpush3.bf16.xpose.msra.mxu1 %v1844_v38  ;;  %6161 = vrcp.f32 %v1626_v55 }
 0x51b   : > { %6163 = vrcp.f32 %v1632_v16 }
 0x51c   : > { %v1629_v6 = vpop.xlane.xlu1 %1628  ;;  %v1784_v50 = vpop.permute.xlu0 %1783 }
 0x51d   : > { %6165 = vrcp.f32 %v1629_v6 }
 0x51e   : > { %6167 = vrcp.f32 %v1638_v28 }
 0x520   : > { %v1641_v51 = vpop.xlane.xlu1 %1640  ;;  %v1788_v62 = vpop.permute.xlu0 %1787 }
 0x521   : > { %6169 = vrcp.f32 %v1641_v51 }
 0x522   : > { %6171 = vrcp.f32 %v1647_v8 }
 0x523   : > { %v6160_v4 = vpop.eup %6159  ;;  %6173 = vrcp.f32 %v1644_v46 }
 0x524   : > { %v1812_v48 = vpop.permute.xlu1 %1811  ;;  %v1792_v22 = vpop.permute.xlu0 %1791  ;;  %v1667_v33 = vmul.f32 %v6160_v4, %v7418_v29 }
 0x525   : > { %v6162_v11 = vpop.eup %6161  ;;  %5829 = vmatprep.subr.msk.bf16.mxu1 %vm1421_vm13, %v1812_v48  ;;  %v1847_v26 = vsel %vm1421_vm13, %v1812_v48, 0 }
 0x526   : > { %v6164_v31 = vpop.eup %6163  ;;  %5641 = vmatpush3.bf16.xpose.msra.mxu1 %v1847_v26  ;;  %v1664_v57 = vmul.f32 %v6162_v11, %v7406_v19 }
 0x527   : > { %v6166_v25 = vpop.eup %6165  ;;  %v1666_v46 = vmul.f32 %v6164_v31, %v7400_v9 }
 0x528   : > { %v1786_v18 = vpop.permute.xlu1 %1785  ;;  %v1665_v7 = vmul.f32 %v6166_v25, %v7422_v32  ;;  %v2075_v16 = vpop.permute.xlu0 %2074 }
 0x529   : > { %v6168_v28 = vpop.eup %6167  ;;  %5654 = vmatprep.subr.bf16.mxu0 %v2075_v16  ;;  %v1675_v58 = vpack.c.bf16 %v1667_v33, %v1666_v46 }
 0x52a   : > { %v1674_v55 = vpack.c.bf16 %v1665_v7, %v1664_v57  ;;  %5655 = vmatpush3.bf16.msra.mxu0 %v2075_v16  ;;  %v1668_v29 = vmul.f32 %v6168_v28, %v7404_v44 }
 0x52b   : > { %v6170_v8 = vpop.eup %6169 }
 0x52c   : > { %v6172_v21 = vpop.eup %6171  ;;  %v1790_v38 = vpop.permute.xlu1 %1789  ;;  %5622 = vmatprep.mubr.msk.bf16.mxu1 %vm1539_vm14, %v1674_v55  ;;  %v1669_v6 = vmul.f32 %v6170_v8, %v7426_v42 }
 0x52d   : > { %5623 = vmatmul.mubr.msk.bf16.gmra.mrb[16].mxu1 %vm1539_vm14, %v1675_v58  ;;  %v6174_v19 = vpop.eup %6173  ;;  %v1671_v51 = vmul.f32 %v6172_v21, %v7412_v34  ;;  %v2079_v26 = vpop.permute.xlu0 %2078 }
 0x52e   : > { %v1676_v32 = vpack.c.bf16 %v1669_v6, %v1668_v29  ;;  %v1670_v4 = vmul.f32 %v6174_v19, %v7397_v49 }
 0x530   : > { %v1794_v9 = vpop.permute.xlu1 %1793  ;;  %5626 = vmatprep.mubr.msk.bf16.mxu1 %vm1539_vm14, %v1676_v32  ;;  %v1677_v48 = vpack.c.bf16 %v1671_v51, %v1670_v4 }
 0x534   : > { %v2077_v11 = vpop.permute.xlu1 %2076 }
 0x535   : > { %5627 = vmatmul.mubr.msk.bf16.gmra.mrb[20].mxu1 %vm1539_vm14, %v1677_v48  ;;  %5656 = vmatprep.subr.bf16.mxu0 %v2077_v11 }
 0x536   : > { %5642 = vmatprep.mubr.msk.bf16.mxu1 %vm1421_vm13, %v1784_v50  ;;  %5657 = vmatpush3.bf16.msra.mxu0 %v2077_v11 }
 0x537   : > { %5658 = vmatprep.subr.bf16.mxu0 %v2079_v26 }
 0x538   : > { %v2081_v44 = vpop.permute.xlu1 %2080 }
 0x53a   : > { %5659 = vmatpush3.bf16.msra.mxu0 %v2079_v26 }
 0x53b   : > { %5660 = vmatprep.subr.bf16.mxu0 %v2081_v44 }
 0x53d   : > { %5643 = vmatmul.mubr.msk.bf16.vlgmr.msra.gmra.mrb[24].mxu1 %vm1421_vm13, %v1786_v18 }
 0x53e   : > { %5646 = vmatprep.mubr.msk.bf16.mxu1 %vm1421_vm13, %v1788_v62  ;;  %5661 = vmatpush3.bf16.msra.mxu0 %v2081_v44 }
 0x545   : > { %5647 = vmatmul.mubr.msk.bf16.gmra.mrb[28].mxu1 %vm1421_vm13, %v1790_v38 }
 0x546   : > { %5650 = vmatprep.mubr.msk.bf16.mxu1 %vm1421_vm13, %v1792_v22 }
 0x54d   : > { %5651 = vmatmul.mubr.msk.bf16.gmra.mrb[32].mxu1 %vm1421_vm13, %v1794_v9 }
 0x5bf   : > { %v7492_v49 = vpop.f32.mrb[12].mxu1 }
 0x5c0   : > { %9409 = vst [vmem:[#allocation13_spill] sm:$0xff] %v7492_v49  ;;  %v7494_v34 = vpop.f32.mrb[13].mxu1 }
 0x5c1   : > { %9410 = vst [vmem:[#allocation14_spill] sm:$0xff] %v7494_v34  ;;  %v7496_v42 = vpop.f32.mrb[14].mxu1 }
 0x5c2   : > { %9411 = vst [vmem:[#allocation15_spill] sm:$0xff] %v7496_v42  ;;  %v7498_v50 = vpop.f32.mrb[15].mxu1 }
 0x5c3   : > { %9412 = vst [vmem:[#allocation16_spill] sm:$0xff] %v7498_v50 }
 0x600   : > { %v7500_v31 = vpop.f32.mrb[16].mxu1 }
 0x601   : > { %9413 = vst [vmem:[#allocation17_spill] sm:$0xff] %v7500_v31  ;;  %v7502_v25 = vpop.f32.mrb[17].mxu1 }
 0x602   : > { %9414 = vst [vmem:[#allocation18_spill] sm:$0xff] %v7502_v25  ;;  %v7504_v62 = vpop.f32.mrb[18].mxu1  ;;  %v7791_v25 = vld [vmem:[#allocation2 + $0x50] sm:$0xff] }
 0x603   : > { %9415 = vst [vmem:[#allocation19_spill] sm:$0xff] %v7504_v62  ;;  %v7506_v33 = vpop.f32.mrb[19].mxu1 }
 0x604   : > { %9416 = vst [vmem:[#allocation20_spill] sm:$0xff] %v7506_v33 }
 0x608   : > { %v7508_v18 = vpop.f32.mrb[20].mxu1 }
 0x609   : > { %9417 = vst [vmem:[#allocation21_spill] sm:$0xff] %v7508_v18  ;;  %v7510_v22 = vpop.f32.mrb[21].mxu1 }
 0x60a   : > { %9418 = vst [vmem:[#allocation22_spill] sm:$0xff] %v7510_v22  ;;  %v7512_v57 = vpop.f32.mrb[22].mxu1 }
 0x60b   : > { %9419 = vst [vmem:[#allocation23_spill] sm:$0xff] %v7512_v57  ;;  %v7514_v7 = vpop.f32.mrb[23].mxu1 }
 0x60c   : > { %9420 = vst [vmem:[#allocation24_spill] sm:$0xff] %v7514_v7  ;;  %v7771_v7 = vld [vmem:[#allocation2 + $0x48] sm:$0xff] }
 0x610   : > { %v5644_v16 = vpop.f32.mrb[24].mxu1 }
 0x611   : > { %v1892_v28 = vadd.f32 %v5644_v16, %v7250_v52  ;;  %v1883_v46 = vpop.f32.mrb[25].mxu1 }
 0x612   : > { %v5645_v55 = vpop.f32.mrb[26].mxu1  ;;  %v1884_v8 = vadd.f32 %v1883_v46, %v7252_v2 }
 0x613   : > { %v1886_v58 = vpop.f32.mrb[27].mxu1  ;;  %v1936_v21 = vsel %vm1539_vm14, %v1892_v28, -inf  ;;  %v1895_v6 = vadd.f32 %v5645_v55, %v7254_v17 }
 0x614   : > { %v1887_v38 = vadd.f32 %v1886_v58, %v7259_v20  ;;  %1937 = vmax.xlane.f32.xlu0 %v1936_v21  ;;  %v1930_v19 = vsel %vm1539_vm14, %v1884_v8, -inf }
 0x615   : > { %v1939_v4 = vsel %vm1539_vm14, %v1895_v6, -inf }
 0x616   : > { %v1933_v29 = vsel %vm1539_vm14, %v1887_v38, -inf }
 0x617   : > { %1934 = vmax.xlane.f32.xlu1 %v1933_v29 }
 0x618   : > { %1931 = vmax.xlane.f32.xlu0 %v1930_v19  ;;  %v5648_v32 = vpop.f32.mrb[28].mxu1 }
 0x619   : > { %v1899_v52 = vpop.f32.mrb[29].mxu1 }
 0x61a   : > { %v5649_v51 = vpop.f32.mrb[30].mxu1 }
 0x61b   : > { %v7524_v9 = vadd.f32 %v5649_v51, %v7280_v37  ;;  %v1902_v2 = vpop.f32.mrb[31].mxu1 }
 0x61c   : > { %1940 = vmax.xlane.f32.xlu0 %v1939_v4  ;;  %v7528_v20 = vadd.f32 %v1902_v2, %v7287_v41 }
 0x61d   : > { %v1951_v17 = vsel %vm1539_vm14, %v7524_v9, -inf }
 0x61e   : > { %1952 = vmax.xlane.f32.xlu1 %v1951_v17  ;;  %v1945_v26 = vsel %vm1539_vm14, %v7528_v20, -inf }
 0x620   : > { %v5652_v48 = vpop.f32.mrb[32].mxu1 }
 0x621   : > { %v1915_v11 = vpop.f32.mrb[33].mxu1  ;;  %v7552_v21 = vadd.f32 %v5652_v48, %v7302_v56 }
 0x622   : > { %1946 = vmax.xlane.f32.xlu1 %v1945_v26  ;;  %v5653_v44 = vpop.f32.mrb[34].mxu1  ;;  %v7556_v19 = vadd.f32 %v1915_v11, %v7311_v59 }
 0x623   : > { %v7535_v37 = vadd.f32 %v5653_v44, %v7306_v60  ;;  %v1918_v16 = vpop.f32.mrb[35].mxu1  ;;  %v1908_v60 = vadd.f32 %v5648_v32, %v7274_v30  ;;  %v1960_v51 = vsel %vm1539_vm14, %v7552_v21, -inf }
 0x624   : > { %v7538_v46 = vadd.f32 %v1918_v16, %v7315_v3  ;;  %v1900_v3 = vadd.f32 %v1899_v52, %v7285_v39  ;;  %v1954_v30 = vsel %vm1539_vm14, %v7556_v19, -inf  ;;  %v2085_v39 = vpop.permute.xlu1 %2084 }
 0x625   : > { %v1963_v41 = vsel %vm1539_vm14, %v7535_v37, -inf  ;;  %v1948_v58 = vsel %vm1539_vm14, %v1908_v60, -inf }
 0x626   : > { %1964 = vmax.xlane.f32.xlu1 %v1963_v41  ;;  %v1957_v55 = vsel %vm1539_vm14, %v7538_v46, -inf  ;;  %v1942_v29 = vsel %vm1539_vm14, %v1900_v3, -inf }
 0x62a   : > { %1958 = vmax.xlane.f32.xlu1 %v1957_v55 }
 0x632   : > { %2082 = vrot.lane.b32.xlu0 %v7350_v61, %s6559_s3 }
 0x63b   : > { %2205 = vrot.lane.b32.xlu1 %v7170_v14, %s6560_s20 }
 0x651   : > { %1949 = vmax.xlane.f32.xlu0 %v1948_v58 }
 0x655   : > { %1943 = vmax.xlane.f32.xlu0 %v1942_v29 }
 0x659   : > { %1961 = vmax.xlane.f32.xlu0 %v1960_v51 }
 0x65d   : > { %1955 = vmax.xlane.f32.xlu0 %v1954_v30 }
 0x673   : > { %2203 = vrot.lane.b32.xlu0 %v7156_v5, %s6560_s20 }
 0x6a1   : > { %v1938_v56 = vpop.xlane.xlu0 %1937 }
 0x6a2   : > { %v1968_v32 = vsub.f32 %v1892_v28, %v1938_v56 }
 0x6a4   : > { %v1982_v52 = vmul.f32 1.442695, %v1968_v32  ;;  %v1935_v2 = vpop.xlane.xlu1 %1934 }
 0x6a5   : > { %v1932_v4 = vpop.xlane.xlu0 %1931  ;;  %v1967_v17 = vsub.f32 %v1887_v38, %v1935_v2 }
 0x6a6   : > { %6175 = vpow2.f32 %v1982_v52  ;;  %v1966_v59 = vsub.f32 %v1884_v8, %v1932_v4 }
 0x6a7   : > { %v1980_v44 = vmul.f32 1.442695, %v1967_v17 }
 0x6a8   : > { %v1978_v48 = vmul.f32 1.442695, %v1966_v59 }
 0x6a9   : > { %v1941_v11 = vpop.xlane.xlu0 %1940 }
 0x6aa   : > { %6177 = vpow2.f32 %v1978_v48  ;;  %v1969_v26 = vsub.f32 %v1895_v6, %v1941_v11 }
 0x6ab   : > { %v1953_v30 = vpop.xlane.xlu1 %1952 }
 0x6ac   : > { %v1984_v16 = vmul.f32 1.442695, %v1969_v26 }
 0x6ad   : > { %v2083_v41 = vpop.permute.xlu0 %2082 }
 0x6ae   : > { %6179 = vpow2.f32 %v1984_v16  ;;  %5662 = vmatprep.subr.bf16.mxu0 %v2083_v41 }
 0x6af   : > { %5663 = vmatpush3.bf16.msra.mxu0 %v2083_v41  ;;  %6181 = vpow2.f32 %v1980_v44  ;;  %v1947_v56 = vpop.xlane.xlu1 %1946 }
 0x6b0   : > { %v7564_v55 = vpop.eup %6175  ;;  %5664 = vmatprep.subr.bf16.mxu0 %v2085_v39  ;;  %v1971_v4 = vsub.f32 %v7528_v20, %v1947_v56 }
 0x6b1   : > { %v2008_v28 = vsel %vm1539_vm14, %v7564_v55, 0.0 }
 0x6b2   : > { %2009 = vadd.xlane.f32.xlu1 %v2008_v28  ;;  %v1988_v11 = vmul.f32 1.442695, %v1971_v4 }
 0x6b3   : > { %5665 = vmatpush3.bf16.msra.mxu0 %v2085_v39  ;;  %v1973_v39 = vsub.f32 %v7524_v9, %v1953_v30  ;;  %v1965_v41 = vpop.xlane.xlu1 %1964 }
 0x6b4   : > { %v7568_v8 = vpop.eup %6177  ;;  %v1977_v20 = vsub.f32 %v7535_v37, %v1965_v41 }
 0x6b5   : > { %v2002_v38 = vsel %vm1539_vm14, %v7568_v8, 0.0  ;;  %v1992_v2 = vmul.f32 1.442695, %v1973_v39 }
 0x6b6   : > { %2003 = vadd.xlane.f32.xlu0 %v2002_v38 }
 0x6b8   : > { %v7572_v6 = vpop.eup %6179 }
 0x6b9   : > { %v2011_v58 = vsel %vm1539_vm14, %v7572_v6, 0.0  ;;  %v7576_v29 = vpop.eup %6181 }
 0x6ba   : > { %2012 = vadd.xlane.f32.xlu1 %v2011_v58  ;;  %v2005_v51 = vsel %vm1539_vm14, %v7576_v29, 0.0 }
 0x6be   : > { %2006 = vadd.xlane.f32.xlu1 %v2005_v51 }
 0x6cf   : > { %2207 = vrot.lane.b32.xlu1 %v7182_v24, %s6560_s20 }
 0x6de   : > { %v1950_v32 = vpop.xlane.xlu0 %1949 }
 0x6df   : > { %v1972_v52 = vsub.f32 %v1908_v60, %v1950_v32 }
 0x6e1   : > { %v1990_v59 = vmul.f32 1.442695, %v1972_v52 }
 0x6e2   : > { %v1944_v17 = vpop.xlane.xlu0 %1943 }
 0x6e3   : > { %6183 = vpow2.f32 %v1990_v59  ;;  %v1970_v48 = vsub.f32 %v1900_v3, %v1944_v17  ;;  %v1959_v3 = vpop.xlane.xlu1 %1958 }
 0x6e4   : > { %6185 = vpow2.f32 %v1992_v2  ;;  %v1975_v56 = vsub.f32 %v7538_v46, %v1959_v3 }
 0x6e5   : > { %v1986_v26 = vmul.f32 1.442695, %v1970_v48 }
 0x6e6   : > { %v1962_v44 = vpop.xlane.xlu0 %1961  ;;  %v1996_v2 = vmul.f32 1.442695, %v1975_v56 }
 0x6e7   : > { %6187 = vpow2.f32 %v1986_v26  ;;  %v1976_v16 = vsub.f32 %v7552_v21, %v1962_v44  ;;  %v2206_v41 = vpop.permute.xlu1 %2205 }
 0x6e8   : > { %6189 = vpow2.f32 %v1988_v11 }
 0x6e9   : > { %v1998_v9 = vmul.f32 1.442695, %v1976_v16 }
 0x6ea   : > { %v1956_v28 = vpop.xlane.xlu0 %1955 }
 0x6eb   : > { %v1974_v60 = vsub.f32 %v7556_v19, %v1956_v28  ;;  %6191 = vpow2.f32 %v1998_v9  ;;  %v2000_v19 = vmul.f32 1.442695, %v1977_v20 }
 0x6ed   : > { %v7586_v38 = vpop.eup %6183  ;;  %v1994_v58 = vmul.f32 1.442695, %v1974_v60 }
 0x6ee   : > { %v7589_v51 = vpop.permute.xlu0 %2203  ;;  %v2020_v30 = vsel %vm1539_vm14, %v7586_v38, 0.0  ;;  %v7593_v39 = vpop.eup %6185 }
 0x6ef   : > { %2021 = vadd.xlane.f32.xlu0 %v2020_v30  ;;  %5830 = vmatprep.subr.msk.bf16.mxu0 %vm1421_vm13, %v7589_v51  ;;  %6193 = vpow2.f32 %v1994_v58  ;;  %v2023_v37 = vsel %vm1539_vm14, %v7593_v39, 0.0 }
 0x6f0   : > { %6195 = vpow2.f32 %v2000_v19 }
 0x6f1   : > { %v7597_v21 = vpop.eup %6187  ;;  %6197 = vpow2.f32 %v1996_v2 }
 0x6f2   : > { %v2014_v32 = vsel %vm1539_vm14, %v7597_v21, 0.0  ;;  %v7604_v52 = vpop.eup %6189 }
 0x6f3   : > { %2024 = vadd.xlane.f32.xlu0 %v2023_v37  ;;  %2015 = vadd.xlane.f32.xlu1 %v2014_v32  ;;  %v2017_v4 = vsel %vm1539_vm14, %v7604_v52, 0.0 }
 0x6f5   : > { %v7608_v59 = vpop.eup %6191 }
 0x6f6   : > { %v2032_v46 = vsel %vm1539_vm14, %v7608_v59, 0.0 }
 0x6f7   : > { %2018 = vadd.xlane.f32.xlu0 %v2017_v4 }
 0x6f9   : > { %v7612_v17 = vpop.eup %6193 }
 0x6fa   : > { %v2026_v48 = vsel %vm1539_vm14, %v7612_v17, 0.0  ;;  %v7616_v11 = vpop.eup %6195 }
 0x6fb   : > { %2033 = vadd.xlane.f32.xlu0 %v2032_v46  ;;  %v2035_v26 = vsel %vm1539_vm14, %v7616_v11, 0.0  ;;  %v7620_v44 = vpop.eup %6197 }
 0x6fc   : > { %v2029_v16 = vsel %vm1539_vm14, %v7620_v44, 0.0 }
 0x6ff   : > { %2027 = vadd.xlane.f32.xlu0 %v2026_v48  ;;  %v2234_v48 = vsel %vm1421_vm13, %v7589_v51, 0 }
 0x703   : > { %2036 = vadd.xlane.f32.xlu0 %v2035_v26 }
 0x704   : > { %2211 = vrot.lane.b32.xlu1 %v7206_v43, %s6560_s20 }
 0x707   : > { %2030 = vadd.xlane.f32.xlu0 %v2029_v16 }
 0x708   : > { %2213 = vrot.lane.b32.xlu1 %v7218_v0, %s6560_s20 }
 0x70c   : > { %2191 = vrot.lane.b32.xlu1 %v7154_v1, %s6560_s20 }
 0x710   : > { %2193 = vrot.lane.b32.xlu1 %v7168_v13, %s6560_s20 }
 0x714   : > { %2195 = vrot.lane.b32.xlu1 %v7180_v23, %s6560_s20 }
 0x718   : > { %2197 = vrot.lane.b32.xlu1 %v7192_v36, %s6560_s20 }
 0x71c   : > { %2201 = vrot.lane.b32.xlu1 %v7216_v63, %s6560_s20 }
 0x71d   : > { %2209 = vrot.lane.b32.xlu0 %v7194_v35, %s6560_s20 }
 0x720   : > { %2472 = vrot.lane.b32.xlu1 %v7242_v15, %s6560_s20 }
 0x721   : > { %2199 = vrot.lane.b32.xlu0 %v7204_v47, %s6560_s20 }
 0x724   : > { %2476 = vrot.lane.b32.xlu1 %v7340_v45, %s6560_s20 }
 0x725   : > { %2470 = vrot.lane.b32.xlu0 %v7244_v27, %s6560_s20 }
 0x728   : > { %2480 = vrot.lane.b32.xlu1 %v7352_v12, %s6560_s20 }
 0x729   : > { %2474 = vrot.lane.b32.xlu0 %v7338_v40, %s6560_s20 }
 0x73f   : > { %v2010_v9 = vpop.xlane.xlu1 %2009 }
 0x743   : > { %v2004_v28 = vpop.xlane.xlu0 %2003 }
 0x747   : > { %v2013_v60 = vpop.xlane.xlu1 %2012 }
 0x748   : > { %6199 = vrcp.f32 %v2013_v60 }
 0x749   : > { %6201 = vrcp.f32 %v2004_v28 }
 0x74a   : > { %6203 = vrcp.f32 %v2010_v9 }
 0x74b   : > { %v2007_v20 = vpop.xlane.xlu1 %2006 }
 0x74c   : > { %6205 = vrcp.f32 %v2007_v20 }
 0x74f   : > { %v2208_v26 = vpop.permute.xlu1 %2207 }
 0x752   : > { %v6200_v58 = vpop.eup %6199 }
 0x753   : > { %v6202_v3 = vpop.eup %6201  ;;  %v2053_v56 = vmul.f32 %v6200_v58, %v7572_v6  ;;  %v2237_v6 = vsel %vm1421_vm13, %v2206_v41, 0 }
 0x754   : > { %v6204_v30 = vpop.eup %6203  ;;  %v2050_v37 = vmul.f32 %v6202_v3, %v7568_v8 }
 0x755   : > { %v2052_v2 = vmul.f32 %v6204_v30, %v7564_v55  ;;  %v2240_v55 = vsel %vm1421_vm13, %v2208_v26, 0 }
 0x756   : > { %v6206_v19 = vpop.eup %6205 }
 0x757   : > { %v2051_v32 = vmul.f32 %v6206_v19, %v7576_v29  ;;  %v2063_v46 = vpack.c.bf16 %v2053_v56, %v2052_v2 }
 0x759   : > { %v2062_v4 = vpack.c.bf16 %v2051_v32, %v2050_v37 }
 0x75b   : > { %5666 = vmatprep.mubr.msk.bf16.mxu0 %vm1539_vm14, %v2062_v4 }
 0x75c   : > { %5667 = vmatmul.mubr.msk.bf16.vlgmr.msra.gmra.mrb[36].mxu0 %vm1539_vm14, %v2063_v46 }
 0x75d   : > { %5679 = vmatpush3.bf16.xpose.msra.mxu0 %v2234_v48 }
 0x75e   : > { %5831 = vmatprep.subr.msk.bf16.mxu0 %vm1421_vm13, %v2206_v41 }
 0x765   : > { %5681 = vmatpush3.bf16.xpose.msra.mxu0 %v2237_v6 }
 0x766   : > { %5832 = vmatprep.subr.msk.bf16.mxu0 %vm1421_vm13, %v2208_v26 }
 0x76d   : > { %5683 = vmatpush3.bf16.xpose.msra.mxu0 %v2240_v55 }
 0x77c   : > { %v2022_v8 = vpop.xlane.xlu0 %2021 }
 0x780   : > { %v2016_v29 = vpop.xlane.xlu1 %2015  ;;  %v2025_v16 = vpop.xlane.xlu0 %2024 }
 0x781   : > { %6207 = vrcp.f32 %v2025_v16 }
 0x782   : > { %6209 = vrcp.f32 %v2016_v29 }
 0x783   : > { %6211 = vrcp.f32 %v2022_v8 }
 0x784   : > { %v2212_v9 = vpop.permute.xlu1 %2211  ;;  %v2019_v51 = vpop.xlane.xlu0 %2018 }
 0x785   : > { %6213 = vrcp.f32 %v2019_v51 }
 0x788   : > { %v2214_v28 = vpop.permute.xlu1 %2213  ;;  %v2034_v60 = vpop.xlane.xlu0 %2033 }
 0x78b   : > { %v6208_v20 = vpop.eup %6207 }
 0x78c   : > { %v2192_v41 = vpop.permute.xlu1 %2191  ;;  %v2028_v58 = vpop.xlane.xlu0 %2027  ;;  %v2057_v56 = vmul.f32 %v6208_v20, %v7593_v39 }
 0x78d   : > { %v6210_v3 = vpop.eup %6209 }
 0x78e   : > { %v6212_v30 = vpop.eup %6211  ;;  %v2054_v2 = vmul.f32 %v6210_v3, %v7597_v21 }
 0x78f   : > { %v6214_v19 = vpop.eup %6213  ;;  %v2056_v46 = vmul.f32 %v6212_v30, %v7586_v38 }
 0x790   : > { %v2194_v37 = vpop.permute.xlu1 %2193  ;;  %v2037_v32 = vpop.xlane.xlu0 %2036  ;;  %v2055_v4 = vmul.f32 %v6214_v19, %v7604_v52  ;;  %v2246_v19 = vsel %vm1421_vm13, %v2212_v9, 0 }
 0x791   : > { %6215 = vrcp.f32 %v2037_v32  ;;  %v2065_v6 = vpack.c.bf16 %v2057_v56, %v2056_v46 }
 0x792   : > { %v2064_v48 = vpack.c.bf16 %v2055_v4, %v2054_v2  ;;  %6217 = vrcp.f32 %v2028_v58 }
 0x793   : > { %6219 = vrcp.f32 %v2034_v60 }
 0x794   : > { %v2196_v26 = vpop.permute.xlu1 %2195  ;;  %5670 = vmatprep.mubr.msk.bf16.mxu0 %vm1539_vm14, %v2064_v48  ;;  %v2031_v55 = vpop.xlane.xlu0 %2030 }
 0x795   : > { %6221 = vrcp.f32 %v2031_v55  ;;  %5671 = vmatmul.mubr.msk.bf16.gmra.mrb[40].mxu0 %vm1539_vm14, %v2065_v6  ;;  %v7750_v55 = vld [vmem:[#allocation2 + $0x38] sm:$0xff] }
 0x798   : > { %v2198_v39 = vpop.permute.xlu1 %2197  ;;  %v2210_v8 = vpop.permute.xlu0 %2209 }
 0x799   : > { %5833 = vmatprep.subr.msk.bf16.mxu0 %vm1421_vm13, %v2210_v8  ;;  %v2243_v21 = vsel %vm1421_vm13, %v2210_v8, 0 }
 0x79a   : > { %5685 = vmatpush3.bf16.xpose.msra.mxu0 %v2243_v21 }
 0x79b   : > { %5834 = vmatprep.subr.msk.bf16.mxu0 %vm1421_vm13, %v2212_v9  ;;  %v6216_v38 = vpop.eup %6215 }
 0x79c   : > { %v2202_v52 = vpop.permute.xlu1 %2201  ;;  %v2200_v29 = vpop.permute.xlu0 %2199  ;;  %v2061_v20 = vmul.f32 %v6216_v38, %v7616_v11  ;;  %v2249_v11 = vsel %vm1421_vm13, %v2214_v28, 0 }
 0x79d   : > { %v6218_v16 = vpop.eup %6217 }
 0x79e   : > { %v6220_v51 = vpop.eup %6219  ;;  %v2058_v3 = vmul.f32 %v6218_v16, %v7612_v17 }
 0x79f   : > { %v6222_v60 = vpop.eup %6221  ;;  %v2060_v56 = vmul.f32 %v6220_v51, %v7608_v59 }
 0x7a0   : > { %v2471_v58 = vpop.permute.xlu0 %2470  ;;  %v2059_v30 = vmul.f32 %v6222_v60, %v7620_v44  ;;  %v2473_v32 = vpop.permute.xlu1 %2472 }
 0x7a1   : > { %5702 = vmatprep.subr.bf16.mxu1 %v2471_v58  ;;  %v2067_v4 = vpack.c.bf16 %v2061_v20, %v2060_v56  ;;  %v7724_v20 = vld [vmem:[#allocation2 + $0x10] sm:$0xff] }
 0x7a2   : > { %5687 = vmatpush3.bf16.xpose.msra.mxu0 %v2246_v19  ;;  %5703 = vmatpush3.bf16.msra.mxu1 %v2471_v58  ;;  %v2066_v2 = vpack.c.bf16 %v2059_v30, %v2058_v3  ;;  %v7729_v19 = vld [vmem:[#allocation2] sm:$0xff] }
 0x7a3   : > { %5835 = vmatprep.subr.msk.bf16.mxu0 %vm1421_vm13, %v2214_v28  ;;  %5704 = vmatprep.subr.bf16.mxu1 %v2473_v32 }
 0x7a4   : > { %5674 = vmatprep.mubr.msk.bf16.mxu0 %vm1539_vm14, %v2066_v2  ;;  %v2475_v17 = vpop.permute.xlu0 %2474  ;;  %v2477_v59 = vpop.permute.xlu1 %2476 }
 0x7a5   : > { %5675 = vmatmul.mubr.msk.bf16.gmra.mrb[44].mxu0 %vm1539_vm14, %v2067_v4  ;;  %v7736_v4 = vld [vmem:[#allocation2 + $0x8] sm:$0xff] }
 0x7a6   : > { %5690 = vmatprep.mubr.msk.bf16.mxu0 %vm1421_vm13, %v2192_v41  ;;  %5705 = vmatpush3.bf16.msra.mxu1 %v2473_v32 }
 0x7a7   : > { %5706 = vmatprep.subr.bf16.mxu1 %v2475_v17 }
 0x7aa   : > { %5689 = vmatpush3.bf16.xpose.msra.mxu0 %v2249_v11  ;;  %5707 = vmatpush3.bf16.msra.mxu1 %v2475_v17 }
 0x7ab   : > { %5708 = vmatprep.subr.bf16.mxu1 %v2477_v59 }
 0x7ae   : > { %5709 = vmatpush3.bf16.msra.mxu1 %v2477_v59  ;;  %v7743_v59 = vld [vmem:[#allocation2 + $0x18] sm:$0xff] }
 0x7b1   : > { %5691 = vmatmul.mubr.msk.bf16.vlgmr.msra.gmra.mrb[48].mxu0 %vm1421_vm13, %v2194_v37 }
 0x7b2   : > { %5694 = vmatprep.mubr.msk.bf16.mxu0 %vm1421_vm13, %v2196_v26 }
 0x7b9   : > { %5695 = vmatmul.mubr.msk.bf16.gmra.mrb[52].mxu0 %vm1421_vm13, %v2198_v39 }
 0x7ba   : > { %5698 = vmatprep.mubr.msk.bf16.mxu0 %vm1421_vm13, %v2200_v29 }
 0x7c1   : > { %5699 = vmatmul.mubr.msk.bf16.gmra.mrb[56].mxu0 %vm1421_vm13, %v2202_v52 }
 0x82f   : > { %v7688_v44 = vpop.f32.mrb[36].mxu0 }
 0x830   : > { %v7690_v9 = vpop.f32.mrb[37].mxu0 }
 0x831   : > { %v7692_v28 = vpop.f32.mrb[38].mxu0 }
 0x832   : > { %v7696_v46 = vpop.f32.mrb[39].mxu0 }
 0x868   : > { %v7700_v48 = vpop.f32.mrb[40].mxu0 }
 0x869   : > { %v7702_v6 = vpop.f32.mrb[41].mxu0 }
 0x86a   : > { %v7704_v26 = vpop.f32.mrb[42].mxu0 }
 0x86b   : > { %v7708_v39 = vpop.f32.mrb[43].mxu0 }
 0x878   : > { %v7712_v21 = vpop.f32.mrb[44].mxu0 }
 0x879   : > { %v7714_v38 = vpop.f32.mrb[45].mxu0 }
 0x87a   : > { %9421 = vst [vmem:[#allocation25_spill] sm:$0xff] %v7714_v38  ;;  %v7716_v52 = vpop.f32.mrb[46].mxu0 }
 0x87b   : > { %v7720_v16 = vpop.f32.mrb[47].mxu0 }
 0x87c   : > { %9422 = vst [vmem:[#allocation26_spill] sm:$0xff] %v7720_v16 }
 0x884   : > { %v5692_v60 = vpop.f32.mrb[48].mxu0 }
 0x885   : > { %v7727_v58 = vadd.f32 %v7724_v20, %v5692_v60  ;;  %v2285_v3 = vpop.f32.mrb[49].mxu0 }
 0x886   : > { %v5693_v30 = vpop.f32.mrb[50].mxu0  ;;  %v7732_v56 = vadd.f32 %v7729_v19, %v2285_v3 }
 0x887   : > { %v2288_v32 = vpop.f32.mrb[51].mxu0  ;;  %v2338_v2 = vsel %vm1539_vm14, %v7727_v58, -inf  ;;  %v7746_v60 = vadd.f32 %v7743_v59, %v5693_v30  ;;  %v7757_v30 = vld [vmem:[#allocation2 + $0x28] sm:$0xff] }
 0x888   : > { %v7739_v17 = vadd.f32 %v7736_v4, %v2288_v32  ;;  %2339 = vmax.xlane.f32.xlu0 %v2338_v2  ;;  %v2332_v3 = vsel %vm1539_vm14, %v7732_v56, -inf }
 0x889   : > { %v2341_v37 = vsel %vm1539_vm14, %v7746_v60, -inf }
 0x88a   : > { %v2335_v11 = vsel %vm1539_vm14, %v7739_v17, -inf }
 0x88b   : > { %2336 = vmax.xlane.f32.xlu1 %v2335_v11 }
 0x88c   : > { %v5696_v51 = vpop.f32.mrb[52].mxu0  ;;  %2333 = vmax.xlane.f32.xlu0 %v2332_v3 }
 0x88d   : > { %v2301_v29 = vpop.f32.mrb[53].mxu0 }
 0x88e   : > { %v5697_v8 = vpop.f32.mrb[54].mxu0 }
 0x88f   : > { %v7753_v32 = vadd.f32 %v7750_v55, %v5697_v8  ;;  %v2304_v2 = vpop.f32.mrb[55].mxu0 }
 0x890   : > { %2342 = vmax.xlane.f32.xlu0 %v2341_v37  ;;  %v7760_v11 = vadd.f32 %v7757_v30, %v2304_v2 }
 0x891   : > { %v2353_v3 = vsel %vm1539_vm14, %v7753_v32, -inf }
 0x892   : > { %2354 = vmax.xlane.f32.xlu1 %v2353_v3  ;;  %v2347_v8 = vsel %vm1539_vm14, %v7760_v11, -inf }
 0x894   : > { %v5700_v41 = vpop.f32.mrb[56].mxu0 }
 0x895   : > { %v2317_v10 = vpop.f32.mrb[57].mxu0 }
 0x896   : > { %2348 = vmax.xlane.f32.xlu1 %v2347_v8  ;;  %v5701_v54 = vpop.f32.mrb[58].mxu0  ;;  %v7787_v8 = vld [vmem:[#allocation2 + $0x20] sm:$0xff] }
 0x897   : > { %v7769_v37 = vadd.f32 %v7766_v53, %v5701_v54  ;;  %v2320_v22 = vpop.f32.mrb[59].mxu0  ;;  %v7784_v54 = vld [vmem:[#allocation2 + $0x30] sm:$0xff]  ;;  %v2302_v57 = vadd.f32 %v7787_v8, %v2301_v29 }
 0x898   : > { %v7774_v2 = vadd.f32 %v7771_v7, %v2320_v22  ;;  %v2310_v22 = vadd.f32 %v7784_v54, %v5696_v51 }
 0x899   : > { %v2365_v3 = vsel %vm1539_vm14, %v7769_v37, -inf  ;;  %v2344_v33 = vsel %vm1539_vm14, %v2302_v57, -inf }
 0x89a   : > { %2366 = vmax.xlane.f32.xlu1 %v2365_v3  ;;  %v2359_v18 = vsel %vm1539_vm14, %v7774_v2, -inf  ;;  %v2350_v3 = vsel %vm1539_vm14, %v2310_v22, -inf }
 0x89e   : > { %2360 = vmax.xlane.f32.xlu1 %v2359_v18  ;;  %v7794_v18 = vadd.f32 %v7791_v25, %v5700_v41  ;;  %v2481_v41 = vpop.permute.xlu1 %2480 }
 0x8a0   : > { %v2362_v51 = vsel %vm1539_vm14, %v7794_v18, -inf }
 0x8a6   : > { %2478 = vrot.lane.b32.xlu0 %v7350_v61, %s6560_s20 }
 0x8af   : > { %2601 = vrot.lane.b32.xlu1 %v7170_v14, %s6561_s17  ;;  %v7797_v14 = vld [vmem:[#allocation2 + $0x40] sm:$0xff] }
 0x8b0   : > { %v7800_v31 = vadd.f32 %v7797_v14, %v2317_v10 }
 0x8b2   : > { %v2356_v29 = vsel %vm1539_vm14, %v7800_v31, -inf }
 0x8c5   : > { %2351 = vmax.xlane.f32.xlu0 %v2350_v3 }
 0x8c9   : > { %2345 = vmax.xlane.f32.xlu0 %v2344_v33 }
 0x8cd   : > { %2363 = vmax.xlane.f32.xlu0 %v2362_v51 }
 0x8d1   : > { %2357 = vmax.xlane.f32.xlu0 %v2356_v29 }
 0x8e7   : > { %2599 = vrot.lane.b32.xlu0 %v7156_v5, %s6561_s17 }
 0x915   : > { %v2340_v3 = vpop.xlane.xlu0 %2339 }
 0x916   : > { %v2370_v33 = vsub.f32 %v7727_v58, %v2340_v3 }
 0x918   : > { %v2384_v62 = vmul.f32 1.442695, %v2370_v33  ;;  %v2337_v34 = vpop.xlane.xlu1 %2336 }
 0x919   : > { %v2334_v50 = vpop.xlane.xlu0 %2333  ;;  %v2369_v49 = vsub.f32 %v7739_v17, %v2337_v34 }
 0x91a   : > { %6223 = vpow2.f32 %v2384_v62  ;;  %v2368_v10 = vsub.f32 %v7732_v56, %v2334_v50 }
 0x91b   : > { %v2382_v38 = vmul.f32 1.442695, %v2369_v49 }
 0x91c   : > { %v2380_v51 = vmul.f32 1.442695, %v2368_v10 }
 0x91d   : > { %v2343_v42 = vpop.xlane.xlu0 %2342 }
 0x91e   : > { %6225 = vpow2.f32 %v2380_v51  ;;  %v2371_v29 = vsub.f32 %v7746_v60, %v2343_v42 }
 0x91f   : > { %v2355_v56 = vpop.xlane.xlu1 %2354 }
 0x920   : > { %v2386_v16 = vmul.f32 1.442695, %v2371_v29  ;;  %v2375_v17 = vsub.f32 %v7753_v32, %v2355_v56 }
 0x921   : > { %v2479_v5 = vpop.permute.xlu0 %2478 }
 0x922   : > { %6227 = vpow2.f32 %v2386_v16  ;;  %5710 = vmatprep.subr.bf16.mxu1 %v2479_v5  ;;  %v2394_v33 = vmul.f32 1.442695, %v2375_v17 }
 0x923   : > { %5711 = vmatpush3.bf16.msra.mxu1 %v2479_v5  ;;  %6229 = vpow2.f32 %v2382_v38  ;;  %v2349_v60 = vpop.xlane.xlu1 %2348 }
 0x924   : > { %v7812_v58 = vpop.eup %6223  ;;  %5712 = vmatprep.subr.bf16.mxu1 %v2481_v41  ;;  %v2373_v10 = vsub.f32 %v7760_v11, %v2349_v60 }
 0x925   : > { %v2410_v50 = vsel %vm1539_vm14, %v7812_v58, 0.0 }
 0x926   : > { %2411 = vadd.xlane.f32.xlu1 %v2410_v50  ;;  %v2390_v50 = vmul.f32 1.442695, %v2373_v10 }
 0x927   : > { %5713 = vmatpush3.bf16.msra.mxu1 %v2481_v41 }
 0x928   : > { %v7816_v34 = vpop.eup %6225 }
 0x929   : > { %v2404_v42 = vsel %vm1539_vm14, %v7816_v34, 0.0 }
 0x92a   : > { %2405 = vadd.xlane.f32.xlu0 %v2404_v42 }
 0x92c   : > { %v7820_v49 = vpop.eup %6227 }
 0x92d   : > { %v2413_v62 = vsel %vm1539_vm14, %v7820_v49, 0.0  ;;  %v7824_v16 = vpop.eup %6229 }
 0x92e   : > { %2414 = vadd.xlane.f32.xlu1 %v2413_v62  ;;  %v2407_v38 = vsel %vm1539_vm14, %v7824_v16, 0.0 }
 0x932   : > { %2408 = vadd.xlane.f32.xlu1 %v2407_v38  ;;  %v2367_v38 = vpop.xlane.xlu1 %2366 }
 0x933   : > { %v2379_v11 = vsub.f32 %v7769_v37, %v2367_v38 }
 0x935   : > { %v2402_v10 = vmul.f32 1.442695, %v2379_v11 }
 0x943   : > { %2603 = vrot.lane.b32.xlu1 %v7182_v24, %s6561_s17 }
 0x952   : > { %v2352_v41 = vpop.xlane.xlu0 %2351 }
 0x953   : > { %v2374_v3 = vsub.f32 %v2310_v22, %v2352_v41 }
 0x955   : > { %v2392_v51 = vmul.f32 1.442695, %v2374_v3 }
 0x956   : > { %v2346_v29 = vpop.xlane.xlu0 %2345 }
 0x957   : > { %6231 = vpow2.f32 %v2392_v51  ;;  %v2372_v5 = vsub.f32 %v2302_v57, %v2346_v29  ;;  %v2361_v57 = vpop.xlane.xlu1 %2360 }
 0x958   : > { %6233 = vpow2.f32 %v2394_v33 }
 0x959   : > { %v2388_v42 = vmul.f32 1.442695, %v2372_v5 }
 0x95a   : > { %v2364_v62 = vpop.xlane.xlu0 %2363 }
 0x95b   : > { %6235 = vpow2.f32 %v2388_v42  ;;  %v2378_v24 = vsub.f32 %v7794_v18, %v2364_v62 }
 0x95c   : > { %6237 = vpow2.f32 %v2390_v50 }
 0x95d   : > { %v2400_v32 = vmul.f32 1.442695, %v2378_v24 }
 0x95e   : > { %v2358_v56 = vpop.xlane.xlu0 %2357 }
 0x95f   : > { %v2376_v22 = vsub.f32 %v7800_v31, %v2358_v56  ;;  %6239 = vpow2.f32 %v2400_v32  ;;  %v2377_v31 = vsub.f32 %v7774_v2, %v2361_v57 }
 0x961   : > { %v7834_v17 = vpop.eup %6231  ;;  %v2396_v60 = vmul.f32 1.442695, %v2376_v22  ;;  %v2398_v5 = vmul.f32 1.442695, %v2377_v31 }
 0x962   : > { %v2600_v41 = vpop.permute.xlu0 %2599  ;;  %v2422_v3 = vsel %vm1539_vm14, %v7834_v17, 0.0  ;;  %v7839_v33 = vpop.eup %6233 }
 0x963   : > { %2423 = vadd.xlane.f32.xlu0 %v2422_v3  ;;  %5836 = vmatprep.subr.msk.bf16.mxu1 %vm1421_vm13, %v2600_v41  ;;  %6241 = vpow2.f32 %v2396_v60  ;;  %v2425_v37 = vsel %vm1539_vm14, %v7839_v33, 0.0 }
 0x964   : > { %6243 = vpow2.f32 %v2402_v10 }
 0x965   : > { %v7842_v18 = vpop.eup %6235  ;;  %6245 = vpow2.f32 %v2398_v5 }
 0x966   : > { %v2416_v51 = vsel %vm1539_vm14, %v7842_v18, 0.0  ;;  %v7849_v29 = vpop.eup %6237 }
 0x967   : > { %2426 = vadd.xlane.f32.xlu0 %v2425_v37  ;;  %2417 = vadd.xlane.f32.xlu1 %v2416_v51  ;;  %v2419_v50 = vsel %vm1539_vm14, %v7849_v29, 0.0  ;;  %v2630_v37 = vsel %vm1421_vm13, %v2600_v41, 0 }
 0x969   : > { %v7853_v42 = vpop.eup %6239 }
 0x96a   : > { %v2434_v2 = vsel %vm1539_vm14, %v7853_v42, 0.0 }
 0x96b   : > { %2420 = vadd.xlane.f32.xlu0 %v2419_v50 }
 0x96d   : > { %v7857_v62 = vpop.eup %6241 }
 0x96e   : > { %v2428_v24 = vsel %vm1539_vm14, %v7857_v62, 0.0  ;;  %v7861_v38 = vpop.eup %6243 }
 0x96f   : > { %2435 = vadd.xlane.f32.xlu0 %v2434_v2  ;;  %v2437_v32 = vsel %vm1539_vm14, %v7861_v38, 0.0  ;;  %v7865_v56 = vpop.eup %6245 }
 0x970   : > { %v2431_v22 = vsel %vm1539_vm14, %v7865_v56, 0.0 }
 0x973   : > { %2429 = vadd.xlane.f32.xlu0 %v2428_v24 }
 0x977   : > { %2438 = vadd.xlane.f32.xlu0 %v2437_v32 }
 0x978   : > { %2607 = vrot.lane.b32.xlu1 %v7206_v43, %s6561_s17  ;;  %v2602_v43 = vpop.permute.xlu1 %2601 }
 0x979   : > { %v2633_v51 = vsel %vm1421_vm13, %v2602_v43, 0 }
 0x97b   : > { %2432 = vadd.xlane.f32.xlu0 %v2431_v22 }
 0x97c   : > { %2609 = vrot.lane.b32.xlu1 %v7218_v0, %s6561_s17 }
 0x980   : > { %2587 = vrot.lane.b32.xlu1 %v7154_v1, %s6561_s17 }
 0x984   : > { %2589 = vrot.lane.b32.xlu1 %v7168_v13, %s6561_s17 }
 0x988   : > { %2591 = vrot.lane.b32.xlu1 %v7180_v23, %s6561_s17 }
 0x98c   : > { %2593 = vrot.lane.b32.xlu1 %v7192_v36, %s6561_s17 }
 0x990   : > { %2597 = vrot.lane.b32.xlu1 %v7216_v63, %s6561_s17 }
 0x991   : > { %2605 = vrot.lane.b32.xlu0 %v7194_v35, %s6561_s17 }
 0x995   : > { %2595 = vrot.lane.b32.xlu0 %v7204_v47, %s6561_s17 }
 0x9b3   : > { %v2412_v1 = vpop.xlane.xlu1 %2411 }
 0x9b7   : > { %v2406_v0 = vpop.xlane.xlu0 %2405 }
 0x9bb   : > { %v2415_v11 = vpop.xlane.xlu1 %2414 }
 0x9bc   : > { %6247 = vrcp.f32 %v2415_v11 }
 0x9bd   : > { %6249 = vrcp.f32 %v2406_v0 }
 0x9be   : > { %6251 = vrcp.f32 %v2412_v1 }
 0x9bf   : > { %v2409_v13 = vpop.xlane.xlu1 %2408 }
 0x9c0   : > { %6253 = vrcp.f32 %v2409_v13 }
 0x9c6   : > { %v6248_v23 = vpop.eup %6247 }
 0x9c7   : > { %v6250_v36 = vpop.eup %6249  ;;  %v2455_v63 = vmul.f32 %v6248_v23, %v7820_v49  ;;  %v2604_v49 = vpop.permute.xlu1 %2603 }
 0x9c8   : > { %v6252_v60 = vpop.eup %6251  ;;  %v2452_v35 = vmul.f32 %v6250_v36, %v7816_v34  ;;  %v2636_v34 = vsel %vm1421_vm13, %v2604_v49, 0 }
 0x9c9   : > { %v2454_v47 = vmul.f32 %v6252_v60, %v7812_v58 }
 0x9ca   : > { %v6254_v57 = vpop.eup %6253 }
 0x9cb   : > { %v2453_v3 = vmul.f32 %v6254_v57, %v7824_v16  ;;  %v2465_v31 = vpack.c.bf16 %v2455_v63, %v2454_v47 }
 0x9cd   : > { %v2464_v10 = vpack.c.bf16 %v2453_v3, %v2452_v35 }
 0x9cf   : > { %5714 = vmatprep.mubr.msk.bf16.mxu1 %vm1539_vm14, %v2464_v10 }
 0x9d0   : > { %5715 = vmatmul.mubr.msk.bf16.vlgmr.msra.gmra.mrb[36].mxu1 %vm1539_vm14, %v2465_v31 }
 0x9d1   : > { %5727 = vmatpush3.bf16.xpose.msra.mxu1 %v2630_v37 }
 0x9d2   : > { %5837 = vmatprep.subr.msk.bf16.mxu1 %vm1421_vm13, %v2602_v43 }
 0x9d9   : > { %5729 = vmatpush3.bf16.xpose.msra.mxu1 %v2633_v51 }
 0x9da   : > { %5838 = vmatprep.subr.msk.bf16.mxu1 %vm1421_vm13, %v2604_v49 }
 0x9e1   : > { %5731 = vmatpush3.bf16.xpose.msra.mxu1 %v2636_v34 }
 0x9f0   : > { %v2424_v58 = vpop.xlane.xlu0 %2423 }
 0x9f4   : > { %v2418_v16 = vpop.xlane.xlu1 %2417  ;;  %v2427_v5 = vpop.xlane.xlu0 %2426 }
 0x9f5   : > { %6255 = vrcp.f32 %v2427_v5 }
 0x9f6   : > { %6257 = vrcp.f32 %v2418_v16 }
 0x9f7   : > { %6259 = vrcp.f32 %v2424_v58 }
 0x9f8   : > { %v2421_v50 = vpop.xlane.xlu0 %2420 }
 0x9f9   : > { %6261 = vrcp.f32 %v2421_v50 }
 0x9fc   : > { %v2436_v41 = vpop.xlane.xlu0 %2435 }
 0x9ff   : > { %v6256_v2 = vpop.eup %6255 }
 0xa00   : > { %v2430_v24 = vpop.xlane.xlu0 %2429  ;;  %v6258_v32 = vpop.eup %6257  ;;  %v2459_v1 = vmul.f32 %v6256_v2, %v7839_v33 }
 0xa01   : > { %v6260_v22 = vpop.eup %6259  ;;  %v2456_v11 = vmul.f32 %v6258_v32, %v7842_v18  ;;  %v2608_v33 = vpop.permute.xlu1 %2607 }
 0xa02   : > { %v2458_v23 = vmul.f32 %v6260_v22, %v7834_v17  ;;  %v2642_v51 = vsel %vm1421_vm13, %v2608_v33, 0 }
 0xa03   : > { %v6262_v43 = vpop.eup %6261 }
 0xa04   : > { %v2439_v0 = vpop.xlane.xlu0 %2438  ;;  %v2457_v13 = vmul.f32 %v6262_v43, %v7849_v29  ;;  %v2467_v60 = vpack.c.bf16 %v2459_v1, %v2458_v23 }
 0xa05   : > { %6263 = vrcp.f32 %v2439_v0  ;;  %v2610_v47 = vpop.permute.xlu1 %2609 }
 0xa06   : > { %v2466_v36 = vpack.c.bf16 %v2457_v13, %v2456_v11  ;;  %6265 = vrcp.f32 %v2430_v24 }
 0xa07   : > { %6267 = vrcp.f32 %v2436_v41  ;;  %v9423_v41 = vmov 0  }
 0xa08   : > { %5718 = vmatprep.mubr.msk.bf16.mxu1 %vm1539_vm14, %v2466_v36  ;;  %v2433_v57 = vpop.xlane.xlu0 %2432 }
 0xa09   : > { %6269 = vrcp.f32 %v2433_v57  ;;  %5719 = vmatmul.mubr.msk.bf16.gmra.mrb[40].mxu1 %vm1539_vm14, %v2467_v60  ;;  %v2588_v16 = vpop.permute.xlu1 %2587 }
 0xa0c   : > { %v2606_v63 = vpop.permute.xlu0 %2605 }
 0xa0d   : > { %5839 = vmatprep.subr.msk.bf16.mxu1 %vm1421_vm13, %v2606_v63  ;;  %v2639_v18 = vsel %vm1421_vm13, %v2606_v63, 0 }
 0xa0e   : > { %5733 = vmatpush3.bf16.xpose.msra.mxu1 %v2639_v18 }
 0xa0f   : > { %5840 = vmatprep.subr.msk.bf16.mxu1 %vm1421_vm13, %v2608_v33  ;;  %v6264_v17 = vpop.eup %6263 }
 0xa10   : > { %v6266_v29 = vpop.eup %6265  ;;  %v2463_v10 = vmul.f32 %v6264_v17, %v7861_v38  ;;  %v2590_v38 = vpop.permute.xlu1 %2589 }
 0xa11   : > { %v6268_v35 = vpop.eup %6267  ;;  %v2460_v31 = vmul.f32 %v6266_v29, %v7857_v62  ;;  %v2645_v62 = vsel %vm1421_vm13, %v2610_v47, 0  ;;  %v2596_v5 = vpop.permute.xlu0 %2595 }
 0xa12   : > { %v2462_v49 = vmul.f32 %v6268_v35, %v7853_v42 }
 0xa13   : > { %v6270_v3 = vpop.eup %6269 }
 0xa14   : > { %v2461_v37 = vmul.f32 %v6270_v3, %v7865_v56  ;;  %v2469_v58 = vpack.c.bf16 %v2463_v10, %v2462_v49  ;;  %v2592_v56 = vpop.permute.xlu1 %2591 }
 0xa16   : > { %5735 = vmatpush3.bf16.xpose.msra.mxu1 %v2642_v51  ;;  %v2468_v34 = vpack.c.bf16 %v2461_v37, %v2460_v31 }
 0xa17   : > { %5841 = vmatprep.subr.msk.bf16.mxu1 %vm1421_vm13, %v2610_v47 }
 0xa18   : > { %5722 = vmatprep.mubr.msk.bf16.mxu1 %vm1539_vm14, %v2468_v34  ;;  %v2594_v42 = vpop.permute.xlu1 %2593 }
 0xa19   : > { %5723 = vmatmul.mubr.msk.bf16.gmra.mrb[44].mxu1 %vm1539_vm14, %v2469_v58 }
 0xa1a   : > { %5738 = vmatprep.mubr.msk.bf16.mxu1 %vm1421_vm13, %v2588_v16 }
 0xa1c   : > { %v2598_v50 = vpop.permute.xlu1 %2597 }
 0xa1e   : > { %5737 = vmatpush3.bf16.xpose.msra.mxu1 %v2645_v62 }
 0xa25   : > { %5739 = vmatmul.mubr.msk.bf16.vlgmr.msra.gmra.mrb[48].mxu1 %vm1421_vm13, %v2590_v38 }
 0xa26   : > { %5742 = vmatprep.mubr.msk.bf16.mxu1 %vm1421_vm13, %v2592_v56 }
 0xa2d   : > { %5743 = vmatmul.mubr.msk.bf16.gmra.mrb[52].mxu1 %vm1421_vm13, %v2594_v42 }
 0xa2e   : > { %5746 = vmatprep.mubr.msk.bf16.mxu1 %vm1421_vm13, %v2596_v5 }
 0xa35   : > { %5747 = vmatmul.mubr.msk.bf16.gmra.mrb[56].mxu1 %vm1421_vm13, %v2598_v50 }
 0xa36   : > { %3651 = vmatprep.mubr.bf16.mxu1 %v9423_v41 }
 0xaa3   : > { %v7923_v2 = vpop.f32.mrb[36].mxu1 }
 0xaa4   : > { %v7925_v24 = vpop.f32.mrb[37].mxu1 }
 0xaa5   : > { %v7927_v32 = vpop.f32.mrb[38].mxu1 }
 0xaa6   : > { %v5932_v22 = vpack.i.bf16 %v7927_v32, %v7923_v2  ;;  %v7931_v43 = vpop.f32.mrb[39].mxu1 }
 0xaa7   : > { %v5927_v1 = vpack.i.bf16 %v7931_v43, %v7925_v24 }
 0xadc   : > { %v7935_v0 = vpop.f32.mrb[40].mxu1 }
 0xadd   : > { %v7937_v11 = vpop.f32.mrb[41].mxu1 }
 0xade   : > { %v7939_v13 = vpop.f32.mrb[42].mxu1 }
 0xadf   : > { %v5962_v23 = vpack.i.bf16 %v7939_v13, %v7935_v0  ;;  %v7943_v36 = vpop.f32.mrb[43].mxu1 }
 0xae0   : > { %v5957_v60 = vpack.i.bf16 %v7943_v36, %v7937_v11 }
 0xaec   : > { %v7947_v57 = vpop.f32.mrb[44].mxu1 }
 0xaed   : > { %v7949_v63 = vpop.f32.mrb[45].mxu1 }
 0xaee   : > { %v7951_v33 = vpop.f32.mrb[46].mxu1 }
 0xaef   : > { %v5992_v18 = vpack.i.bf16 %v7951_v33, %v7947_v57  ;;  %v7955_v17 = vpop.f32.mrb[47].mxu1 }
 0xaf0   : > { %v5987_v29 = vpack.i.bf16 %v7955_v17, %v7949_v63 }
 0xaf8   : > { %v5740_v35 = vpop.f32.mrb[48].mxu1 }
 0xaf9   : > { %v2690_v3 = vadd.f32 %v7724_v20, %v5740_v35  ;;  %v2681_v47 = vpop.f32.mrb[49].mxu1 }
 0xafa   : > { %v5741_v10 = vpop.f32.mrb[50].mxu1  ;;  %v2682_v31 = vadd.f32 %v7729_v19, %v2681_v47 }
 0xafb   : > { %v2684_v37 = vpop.f32.mrb[51].mxu1  ;;  %v2734_v51 = vsel %vm1539_vm14, %v2690_v3, -inf  ;;  %v2693_v58 = vadd.f32 %v7743_v59, %v5741_v10 }
 0xafc   : > { %v2685_v49 = vadd.f32 %v7736_v4, %v2684_v37  ;;  %2735 = vmax.xlane.f32.xlu0 %v2734_v51  ;;  %v2728_v16 = vsel %vm1539_vm14, %v2682_v31, -inf }
 0xafd   : > { %v2737_v5 = vsel %vm1539_vm14, %v2693_v58, -inf }
 0xafe   : > { %v2731_v34 = vsel %vm1539_vm14, %v2685_v49, -inf }
 0xaff   : > { %2732 = vmax.xlane.f32.xlu1 %v2731_v34 }
 0xb00   : > { %v5744_v62 = vpop.f32.mrb[52].mxu1  ;;  %2729 = vmax.xlane.f32.xlu0 %v2728_v16 }
 0xb01   : > { %v2697_v20 = vpop.f32.mrb[53].mxu1  ;;  %v2706_v56 = vadd.f32 %v7784_v54, %v5744_v62 }
 0xb02   : > { %v5745_v38 = vpop.f32.mrb[54].mxu1  ;;  %v2698_v59 = vadd.f32 %v7787_v8, %v2697_v20 }
 0xb03   : > { %v2709_v19 = vadd.f32 %v7750_v55, %v5745_v38  ;;  %v2700_v42 = vpop.f32.mrb[55].mxu1  ;;  %v2746_v35 = vsel %vm1539_vm14, %v2706_v56, -inf }
 0xb04   : > { %2738 = vmax.xlane.f32.xlu0 %v2737_v5  ;;  %v2701_v4 = vadd.f32 %v7757_v30, %v2700_v42  ;;  %v2740_v30 = vsel %vm1539_vm14, %v2698_v59, -inf }
 0xb05   : > { %v2749_v50 = vsel %vm1539_vm14, %v2709_v19, -inf }
 0xb06   : > { %2750 = vmax.xlane.f32.xlu1 %v2749_v50  ;;  %v2743_v54 = vsel %vm1539_vm14, %v2701_v4, -inf }
 0xb08   : > { %2747 = vmax.xlane.f32.xlu0 %v2746_v35  ;;  %v5748_v47 = vpop.f32.mrb[56].mxu1 }
 0xb09   : > { %v2713_v10 = vpop.f32.mrb[57].mxu1  ;;  %v7975_v37 = vadd.f32 %v7791_v25, %v5748_v47 }
 0xb0a   : > { %2744 = vmax.xlane.f32.xlu1 %v2743_v54  ;;  %v5749_v55 = vpop.f32.mrb[58].mxu1  ;;  %v7979_v34 = vadd.f32 %v7797_v14, %v2713_v10 }
 0xb0b   : > { %v2716_v51 = vpop.f32.mrb[59].mxu1  ;;  %v2758_v8 = vsel %vm1539_vm14, %v7975_v37, -inf  ;;  %v7992_v25 = vadd.f32 %v7766_v53, %v5749_v55 }
 0xb0c   : > { %2741 = vmax.xlane.f32.xlu0 %v2740_v30  ;;  %v2752_v16 = vsel %vm1539_vm14, %v7979_v34, -inf  ;;  %v7995_v14 = vadd.f32 %v7771_v7, %v2716_v51 }
 0xb0d   : > { %v2761_v62 = vsel %vm1539_vm14, %v7992_v25, -inf }
 0xb0e   : > { %v2755_v20 = vsel %vm1539_vm14, %v7995_v14, -inf }
 0xb10   : > { %2759 = vmax.xlane.f32.xlu0 %v2758_v8 }
 0xb14   : > { %2753 = vmax.xlane.f32.xlu0 %v2752_v16 }
 0xb1b   : > { %2868 = vrot.lane.b32.xlu1 %v7242_v15, %s6561_s17 }
 0xb1f   : > { %2870 = vrot.lane.b32.xlu1 %v7338_v40, %s6561_s17 }
 0xb2a   : > { %2866 = vrot.lane.b32.xlu0 %v7244_v27, %s6561_s17 }
 0xb43   : > { %2762 = vmax.xlane.f32.xlu1 %v2761_v62 }
 0xb47   : > { %2756 = vmax.xlane.f32.xlu1 %v2755_v20 }
 0xb58   : > { %2872 = vrot.lane.b32.xlu1 %v7340_v45, %s6561_s17 }
 0xb89   : > { %v2736_v15 = vpop.xlane.xlu0 %2735 }
 0xb8a   : > { %v2766_v40 = vsub.f32 %v2690_v3, %v2736_v15 }
 0xb8c   : > { %v2780_v27 = vmul.f32 1.442695, %v2766_v40  ;;  %v2733_v38 = vpop.xlane.xlu1 %2732 }
 0xb8d   : > { %v2730_v53 = vpop.xlane.xlu0 %2729  ;;  %v2765_v7 = vsub.f32 %v2685_v49, %v2733_v38 }
 0xb8e   : > { %6271 = vpow2.f32 %v2780_v27  ;;  %v2764_v42 = vsub.f32 %v2682_v31, %v2730_v53 }
 0xb8f   : > { %v2778_v10 = vmul.f32 1.442695, %v2765_v7 }
 0xb90   : > { %v2776_v5 = vmul.f32 1.442695, %v2764_v42 }
 0xb91   : > { %v2739_v50 = vpop.xlane.xlu0 %2738 }
 0xb92   : > { %6273 = vpow2.f32 %v2776_v5  ;;  %v2767_v35 = vsub.f32 %v2693_v58, %v2739_v50 }
 0xb93   : > { %v2751_v47 = vpop.xlane.xlu1 %2750 }
 0xb94   : > { %v2782_v54 = vmul.f32 1.442695, %v2767_v35  ;;  %v2771_v55 = vsub.f32 %v2709_v19, %v2751_v47 }
 0xb95   : > { %v2748_v51 = vpop.xlane.xlu0 %2747 }
 0xb96   : > { %6275 = vpow2.f32 %v2782_v54  ;;  %v2770_v30 = vsub.f32 %v2706_v56, %v2748_v51  ;;  %v2790_v3 = vmul.f32 1.442695, %v2771_v55 }
 0xb97   : > { %v2745_v45 = vpop.xlane.xlu1 %2744  ;;  %6277 = vpow2.f32 %v2778_v10 }
 0xb98   : > { %v8003_v8 = vpop.eup %6271  ;;  %v2788_v16 = vmul.f32 1.442695, %v2770_v30  ;;  %v2769_v62 = vsub.f32 %v2701_v4, %v2745_v45 }
 0xb99   : > { %v2742_v31 = vpop.xlane.xlu0 %2741  ;;  %v2806_v49 = vsel %vm1539_vm14, %v8003_v8, 0.0 }
 0xb9a   : > { %6279 = vpow2.f32 %v2788_v16  ;;  %v2768_v58 = vsub.f32 %v2698_v59, %v2742_v31  ;;  %2807 = vadd.xlane.f32.xlu0 %v2806_v49  ;;  %v2786_v19 = vmul.f32 1.442695, %v2769_v62 }
 0xb9b   : > { %6281 = vpow2.f32 %v2790_v3  ;;  %v2869_v35 = vpop.permute.xlu1 %2868 }
 0xb9c   : > { %v8007_v20 = vpop.eup %6273  ;;  %v2784_v15 = vmul.f32 1.442695, %v2768_v58 }
 0xb9d   : > { %v2760_v56 = vpop.xlane.xlu0 %2759  ;;  %v2800_v40 = vsel %vm1539_vm14, %v8007_v20, 0.0 }
 0xb9e   : > { %6283 = vpow2.f32 %v2784_v15  ;;  %2801 = vadd.xlane.f32.xlu0 %v2800_v40  ;;  %v2774_v31 = vsub.f32 %v7975_v37, %v2760_v56 }
 0xb9f   : > { %6285 = vpow2.f32 %v2786_v19  ;;  %v2871_v51 = vpop.permute.xlu1 %2870 }
 0xba0   : > { %v8011_v27 = vpop.eup %6275  ;;  %v2796_v15 = vmul.f32 1.442695, %v2774_v31 }
 0xba1   : > { %v2754_v4 = vpop.xlane.xlu0 %2753  ;;  %v2809_v38 = vsel %vm1539_vm14, %v8011_v27, 0.0  ;;  %v8015_v59 = vpop.eup %6277 }
 0xba2   : > { %2810 = vadd.xlane.f32.xlu1 %v2809_v38  ;;  %v2803_v7 = vsel %vm1539_vm14, %v8015_v59, 0.0  ;;  %v2772_v45 = vsub.f32 %v7979_v34, %v2754_v4 }
 0xba4   : > { %v8017_v53 = vpop.eup %6279  ;;  %v2792_v3 = vmul.f32 1.442695, %v2772_v45 }
 0xba5   : > { %v2867_v42 = vpop.permute.xlu0 %2866  ;;  %v2818_v5 = vsel %vm1539_vm14, %v8017_v53, 0.0  ;;  %v8023_v50 = vpop.eup %6281 }
 0xba6   : > { %2804 = vadd.xlane.f32.xlu1 %v2803_v7  ;;  %2819 = vadd.xlane.f32.xlu0 %v2818_v5  ;;  %v2821_v10 = vsel %vm1539_vm14, %v8023_v50, 0.0  ;;  %6287 = vpow2.f32 %v2792_v3  ;;  %v9425_v7 = vpack.i.bf16 %v7696_v46, %v7690_v9 }
 0xba7   : > { %5750 = vmatprep.subr.bf16.mxu0 %v2867_v42 }
 0xba8   : > { %v8025_v47 = vpop.eup %6283  ;;  %5751 = vmatpush3.bf16.msra.mxu0 %v2867_v42  ;;  %v9424_v42 = vpack.i.bf16 %v7692_v28, %v7688_v44 }
 0xba9   : > { %5752 = vmatprep.subr.bf16.mxu0 %v2869_v35  ;;  %v2812_v54 = vsel %vm1539_vm14, %v8025_v47, 0.0  ;;  %v8031_v55 = vpop.eup %6285 }
 0xbaa   : > { %2822 = vadd.xlane.f32.xlu0 %v2821_v10  ;;  %2813 = vadd.xlane.f32.xlu1 %v2812_v54  ;;  %v2815_v30 = vsel %vm1539_vm14, %v8031_v55, 0.0 }
 0xbac   : > { %5753 = vmatpush3.bf16.msra.mxu0 %v2869_v35 }
 0xbad   : > { %5754 = vmatprep.subr.bf16.mxu0 %v2871_v51 }
 0xbae   : > { %2816 = vadd.xlane.f32.xlu0 %v2815_v30 }
 0xbb0   : > { %5755 = vmatpush3.bf16.msra.mxu0 %v2871_v51 }
 0xbbb   : > { %2876 = vrot.lane.b32.xlu1 %v7352_v12, %s6561_s17 }
 0xbc4   : > { %2874 = vrot.lane.b32.xlu0 %v7350_v61, %s6561_s17  ;;  %v8043_v61 = vpop.eup %6287 }
 0xbc5   : > { %v2824_v34 = vsel %vm1539_vm14, %v8043_v61, 0.0 }
 0xbd0   : > { %v2763_v16 = vpop.xlane.xlu1 %2762 }
 0xbd1   : > { %v2775_v62 = vsub.f32 %v7992_v25, %v2763_v16 }
 0xbd3   : > { %v2798_v49 = vmul.f32 1.442695, %v2775_v62 }
 0xbd4   : > { %v2757_v58 = vpop.xlane.xlu1 %2756 }
 0xbd5   : > { %6289 = vpow2.f32 %v2798_v49  ;;  %v2773_v19 = vsub.f32 %v7995_v14, %v2757_v58 }
 0xbd7   : > { %v2794_v40 = vmul.f32 1.442695, %v2773_v19 }
 0xbd8   : > { %v2873_v12 = vpop.permute.xlu1 %2872 }
 0xbd9   : > { %6291 = vpow2.f32 %v2794_v40  ;;  %5756 = vmatprep.subr.bf16.mxu0 %v2873_v12 }
 0xbda   : > { %5757 = vmatpush3.bf16.msra.mxu0 %v2873_v12  ;;  %6293 = vpow2.f32 %v2796_v15 }
 0xbdf   : > { %v8047_v25 = vpop.eup %6289  ;;  %2825 = vadd.xlane.f32.xlu1 %v2824_v34 }
 0xbe0   : > { %v2833_v37 = vsel %vm1539_vm14, %v8047_v25, 0.0 }
 0xbe3   : > { %v8051_v56 = vpop.eup %6291  ;;  %2834 = vadd.xlane.f32.xlu1 %v2833_v37 }
 0xbe4   : > { %v2827_v14 = vsel %vm1539_vm14, %v8051_v56, 0.0  ;;  %v8055_v4 = vpop.eup %6293 }
 0xbe5   : > { %2828 = vadd.xlane.f32.xlu0 %v2827_v14  ;;  %v2830_v38 = vsel %vm1539_vm14, %v8055_v4, 0.0 }
 0xbe9   : > { %2831 = vadd.xlane.f32.xlu0 %v2830_v38 }
 0xbf4   : > { %5923 = vrot.lane.b32.xlu1 %v9424_v42, %s6561_s17 }
 0xbf8   : > { %5928 = vrot.lane.b32.xlu1 %v5927_v1, %s6560_s20 }
 0xbfc   : > { %5933 = vrot.lane.b32.xlu1 %v5932_v22, %s6560_s20 }
 0xbff   : > { %5918 = vrot.lane.b32.xlu0 %v9425_v7, %s6561_s17 }
 0xc27   : > { %v2808_v5 = vpop.xlane.xlu0 %2807 }
 0xc2b   : > { %v2802_v35 = vpop.xlane.xlu0 %2801 }
 0xc2c   : > { %6295 = vrcp.f32 %v2802_v35 }
 0xc2f   : > { %v2811_v10 = vpop.xlane.xlu1 %2810 }
 0xc33   : > { %v2805_v44 = vpop.xlane.xlu1 %2804  ;;  %v2820_v28 = vpop.xlane.xlu0 %2819 }
 0xc34   : > { %6297 = vrcp.f32 %v2805_v44  ;;  %v6039_v44 = vld [vmem:[%s9426_s0] sm:$0xff]  }
 0xc35   : > { %6299 = vrcp.f32 %v2811_v10 }
 0xc36   : > { %6301 = vrcp.f32 %v2808_v5  ;;  %v6296_v2 = vpop.eup %6295 }
 0xc37   : > { %v2814_v24 = vpop.xlane.xlu1 %2813  ;;  %v2823_v43 = vpop.xlane.xlu0 %2822  ;;  %v2848_v46 = vmul.f32 %v6296_v2, %v8007_v20 }
 0xc38   : > { %6303 = vrcp.f32 %v2814_v24  ;;  %v6045_v24 = vld [vmem:[%s9426_s0 + $0x30] sm:$0xff]  }
 0xc3b   : > { %v2817_v1 = vpop.xlane.xlu0 %2816  ;;  %v2877_v30 = vpop.permute.xlu1 %2876 }
 0xc3c   : > { %6305 = vrcp.f32 %v2817_v1 }
 0xc3d   : > { %6307 = vrcp.f32 %v2823_v43  ;;  %v6046_v43 = vld [vmem:[%s9426_s0 + $0x38] sm:$0xff]  }
 0xc3e   : > { %v6298_v32 = vpop.eup %6297  ;;  %6309 = vrcp.f32 %v2820_v28  ;;  %v6040_v28 = vld [vmem:[%s9426_s0 + $0x8] sm:$0xff]  }
 0xc3f   : > { %v6300_v22 = vpop.eup %6299  ;;  %v2875_v9 = vpop.permute.xlu0 %2874  ;;  %v2849_v54 = vmul.f32 %v6298_v32, %v8015_v59 }
 0xc40   : > { %5758 = vmatprep.subr.bf16.mxu0 %v2875_v9  ;;  %v6302_v51 = vpop.eup %6301  ;;  %v2851_v3 = vmul.f32 %v6300_v22, %v8011_v27 }
 0xc41   : > { %5759 = vmatpush3.bf16.msra.mxu0 %v2875_v9  ;;  %v2860_v45 = vpack.c.bf16 %v2849_v54, %v2848_v46  ;;  %v2850_v62 = vmul.f32 %v6302_v51, %v8003_v8  ;;  %v9427_v51 = vpack.i.bf16 %v7704_v26, %v7700_v48  ;;  %v9429_v48 = vpack.i.bf16 %v7716_v52, %v7712_v21  ;;  %v9431_v26 = vld [vmem:[#allocation25_spill] sm:$0xff] }
 0xc42   : > { %5760 = vmatprep.subr.bf16.mxu0 %v2877_v30  ;;  %v6304_v16 = vpop.eup %6303 }
 0xc43   : > { %5762 = vmatprep.mubr.msk.bf16.mxu0 %vm1539_vm14, %v2860_v45  ;;  %v2861_v49 = vpack.c.bf16 %v2851_v3, %v2850_v62  ;;  %v2852_v20 = vmul.f32 %v6304_v16, %v8025_v47  ;;  %v9428_v45 = vpack.i.bf16 %v7708_v39, %v7702_v6  ;;  %v9430_v6 = vld [vmem:[#allocation26_spill] sm:$0xff] }
 0xc44   : > { %v9432_v39 = vpack.i.bf16 %v9430_v6, %v9431_v26  ;;  %v9440_v26 = vld [vmem:[#allocation18_spill] sm:$0xff] }
 0xc45   : > { %5761 = vmatpush3.bf16.msra.mxu0 %v2877_v30 }
 0xc46   : > { %v6306_v31 = vpop.eup %6305  ;;  %5774 = vmatprep.subr.bf16.mxu0 %v6039_v44 }
 0xc47   : > { %v6308_v58 = vpop.eup %6307  ;;  %v2853_v59 = vmul.f32 %v6306_v31, %v8031_v55 }
 0xc48   : > { %5763 = vmatmul.mubr.msk.bf16.vlgmr.msra.gmra.mrb[60].mxu0 %vm1539_vm14, %v2861_v49  ;;  %v6310_v19 = vpop.eup %6309  ;;  %v2855_v27 = vmul.f32 %v6308_v58, %v8023_v50 }
 0xc49   : > { %v2862_v15 = vpack.c.bf16 %v2853_v59, %v2852_v20  ;;  %v2854_v40 = vmul.f32 %v6310_v19, %v8017_v53  ;;  %5775 = vmatpush3.bf16.msra.mxu0 %v6039_v44  ;;  %v9434_v19 = vld [vmem:[#allocation13_spill] sm:$0xff] }
 0xc4a   : > { %5776 = vmatprep.subr.bf16.mxu0 %v6040_v28 }
 0xc4b   : > { %5766 = vmatprep.mubr.msk.bf16.mxu0 %vm1539_vm14, %v2862_v15  ;;  %v2863_v12 = vpack.c.bf16 %v2855_v27, %v2854_v40  ;;  %v9435_v27 = vld [vmem:[#allocation16_spill] sm:$0xff] }
 0xc4d   : > { %5777 = vmatpush3.bf16.msra.mxu0 %v6040_v28 }
 0xc50   : > { %5767 = vmatmul.mubr.msk.bf16.gmra.mrb[64].mxu0 %vm1539_vm14, %v2863_v12  ;;  %v9436_v12 = vld [vmem:[#allocation14_spill] sm:$0xff] }
 0xc6c   : > { %v2826_v8 = vpop.xlane.xlu1 %2825 }
 0xc6d   : > { %6311 = vrcp.f32 %v2826_v8 }
 0xc70   : > { %v2835_v34 = vpop.xlane.xlu1 %2834 }
 0xc72   : > { %v2829_v37 = vpop.xlane.xlu0 %2828 }
 0xc73   : > { %6313 = vrcp.f32 %v2829_v37 }
 0xc74   : > { %6315 = vrcp.f32 %v2835_v34  ;;  %v5924_v36 = vpop.permute.xlu1 %5923 }
 0xc75   : > { %v5926_v33 = vunpack.i.h.bf16 %v5924_v36 }
 0xc76   : > { %v2832_v47 = vpop.xlane.xlu0 %2831 }
 0xc77   : > { %6317 = vrcp.f32 %v2832_v47  ;;  %v6312_v55 = vpop.eup %6311 }
 0xc78   : > { %v2856_v50 = vmul.f32 %v6312_v55, %v8043_v61  ;;  %v6041_v61 = vld [vmem:[%s9426_s0 + $0x10] sm:$0xff]  }
 0xc79   : > { %5778 = vmatprep.subr.bf16.mxu0 %v6041_v61 }
 0xc7a   : > { %5779 = vmatpush3.bf16.msra.mxu0 %v6041_v61  ;;  %v5919_v49 = vpop.permute.xlu0 %5918 }
 0xc7b   : > { %v5921_v58 = vunpack.i.h.bf16 %v5919_v49  ;;  %v5920_v20 = vunpack.i.l.bf16 %v5919_v49 }
 0xc7d   : > { %v6314_v14 = vpop.eup %6313  ;;  %v3128_v40 = vsel %vm1421_vm13, %v9435_v27, %v5921_v58  ;;  %v3127_v8 = vsel %vm1421_vm13, %v9436_v12, %v5920_v20 }
 0xc7e   : > { %v2857_v53 = vmul.f32 %v6314_v14, %v8051_v56  ;;  %v6316_v38 = vpop.eup %6315  ;;  %v6042_v56 = vld [vmem:[%s9426_s0 + $0x18] sm:$0xff]  }
 0xc7f   : > { %v2859_v35 = vmul.f32 %v6316_v38, %v8047_v25  ;;  %5780 = vmatprep.subr.bf16.mxu0 %v6042_v56  ;;  %v6044_v25 = vld [vmem:[%s9426_s0 + $0x28] sm:$0xff]  }
 0xc80   : > { %v2864_v42 = vpack.c.bf16 %v2857_v53, %v2856_v50  ;;  %5781 = vmatpush3.bf16.msra.mxu0 %v6042_v56 }
 0xc81   : > { %v6318_v7 = vpop.eup %6317 }
 0xc82   : > { %5770 = vmatprep.mubr.msk.bf16.mxu0 %vm1539_vm14, %v2864_v42  ;;  %v2858_v5 = vmul.f32 %v6318_v7, %v8055_v4  ;;  %v6043_v4 = vld [vmem:[%s9426_s0 + $0x20] sm:$0xff]  }
 0xc83   : > { %5782 = vmatprep.subr.bf16.mxu0 %v6043_v4 }
 0xc84   : > { %v2865_v10 = vpack.c.bf16 %v2859_v35, %v2858_v5  ;;  %5783 = vmatpush3.bf16.msra.mxu0 %v6043_v4 }
 0xc85   : > { %5784 = vmatprep.subr.bf16.mxu0 %v6044_v25 }
 0xc86   : > { %5771 = vmatmul.mubr.msk.bf16.gmra.mrb[68].mxu0 %vm1539_vm14, %v2865_v10 }
 0xc88   : > { %5785 = vmatpush3.bf16.msra.mxu0 %v6044_v25 }
 0xc89   : > { %5786 = vmatprep.subr.bf16.mxu0 %v6045_v24 }
 0xc8c   : > { %5787 = vmatpush3.bf16.msra.mxu0 %v6045_v24 }
 0xc8d   : > { %5788 = vmatprep.subr.bf16.mxu0 %v6046_v43 }
 0xc90   : > { %5789 = vmatpush3.bf16.msra.mxu0 %v6046_v43 }
 0xd1b   : > { %v5764_v1 = vpop.f32.mrb[60].mxu0 }
 0xd1c   : > { %v2936_v2 = vpop.f32.mrb[61].mxu0 }
 0xd1d   : > { %v5765_v32 = vpop.f32.mrb[62].mxu0 }
 0xd1e   : > { %v5942_v22 = vpack.i.bf16 %v5765_v32, %v5764_v1  ;;  %v2939_v9 = vpop.f32.mrb[63].mxu0 }
 0xd1f   : > { %v5937_v46 = vpack.i.bf16 %v2939_v9, %v2936_v2 }
 0xd20   : > { %5943 = vrot.lane.b32.xlu1 %v5942_v22, %s6559_s3 }
 0xd21   : > { %5938 = vrot.lane.b32.xlu0 %v5937_v46, %s6559_s3 }
 0xd23   : > { %v5768_v54 = vpop.f32.mrb[64].mxu0 }
 0xd24   : > { %5953 = vrot.lane.b32.xlu1 %v9427_v51, %s6561_s17  ;;  %v2952_v30 = vpop.f32.mrb[65].mxu0 }
 0xd25   : > { %5948 = vrot.lane.b32.xlu0 %v9428_v45, %s6561_s17  ;;  %v5769_v3 = vpop.f32.mrb[66].mxu0  ;;  %v9437_v45 = vld [vmem:[#allocation19_spill] sm:$0xff] }
 0xd26   : > { %v5972_v16 = vpack.i.bf16 %v5769_v3, %v5768_v54  ;;  %v2955_v62 = vpop.f32.mrb[67].mxu0 }
 0xd27   : > { %v5967_v31 = vpack.i.bf16 %v2955_v62, %v2952_v30 }
 0xd28   : > { %5963 = vrot.lane.b32.xlu1 %v5962_v23, %s6560_s20 }
 0xd29   : > { %5958 = vrot.lane.b32.xlu0 %v5957_v60, %s6560_s20  ;;  %v5929_v60 = vpop.permute.xlu1 %5928 }
 0xd2a   : > { %v5931_v37 = vunpack.i.h.bf16 %v5929_v60  ;;  %v5930_v47 = vunpack.i.l.bf16 %v5929_v60 }
 0xd2c   : > { %5973 = vrot.lane.b32.xlu1 %v5972_v16, %s6559_s3  ;;  %v3140_v10 = vsel %vm3139_vm15, %v3127_v8, %v5930_v47  ;;  %v3141_v44 = vsel %vm3139_vm15, %v3128_v40, %v5931_v37  ;;  %v9438_v16 = vld [vmem:[#allocation17_spill] sm:$0xff] }
 0xd2d   : > { %5968 = vrot.lane.b32.xlu0 %v5967_v31, %s6559_s3  ;;  %v5934_v57 = vpop.permute.xlu1 %5933 }
 0xd2e   : > { %v5936_v63 = vunpack.i.h.bf16 %v5934_v57  ;;  %v5935_v17 = vunpack.i.l.bf16 %v5934_v57 }
 0xd30   : > { %5983 = vrot.lane.b32.xlu1 %v9429_v48, %s6561_s17  ;;  %v9439_v48 = vld [vmem:[#allocation20_spill] sm:$0xff] }
 0xd31   : > { %5978 = vrot.lane.b32.xlu0 %v9432_v39, %s6561_s17 }
 0xd34   : > { %5993 = vrot.lane.b32.xlu1 %v5992_v18, %s6560_s20  ;;  %v5925_v18 = vunpack.i.l.bf16 %v5924_v36 }
 0xd35   : > { %5988 = vrot.lane.b32.xlu0 %v5987_v29, %s6560_s20  ;;  %v9433_v29 = vld [vmem:[#allocation15_spill] sm:$0xff] }
 0xd36   : > { %v3130_v59 = vsel %vm1421_vm13, %v9433_v29, %v5926_v33  ;;  %v3129_v15 = vsel %vm1421_vm13, %v9434_v19, %v5925_v18 }
 0xd37   : > { %v3142_v53 = vsel %vm3139_vm15, %v3129_v15, %v5935_v17  ;;  %v3143_v38 = vsel %vm3139_vm15, %v3130_v59, %v5936_v63 }
 0xd59   : > { %v5772_v0 = vpop.f32.mrb[68].mxu0 }
 0xd5a   : > { %v2968_v11 = vpop.f32.mrb[69].mxu0 }
 0xd5b   : > { %v5773_v13 = vpop.f32.mrb[70].mxu0 }
 0xd5c   : > { %v6002_v21 = vpack.i.bf16 %v5773_v13, %v5772_v0  ;;  %v2971_v52 = vpop.f32.mrb[71].mxu0 }
 0xd5d   : > { %v5997_v23 = vpack.i.bf16 %v2971_v52, %v2968_v11 }
 0xd5e   : > { %6003 = vrot.lane.b32.xlu1 %v6002_v21, %s6559_s3 }
 0xd5f   : > { %5998 = vrot.lane.b32.xlu0 %v5997_v23, %s6559_s3 }
 0xd92   : > { %v5944_v34 = vpop.permute.xlu1 %5943 }
 0xd93   : > { %v5946_v55 = vunpack.i.h.bf16 %v5944_v34  ;;  %v5945_v14 = vunpack.i.l.bf16 %v5944_v34  ;;  %v5939_v50 = vpop.permute.xlu0 %5938 }
 0xd94   : > { %v5941_v42 = vunpack.i.h.bf16 %v5939_v50  ;;  %v5940_v7 = vunpack.i.l.bf16 %v5939_v50  ;;  %v9442_v50 = vld [vmem:[#allocation21_spill] sm:$0xff] }
 0xd95   : > { %v3155_v5 = vsel %vm1539_vm14, %v3143_v38, %v5946_v55  ;;  %v3154_v35 = vsel %vm1539_vm14, %v3142_v53, %v5945_v14  ;;  %v9441_v55 = vld [vmem:[#allocation23_spill] sm:$0xff] }
 0xd96   : > { %v3165_v28 = vpack.c.bf16 %v3155_v5, %v3154_v35  ;;  %v5954_v61 = vpop.permute.xlu1 %5953  ;;  %v3152_v56 = vsel %vm1539_vm14, %v3140_v10, %v5940_v7  ;;  %v3153_v4 = vsel %vm1539_vm14, %v3141_v44, %v5941_v42  ;;  %v9443_v42 = vld [vmem:[#allocation24_spill] sm:$0xff]  ;;  %v9444_v5 = vld [vmem:[#allocation22_spill] sm:$0xff] }
 0xd97   : > { %v5949_v25 = vpop.permute.xlu0 %5948  ;;  %v3164_v24 = vpack.c.bf16 %v3153_v4, %v3152_v56  ;;  %v5956_v43 = vunpack.i.h.bf16 %v5954_v61  ;;  %v5955_v1 = vunpack.i.l.bf16 %v5954_v61 }
 0xd98   : > { %v5951_v32 = vunpack.i.h.bf16 %v5949_v25  ;;  %v5950_v22 = vunpack.i.l.bf16 %v5949_v25 }
 0xd99   : > { %5790 = vmatprep.mubr.bf16.mxu0 %v3164_v24  ;;  %v3134_v3 = vsel %vm1421_vm13, %v9437_v45, %v5956_v43  ;;  %v3133_v62 = vsel %vm1421_vm13, %v9438_v16, %v5955_v1 }
 0xd9a   : > { %v5964_v2 = vpop.permute.xlu1 %5963  ;;  %5791 = vmatmul.mubr.bf16.vlgmr.msra.gmra.mrb[72].mxu0 %v3165_v28  ;;  %v3132_v6 = vsel %vm1421_vm13, %v9439_v48, %v5951_v32  ;;  %v3131_v39 = vsel %vm1421_vm13, %v9440_v26, %v5950_v22  ;;  %v6476_v26 = vld [vmem:[%s9406_s21 + $0x8] sm:$0xff] }
 0xd9b   : > { %v5959_v9 = vpop.permute.xlu0 %5958  ;;  %v5966_v46 = vunpack.i.h.bf16 %v5964_v2  ;;  %v5965_v54 = vunpack.i.l.bf16 %v5964_v2 }
 0xd9c   : > { %v5961_v51 = vunpack.i.h.bf16 %v5959_v9  ;;  %v5960_v30 = vunpack.i.l.bf16 %v5959_v9 }
 0xd9d   : > { %v3146_v21 = vsel %vm3139_vm15, %v3133_v62, %v5965_v54  ;;  %v3147_v52 = vsel %vm3139_vm15, %v3134_v3, %v5966_v46  ;;  %v5243_v54 = vld [vmem:[%s9445_s7] ss:$0 sm:$0xff] }
 0xd9e   : > { %v5974_v31 = vpop.permute.xlu1 %5973  ;;  %v3144_v60 = vsel %vm3139_vm15, %v3131_v39, %v5960_v30  ;;  %v3145_v49 = vsel %vm3139_vm15, %v3132_v6, %v5961_v51 }
 0xd9f   : > { %v5976_v0 = vunpack.i.h.bf16 %v5974_v31  ;;  %v5975_v11 = vunpack.i.l.bf16 %v5974_v31  ;;  %v5969_v13 = vpop.permute.xlu0 %5968  ;;  %v6475_v31 = vld [vmem:[%s9406_s21] sm:$0xff] }
 0xda0   : > { %v5971_v23 = vunpack.i.h.bf16 %v5969_v13  ;;  %v5970_v36 = vunpack.i.l.bf16 %v5969_v13 }
 0xda1   : > { %v3158_v57 = vsel %vm1539_vm14, %v3146_v21, %v5975_v11  ;;  %v3159_v33 = vsel %vm1539_vm14, %v3147_v52, %v5976_v0  ;;  %v6477_v0 = vld [vmem:[%s9406_s21 + $0x10] sm:$0xff]  ;;  %v6478_v21 = vld [vmem:[%s9406_s21 + $0x18] sm:$0xff] }
 0xda2   : > { %v3156_v18 = vsel %vm1539_vm14, %v3144_v60, %v5970_v36  ;;  %v3157_v58 = vsel %vm1539_vm14, %v3145_v49, %v5971_v23  ;;  %v3167_v20 = vpack.c.bf16 %v3159_v33, %v3158_v57  ;;  %v5984_v17 = vpop.permute.xlu1 %5983 }
 0xda3   : > { %v3166_v63 = vpack.c.bf16 %v3157_v58, %v3156_v18  ;;  %v5979_v29 = vpop.permute.xlu0 %5978  ;;  %v5986_v19 = vunpack.i.h.bf16 %v5984_v17  ;;  %v5985_v15 = vunpack.i.l.bf16 %v5984_v17  ;;  %v6479_v18 = vld [vmem:[%s9406_s21 + $0x20] sm:$0xff]  ;;  %v6480_v17 = vld [vmem:[%s9406_s21 + $0x28] sm:$0xff] }
 0xda4   : > { %v5981_v40 = vunpack.i.h.bf16 %v5979_v29  ;;  %v5980_v12 = vunpack.i.l.bf16 %v5979_v29 }
 0xda5   : > { %5794 = vmatprep.mubr.bf16.mxu0 %v3166_v63  ;;  %v3138_v14 = vsel %vm1421_vm13, %v9441_v55, %v5986_v19  ;;  %v3137_v53 = vsel %vm1421_vm13, %v9442_v50, %v5985_v15  ;;  %v6482_v15 = vld [vmem:[%s9406_s21 + $0x38] sm:$0xff]  ;;  %v6483_v55 = vld [vmem:[%s9406_s21 + $0x40] sm:$0xff] }
 0xda6   : > { %5795 = vmatmul.mubr.bf16.gmra.mrb[76].mxu0 %v3167_v20  ;;  %v5994_v59 = vpop.permute.xlu1 %5993  ;;  %v3136_v7 = vsel %vm1421_vm13, %v9443_v42, %v5981_v40  ;;  %v3135_v35 = vsel %vm1421_vm13, %v9444_v5, %v5980_v12 }
 0xda7   : > { %v5989_v27 = vpop.permute.xlu0 %5988  ;;  %v5996_v8 = vunpack.i.h.bf16 %v5994_v59  ;;  %v5995_v34 = vunpack.i.l.bf16 %v5994_v59  ;;  %v6481_v59 = vld [vmem:[%s9406_s21 + $0x30] sm:$0xff] }
 0xda8   : > { %v5991_v37 = vunpack.i.h.bf16 %v5989_v27  ;;  %v5990_v47 = vunpack.i.l.bf16 %v5989_v27 }
 0xda9   : > { %v3150_v61 = vsel %vm3139_vm15, %v3137_v53, %v5995_v34  ;;  %v3151_v56 = vsel %vm3139_vm15, %v3138_v14, %v5996_v8 }
 0xdaa   : > { %v3148_v24 = vsel %vm3139_vm15, %v3135_v35, %v5990_v47  ;;  %v3149_v43 = vsel %vm3139_vm15, %v3136_v7, %v5991_v37  ;;  %v6485_v7 = vld [vmem:[%s9406_s21 + $0x50] sm:$0xff]  ;;  %v6486_v35 = vld [vmem:[%s9406_s21 + $0x58] sm:$0xff] }
 0xdd0   : > { %v6004_v38 = vpop.permute.xlu1 %6003 }
 0xdd1   : > { %v6006_v10 = vunpack.i.h.bf16 %v6004_v38  ;;  %v6005_v44 = vunpack.i.l.bf16 %v6004_v38  ;;  %v5999_v28 = vpop.permute.xlu0 %5998  ;;  %v6484_v38 = vld [vmem:[%s9406_s21 + $0x48] sm:$0xff] }
 0xdd2   : > { %v6001_v4 = vunpack.i.h.bf16 %v5999_v28  ;;  %v6000_v25 = vunpack.i.l.bf16 %v5999_v28  ;;  %v6049_v28 = vld [vmem:[%s6776_s29 + $0x4] ss:$16 sps:$4 sm:$0xff]  }
 0xdd3   : > { %v3162_v1 = vsel %vm1539_vm14, %v3150_v61, %v6005_v44  ;;  %v3163_v2 = vsel %vm1539_vm14, %v3151_v56, %v6006_v10  ;;  %v6047_v44 = vld [vmem:[%s6776_s29] ss:$16 sps:$4 sm:$0xff]   ;;  %v6050_v61 = vld [vmem:[%s6776_s29 + $0x8] ss:$16 sps:$4 sm:$0xff]   ;;  %v6052_v56 = vld [vmem:[%s6776_s29 + $0xc] ss:$16 sps:$4 sm:$0xff]   ;;  %3619 = vmatprep.subr.bf16.mxu1 %v6049_v28 }
 0xdd4   : > { %v3160_v32 = vsel %vm1539_vm14, %v3148_v24, %v6000_v25  ;;  %v3161_v22 = vsel %vm1539_vm14, %v3149_v43, %v6001_v4  ;;  %v3169_v9 = vpack.c.bf16 %v3163_v2, %v3162_v1  ;;  %v6055_v4 = vld [vmem:[%s6776_s29 + $0x24] ss:$16 sps:$4 sm:$0xff]   ;;  %v6058_v25 = vld [vmem:[%s6776_s29 + $0x2c] ss:$16 sps:$4 sm:$0xff]   ;;  %4080 = vmatprep.subr.bf16.mxu0 %v6052_v56  ;;  %3620 = vmatpush1.bf16.msra.mxu1 %v6047_v44  ;;  %v6053_v24 = vld [vmem:[%s6776_s29 + $0x20] ss:$16 sps:$4 sm:$0xff]  }
 0xdd5   : > { %v3168_v46 = vpack.c.bf16 %v3161_v22, %v3160_v32  ;;  %4081 = vmatpush1.bf16.msra.mxu0 %v6050_v61  ;;  %3621 = vmatprep.subr.bf16.mxu1 %v6055_v4  ;;  %v6056_v43 = vld [vmem:[%s6776_s29 + $0x28] ss:$16 sps:$4 sm:$0xff]   ;;  %v6091_v28 = vld [vmem:[%s6776_s29 + $0xe4] ss:$16 sps:$4 sm:$0xff]   ;;  %v6094_v61 = vld [vmem:[%s6776_s29 + $0xec] ss:$16 sps:$4 sm:$0xff]  }
 0xdd6   : > { %4082 = vmatprep.subr.bf16.mxu0 %v6058_v25  ;;  %v6086_v44 = vld [vmem:[%s6776_s29 + $0xc8] ss:$16 sps:$4 sm:$0xff]   ;;  %v6089_v56 = vld [vmem:[%s6776_s29 + $0xe0] ss:$16 sps:$4 sm:$0xff]  }
 0xdd7   : > { %5798 = vmatprep.mubr.bf16.mxu0 %v3168_v46  ;;  %v6092_v4 = vld [vmem:[%s6776_s29 + $0xe8] ss:$16 sps:$4 sm:$0xff]  }
 0xdd8   : > { %5799 = vmatmul.mubr.bf16.gmra.mrb[80].mxu0 %v3169_v9  ;;  %3622 = vmatpush1.bf16.msra.mxu1 %v6053_v24 }
 0xdd9   : > { %4112 = vmatprep.mubr.bf16.mxu0 %v9423_v41  ;;  %4083 = vmatpush1.bf16.msra.mxu0 %v6056_v43 }
 0xe6d   : > { %v5792_v51 = vpop.f32.mrb[72].mxu0 }
 0xe6e   : > { %v3275_v30 = vpop.f32.mrb[73].mxu0  ;;  %v3284_v62 = vadd.f32 %v5792_v51, %v5243_v54 }
 0xe6f   : > { %v3276_v45 = vadd.f32 %v5243_v54, %v3275_v30  ;;  %v5793_v3 = vpop.f32.mrb[74].mxu0 }
 0xe70   : > { %v3278_v16 = vpop.f32.mrb[75].mxu0  ;;  %v8207_v11 = vadd.f32 %v6477_v0, %v3284_v62  ;;  %v3287_v13 = vadd.f32 %v5793_v3, %v5243_v54 }
 0xe71   : > { %v8196_v48 = vadd.f32 %v6475_v31, %v3276_v45  ;;  %v3279_v6 = vadd.f32 %v5243_v54, %v3278_v16 }
 0xe72   : > { %v8214_v52 = vadd.f32 %v6478_v21, %v3287_v13 }
 0xe73   : > { %v8201_v39 = vadd.f32 %v6476_v26, %v3279_v6  ;;  %3336 = vadd.xlane.f32.xlu0 %v8196_v48 }
 0xe75   : > { %3338 = vadd.xlane.f32.xlu1 %v8201_v39 }
 0xe77   : > { %3340 = vadd.xlane.f32.xlu0 %v8207_v11 }
 0xe79   : > { %v5796_v23 = vpop.f32.mrb[76].mxu0 }
 0xe7a   : > { %v3291_v36 = vpop.f32.mrb[77].mxu0  ;;  %v3300_v33 = vadd.f32 %v5796_v23, %v5243_v54 }
 0xe7b   : > { %v3292_v60 = vadd.f32 %v5243_v54, %v3291_v36  ;;  %v5797_v49 = vpop.f32.mrb[78].mxu0  ;;  %3342 = vadd.xlane.f32.xlu0 %v8214_v52 }
 0xe7c   : > { %v3294_v57 = vpop.f32.mrb[79].mxu0  ;;  %v3303_v63 = vadd.f32 %v5797_v49, %v5243_v54  ;;  %v8231_v19 = vadd.f32 %v6481_v59, %v3300_v33 }
 0xe7d   : > { %v8220_v58 = vadd.f32 %v6479_v18, %v3292_v60  ;;  %v3295_v20 = vadd.f32 %v5243_v54, %v3294_v57 }
 0xe7e   : > { %v8237_v27 = vadd.f32 %v6482_v15, %v3303_v63  ;;  %v6064_v63 = vld [vmem:[%s6776_s29 + $0x4c] ss:$16 sps:$4 sm:$0xff]  }
 0xe7f   : > { %v8225_v29 = vadd.f32 %v6480_v17, %v3295_v20  ;;  %3344 = vadd.xlane.f32.xlu0 %v8220_v58  ;;  %v6061_v20 = vld [vmem:[%s6776_s29 + $0x44] ss:$16 sps:$4 sm:$0xff]   ;;  %v6059_v17 = vld [vmem:[%s6776_s29 + $0x40] ss:$16 sps:$4 sm:$0xff]   ;;  %4084 = vmatprep.subr.bf16.mxu0 %v6064_v63  ;;  %v6070_v15 = vld [vmem:[%s6776_s29 + $0x6c] ss:$16 sps:$4 sm:$0xff]  }
 0xe80   : > { %3623 = vmatprep.subr.bf16.mxu1 %v6061_v20 }
 0xe81   : > { %3346 = vadd.xlane.f32.xlu1 %v8225_v29  ;;  %3624 = vmatpush1.bf16.msra.mxu1 %v6059_v17  ;;  %v8362_v17 = vld [vmem:[%s9446_s24] ss:$0 sm:$0xff] }
 0xe83   : > { %3348 = vadd.xlane.f32.xlu0 %v8231_v19 }
 0xe85   : > { %3350 = vadd.xlane.f32.xlu1 %v8237_v27 }
 0xeab   : > { %v5800_v40 = vpop.f32.mrb[80].mxu0 }
 0xeac   : > { %v3307_v12 = vpop.f32.mrb[81].mxu0  ;;  %v3316_v47 = vadd.f32 %v5800_v40, %v5243_v54  ;;  %v6068_v40 = vld [vmem:[%s6776_s29 + $0x68] ss:$16 sps:$4 sm:$0xff]  }
 0xead   : > { %v3308_v8 = vadd.f32 %v5243_v54, %v3307_v12  ;;  %v5801_v34 = vpop.f32.mrb[82].mxu0  ;;  %v6073_v12 = vld [vmem:[%s6776_s29 + $0x84] ss:$16 sps:$4 sm:$0xff]  }
 0xeae   : > { %v3310_v37 = vpop.f32.mrb[83].mxu0  ;;  %v3319_v53 = vadd.f32 %v5801_v34, %v5243_v54  ;;  %v8255_v5 = vadd.f32 %v6485_v7, %v3316_v47  ;;  %v6071_v34 = vld [vmem:[%s6776_s29 + $0x80] ss:$16 sps:$4 sm:$0xff]   ;;  %v6079_v47 = vld [vmem:[%s6776_s29 + $0xa4] ss:$16 sps:$4 sm:$0xff]  }
 0xeaf   : > { %v8244_v14 = vadd.f32 %v6483_v55, %v3308_v8  ;;  %v3311_v50 = vadd.f32 %v5243_v54, %v3310_v37  ;;  %v6076_v8 = vld [vmem:[%s6776_s29 + $0x8c] ss:$16 sps:$4 sm:$0xff]   ;;  %v6074_v37 = vld [vmem:[%s6776_s29 + $0x88] ss:$16 sps:$4 sm:$0xff]  }
 0xeb0   : > { %v8261_v10 = vadd.f32 %v6486_v35, %v3319_v53  ;;  %v6082_v55 = vld [vmem:[%s6776_s29 + $0xac] ss:$16 sps:$4 sm:$0xff]   ;;  %v6080_v53 = vld [vmem:[%s6776_s29 + $0xa8] ss:$16 sps:$4 sm:$0xff]   ;;  %v6083_v35 = vld [vmem:[%s6776_s29 + $0xc0] ss:$16 sps:$4 sm:$0xff]  }
 0xeb1   : > { %v8249_v42 = vadd.f32 %v6484_v38, %v3311_v50  ;;  %3352 = vadd.xlane.f32.xlu0 %v8244_v14  ;;  %v6077_v50 = vld [vmem:[%s6776_s29 + $0xa0] ss:$16 sps:$4 sm:$0xff]   ;;  %v6085_v38 = vld [vmem:[%s6776_s29 + $0xc4] ss:$16 sps:$4 sm:$0xff]   ;;  %v6088_v7 = vld [vmem:[%s6776_s29 + $0xcc] ss:$16 sps:$4 sm:$0xff]  }
 0xeb3   : > { %3354 = vadd.xlane.f32.xlu1 %v8249_v42 }
 0xeb5   : > { %3356 = vadd.xlane.f32.xlu0 %v8255_v5 }
 0xeb7   : > { %3358 = vadd.xlane.f32.xlu1 %v8261_v10 }
 0xf00   : > { %v3337_v1 = vpop.xlane.xlu0 %3336 }
 0xf01   : > { %v3361_v2 = vmul.f32 0.0078125, %v3337_v1 }
 0xf02   : > { %v3339_v32 = vpop.xlane.xlu1 %3338 }
 0xf03   : > { %v8274_v22 = vsub.f32 %v8196_v48, %v3361_v2  ;;  %v3362_v9 = vmul.f32 0.0078125, %v3339_v32 }
 0xf04   : > { %v3341_v46 = vpop.xlane.xlu0 %3340 }
 0xf05   : > { %v8277_v54 = vsub.f32 %v8201_v39, %v3362_v9  ;;  %v3363_v51 = vmul.f32 0.0078125, %v3341_v46  ;;  %v3385_v30 = vmul.f32 %v8274_v22, %v8274_v22 }
 0xf07   : > { %v8282_v45 = vsub.f32 %v8207_v11, %v3363_v51  ;;  %3397 = vadd.xlane.f32.xlu0 %v3385_v30  ;;  %v3386_v3 = vmul.f32 %v8277_v54, %v8277_v54 }
 0xf08   : > { %v3343_v16 = vpop.xlane.xlu0 %3342 }
 0xf09   : > { %v3364_v62 = vmul.f32 0.0078125, %v3343_v16  ;;  %3399 = vadd.xlane.f32.xlu1 %v3386_v3  ;;  %v3387_v31 = vmul.f32 %v8282_v45, %v8282_v45 }
 0xf0b   : > { %v8289_v48 = vsub.f32 %v8214_v52, %v3364_v62  ;;  %3401 = vadd.xlane.f32.xlu0 %v3387_v31 }
 0xf0c   : > { %v3345_v6 = vpop.xlane.xlu0 %3344 }
 0xf0d   : > { %v3365_v26 = vmul.f32 0.0078125, %v3345_v6  ;;  %v3388_v39 = vmul.f32 %v8289_v48, %v8289_v48 }
 0xf0e   : > { %v3347_v0 = vpop.xlane.xlu1 %3346 }
 0xf0f   : > { %v8294_v11 = vsub.f32 %v8220_v58, %v3365_v26  ;;  %v3366_v13 = vmul.f32 0.0078125, %v3347_v0  ;;  %3403 = vadd.xlane.f32.xlu1 %v3388_v39 }
 0xf10   : > { %v3349_v21 = vpop.xlane.xlu0 %3348 }
 0xf11   : > { %v8297_v52 = vsub.f32 %v8225_v29, %v3366_v13  ;;  %v3367_v23 = vmul.f32 0.0078125, %v3349_v21  ;;  %v3389_v36 = vmul.f32 %v8294_v11, %v8294_v11  ;;  %v6062_v29 = vld [vmem:[%s6776_s29 + $0x48] ss:$16 sps:$4 sm:$0xff]  }
 0xf12   : > { %v3351_v60 = vpop.xlane.xlu1 %3350  ;;  %4085 = vmatpush1.bf16.msra.mxu0 %v6062_v29 }
 0xf13   : > { %v8302_v49 = vsub.f32 %v8231_v19, %v3367_v23  ;;  %v3368_v57 = vmul.f32 0.0078125, %v3351_v60  ;;  %3405 = vadd.xlane.f32.xlu0 %v3389_v36  ;;  %v3390_v33 = vmul.f32 %v8297_v52, %v8297_v52  ;;  %v6067_v19 = vld [vmem:[%s6776_s29 + $0x64] ss:$16 sps:$4 sm:$0xff]   ;;  %4086 = vmatprep.subr.bf16.mxu0 %v6070_v15 }
 0xf14   : > { %3625 = vmatprep.subr.bf16.mxu1 %v6067_v19 }
 0xf15   : > { %v8307_v18 = vsub.f32 %v8237_v27, %v3368_v57  ;;  %3407 = vadd.xlane.f32.xlu1 %v3390_v33  ;;  %v3391_v58 = vmul.f32 %v8302_v49, %v8302_v49  ;;  %v6065_v27 = vld [vmem:[%s6776_s29 + $0x60] ss:$16 sps:$4 sm:$0xff]  }
 0xf16   : > { %3626 = vmatpush1.bf16.msra.mxu1 %v6065_v27  ;;  %4087 = vmatpush1.bf16.msra.mxu0 %v6068_v40 }
 0xf17   : > { %3409 = vadd.xlane.f32.xlu0 %v3391_v58  ;;  %v3392_v59 = vmul.f32 %v8307_v18, %v8307_v18  ;;  %3627 = vmatprep.subr.bf16.mxu1 %v6073_v12 }
 0xf18   : > { %4088 = vmatprep.subr.bf16.mxu0 %v6076_v8 }
 0xf19   : > { %3411 = vadd.xlane.f32.xlu1 %v3392_v59 }
 0xf1a   : > { %3628 = vmatpush1.bf16.msra.mxu1 %v6071_v34  ;;  %4089 = vmatpush1.bf16.msra.mxu0 %v6074_v37 }
 0xf1b   : > { %3629 = vmatprep.subr.bf16.mxu1 %v6079_v47  ;;  %4090 = vmatprep.subr.bf16.mxu0 %v6082_v55 }
 0xf1e   : > { %3630 = vmatpush1.bf16.msra.mxu1 %v6077_v50  ;;  %4091 = vmatpush1.bf16.msra.mxu0 %v6080_v53  ;;  %v8372_v50 = vld [vmem:[%s9447_s28] ss:$0 sm:$0xff] }
 0xf1f   : > { %3631 = vmatprep.subr.bf16.mxu1 %v6085_v38  ;;  %4092 = vmatprep.subr.bf16.mxu0 %v6088_v7 }
 0xf22   : > { %3632 = vmatpush1.bf16.msra.mxu1 %v6083_v35  ;;  %4093 = vmatpush1.bf16.msra.mxu0 %v6086_v44 }
 0xf23   : > { %3633 = vmatprep.subr.bf16.mxu1 %v6091_v28  ;;  %4094 = vmatprep.subr.bf16.mxu0 %v6094_v61 }
 0xf26   : > { %3634 = vmatpush1.bf16.msra.mxu1 %v6089_v56  ;;  %4095 = vmatpush1.bf16.msra.mxu0 %v6092_v4 }
 0xf3e   : > { %v3353_v25 = vpop.xlane.xlu0 %3352 }
 0xf3f   : > { %v3369_v24 = vmul.f32 0.0078125, %v3353_v25 }
 0xf40   : > { %v3355_v43 = vpop.xlane.xlu1 %3354 }
 0xf41   : > { %v8338_v1 = vsub.f32 %v8244_v14, %v3369_v24  ;;  %v3370_v2 = vmul.f32 0.0078125, %v3355_v43 }
 0xf42   : > { %v3357_v32 = vpop.xlane.xlu0 %3356 }
 0xf43   : > { %v8341_v9 = vsub.f32 %v8249_v42, %v3370_v2  ;;  %v3371_v46 = vmul.f32 0.0078125, %v3357_v32  ;;  %v3393_v51 = vmul.f32 %v8338_v1, %v8338_v1 }
 0xf44   : > { %v3359_v30 = vpop.xlane.xlu1 %3358 }
 0xf45   : > { %v8346_v3 = vsub.f32 %v8255_v5, %v3371_v46  ;;  %v3372_v16 = vmul.f32 0.0078125, %v3359_v30  ;;  %3413 = vadd.xlane.f32.xlu0 %v3393_v51  ;;  %v3394_v62 = vmul.f32 %v8341_v9, %v8341_v9 }
 0xf47   : > { %v8351_v14 = vsub.f32 %v8261_v10, %v3372_v16  ;;  %3415 = vadd.xlane.f32.xlu1 %v3394_v62  ;;  %v3395_v42 = vmul.f32 %v8346_v3, %v8346_v3 }
 0xf49   : > { %3417 = vadd.xlane.f32.xlu0 %v3395_v42  ;;  %v3396_v31 = vmul.f32 %v8351_v14, %v8351_v14 }
 0xf4b   : > { %3419 = vadd.xlane.f32.xlu1 %v3396_v31 }
 0xf94   : > { %v3398_v6 = vpop.xlane.xlu0 %3397 }
 0xf95   : > { %v3421_v5 = vmul.f32 0.0078125, %v3398_v6 }
 0xf96   : > { %v3400_v26 = vpop.xlane.xlu1 %3399 }
 0xf97   : > { %v3433_v39 = vadd.f32 1e-12, %v3421_v5  ;;  %v3422_v0 = vmul.f32 0.0078125, %v3400_v26 }
 0xf98   : > { %v3402_v13 = vpop.xlane.xlu0 %3401 }
 0xf99   : > { %6319 = vrsqrt.f32 %v3433_v39  ;;  %v3434_v21 = vadd.f32 1e-12, %v3422_v0  ;;  %v3423_v10 = vmul.f32 0.0078125, %v3402_v13 }
 0xf9b   : > { %6321 = vrsqrt.f32 %v3434_v21  ;;  %v3435_v23 = vadd.f32 1e-12, %v3423_v10 }
 0xf9c   : > { %v3404_v36 = vpop.xlane.xlu1 %3403 }
 0xf9d   : > { %6323 = vrsqrt.f32 %v3435_v23  ;;  %v3424_v60 = vmul.f32 0.0078125, %v3404_v36 }
 0xf9f   : > { %v3436_v57 = vadd.f32 1e-12, %v3424_v60 }
 0xfa0   : > { %v3406_v33 = vpop.xlane.xlu0 %3405 }
 0xfa1   : > { %6325 = vrsqrt.f32 %v3436_v57  ;;  %v3425_v58 = vmul.f32 0.0078125, %v3406_v33 }
 0xfa2   : > { %v3408_v20 = vpop.xlane.xlu1 %3407 }
 0xfa3   : > { %v6320_v63 = vpop.eup %6319  ;;  %v3437_v29 = vadd.f32 1e-12, %v3425_v58  ;;  %v3426_v59 = vmul.f32 0.0078125, %v3408_v20 }
 0xfa4   : > { %v3457_v19 = vmul.f32 %v6320_v63, %v8274_v22  ;;  %v3410_v15 = vpop.xlane.xlu0 %3409 }
 0xfa5   : > { %v6322_v27 = vpop.eup %6321  ;;  %6327 = vrsqrt.f32 %v3437_v29  ;;  %v3438_v40 = vadd.f32 1e-12, %v3426_v59  ;;  %v3427_v12 = vmul.f32 0.0078125, %v3410_v15 }
 0xfa6   : > { %v3475_v8 = vmul.f32 %v8362_v17, %v3457_v19  ;;  %v3458_v34 = vmul.f32 %v6322_v27, %v8277_v54  ;;  %v3412_v37 = vpop.xlane.xlu1 %3411 }
 0xfa7   : > { %v6324_v47 = vpop.eup %6323  ;;  %6329 = vrsqrt.f32 %v3438_v40  ;;  %v3428_v55 = vmul.f32 0.0078125, %v3412_v37  ;;  %v3439_v53 = vadd.f32 1e-12, %v3427_v12 }
 0xfa8   : > { %v3476_v22 = vmul.f32 %v8362_v17, %v3458_v34  ;;  %v8376_v7 = vadd.f32 %v8372_v50, %v3475_v8  ;;  %v3459_v54 = vmul.f32 %v6324_v47, %v8282_v45 }
 0xfa9   : > { %v3440_v38 = vadd.f32 1e-12, %v3428_v55 }
 0xfaa   : > { %9448 = vst [vmem:[#allocation26_spill] sm:$0xff] %v8376_v7  ;;  %v8379_v35 = vadd.f32 %v8372_v50, %v3476_v22  ;;  %v3477_v56 = vmul.f32 %v8362_v17, %v3459_v54  ;;  %v8462_v54 = vld [vmem:[%s6787_s25 + $0x48] sm:$0xff]  }
 0xfab   : > { %v6326_v44 = vpop.eup %6325  ;;  %6331 = vrsqrt.f32 %v3440_v38  ;;  %v8457_v38 = vld [vmem:[%s6787_s25] sm:$0xff]   ;;  %9461 = vst [vmem:[#allocation22_spill] sm:$0xff] %v8462_v54 }
 0xfac   : > { %9449 = vst [vmem:[#allocation25_spill] sm:$0xff] %v8379_v35  ;;  %v3505_v28 = vpack.c.bf16 %v8379_v35, %v8376_v7  ;;  %v3460_v61 = vmul.f32 %v6326_v44, %v8289_v48  ;;  %6333 = vrsqrt.f32 %v3439_v53  ;;  %v8393_v43 = vadd.f32 %v8372_v50, %v3477_v56  ;;  %v6096_v53 = vld [vmem:[%s6787_s25 + $0x40] sm:$0xff]   ;;  %9460 = vst [vmem:[#allocation24_spill] sm:$0xff] %v8457_v38  ;;  %v6101_v44 = vld [vmem:[%s6787_s25 + $0x88] sm:$0xff]  }
 0xfad   : > { %5502 = vmatprep.subr.bf16.mxu0 %v6096_v53  ;;  %v8472_v56 = vld [vmem:[%s6787_s25 + $0x50] sm:$0xff]  }
 0xfae   : > { %3652 = vmatmul.mubr.bf16.vlgmr.msra.gmra.mrb[60].mxu1 %v3505_v28  ;;  %4113 = vmatmul.mubr.bf16.vlgmr.msra.gmra.mrb[84].mxu0 %v3505_v28  ;;  %v3478_v4 = vmul.f32 %v8362_v17, %v3460_v61  ;;  %9451 = vst [vmem:[#allocation13_spill] sm:$0xff] %v8393_v43  ;;  %v8466_v28 = vld [vmem:[%s6787_s25 + $0x8] sm:$0xff]   ;;  %v6103_v61 = vld [vmem:[%s6787_s25 + $0xd0] sm:$0xff]   ;;  %9463 = vst [vmem:[#allocation28_spill] sm:$0xff] %v8472_v56 }
 0xfaf   : > { %v6328_v25 = vpop.eup %6327  ;;  %3661 = vmatprep.mubr.bf16.mxu1 %v9423_v41  ;;  %4122 = vmatprep.mubr.bf16.mxu0 %v9423_v41  ;;  %9462 = vst [vmem:[#allocation27_spill] sm:$0xff] %v8466_v28 }
 0xfb0   : > { %v8390_v45 = vadd.f32 %v8372_v50, %v3478_v4  ;;  %v3461_v48 = vmul.f32 %v6328_v25, %v8294_v11  ;;  %5503 = vmatpush3.bf16.msra.mxu0 %v8457_v38  ;;  %v6105_v4 = vld [vmem:[%s6787_s25 + $0x90] sm:$0xff]  }
 0xfb1   : > { %v6330_v24 = vpop.eup %6329  ;;  %5504 = vmatprep.subr.bf16.mxu0 %v8462_v54  ;;  %v8477_v25 = vld [vmem:[%s6787_s25 + $0x10] sm:$0xff]  }
 0xfb2   : > { %9450 = vst [vmem:[#allocation15_spill] sm:$0xff] %v8390_v45  ;;  %v3462_v2 = vmul.f32 %v6330_v24, %v8297_v52  ;;  %v3506_v32 = vpack.c.bf16 %v8390_v45, %v8393_v43  ;;  %v3479_v30 = vmul.f32 %v8362_v17, %v3461_v48  ;;  %9464 = vst [vmem:[#allocation29_spill] sm:$0xff] %v8477_v25  ;;  %v6107_v24 = vld [vmem:[%s6787_s25 + $0xd8] sm:$0xff]  }
 0xfb3   : > { %v8482_v48 = vld [vmem:[%s6787_s25 + $0x58] sm:$0xff]  }
 0xfb4   : > { %v3480_v46 = vmul.f32 %v8362_v17, %v3462_v2  ;;  %v8408_v52 = vadd.f32 %v8372_v50, %v3479_v30  ;;  %5505 = vmatpush3.bf16.msra.mxu0 %v8466_v28  ;;  %9465 = vst [vmem:[#allocation30_spill] sm:$0xff] %v8482_v48  ;;  %v6109_v2 = vld [vmem:[%s6787_s25 + $0x98] sm:$0xff]   ;;  %v6113_v30 = vld [vmem:[%s6787_s25 + $0xa0] sm:$0xff]  }
 0xfb5   : > { %v6332_v51 = vpop.eup %6331  ;;  %5506 = vmatprep.subr.bf16.mxu0 %v8472_v56 }
 0xfb6   : > { %3662 = vmatmul.mubr.bf16.gmra.mrb[64].mxu1 %v3506_v32  ;;  %4123 = vmatmul.mubr.bf16.gmra.mrb[88].mxu0 %v3506_v32  ;;  %v6334_v16 = vpop.eup %6333  ;;  %v8404_v62 = vadd.f32 %v8372_v50, %v3480_v46  ;;  %v3464_v11 = vmul.f32 %v6332_v51, %v8307_v18  ;;  %9453 = vst [vmem:[#allocation14_spill] sm:$0xff] %v8408_v52  ;;  %v8486_v32 = vld [vmem:[%s6787_s25 + $0x18] sm:$0xff]   ;;  %v6111_v46 = vld [vmem:[%s6787_s25 + $0xe0] sm:$0xff]  }
 0xfb7   : > { %3671 = vmatprep.mubr.bf16.mxu1 %v9423_v41  ;;  %4132 = vmatprep.mubr.bf16.mxu0 %v9423_v41  ;;  %v3463_v42 = vmul.f32 %v6334_v16, %v8302_v49  ;;  %9466 = vst [vmem:[#allocation31_spill] sm:$0xff] %v8486_v32  ;;  %v8492_v51 = vld [vmem:[%s6787_s25 + $0x60] sm:$0xff]  }
 0xfb8   : > { %9452 = vst [vmem:[#allocation16_spill] sm:$0xff] %v8404_v62  ;;  %v3507_v31 = vpack.c.bf16 %v8404_v62, %v8408_v52  ;;  %v3482_v6 = vmul.f32 %v8362_v17, %v3464_v11  ;;  %5507 = vmatpush3.bf16.msra.mxu0 %v8477_v25  ;;  %9467 = vst [vmem:[#allocation32_spill] sm:$0xff] %v8492_v51  ;;  %v8496_v16 = vld [vmem:[%s6787_s25 + $0x20] sm:$0xff]   ;;  %v6115_v11 = vld [vmem:[%s6787_s25 + $0xe8] sm:$0xff]  }
 0xfb9   : > { %v3481_v5 = vmul.f32 %v8362_v17, %v3463_v42  ;;  %5508 = vmatprep.subr.bf16.mxu0 %v8482_v48  ;;  %9468 = vst [vmem:[#allocation33_spill] sm:$0xff] %v8496_v16  ;;  %v8502_v42 = vld [vmem:[%s6787_s25 + $0x68] sm:$0xff]  }
 0xfba   : > { %v8418_v18 = vadd.f32 %v8372_v50, %v3482_v6  ;;  %9469 = vst [vmem:[#allocation34_spill] sm:$0xff] %v8502_v42  ;;  %v8506_v6 = vld [vmem:[%s6787_s25 + $0x28] sm:$0xff]  }
 0xfbb   : > { %v8421_v26 = vadd.f32 %v8372_v50, %v3481_v5  ;;  %9470 = vst [vmem:[#allocation35_spill] sm:$0xff] %v8506_v6  ;;  %v6119_v5 = vld [vmem:[%s6787_s25 + $0xf0] sm:$0xff]  }
 0xfbc   : > { %9454 = vst [vmem:[#allocation19_spill] sm:$0xff] %v8418_v18  ;;  %5509 = vmatpush3.bf16.msra.mxu0 %v8486_v32 }
 0xfbd   : > { %9455 = vst [vmem:[#allocation17_spill] sm:$0xff] %v8421_v26  ;;  %v3508_v49 = vpack.c.bf16 %v8418_v18, %v8421_v26  ;;  %5510 = vmatprep.subr.bf16.mxu0 %v8492_v51 }
 0xfbe   : > { %3672 = vmatmul.mubr.bf16.gmra.mrb[68].mxu1 %v3507_v31  ;;  %4133 = vmatmul.mubr.bf16.gmra.mrb[92].mxu0 %v3507_v31  ;;  %v6117_v31 = vld [vmem:[%s6787_s25 + $0xa8] sm:$0xff]  }
 0xfbf   : > { %3681 = vmatprep.mubr.bf16.mxu1 %v9423_v41  ;;  %4142 = vmatprep.mubr.bf16.mxu0 %v9423_v41 }
 0xfc0   : > { %5511 = vmatpush3.bf16.msra.mxu0 %v8496_v16 }
 0xfc1   : > { %5512 = vmatprep.subr.bf16.mxu0 %v8502_v42 }
 0xfc4   : > { %5513 = vmatpush3.bf16.msra.mxu0 %v8506_v6 }
 0xfc6   : > { %3682 = vmatmul.mubr.bf16.gmra.mrb[72].mxu1 %v3508_v49  ;;  %4143 = vmatmul.mubr.bf16.gmra.mrb[96].mxu0 %v3508_v49  ;;  %v8512_v49 = vld [vmem:[%s6787_s25 + $0x70] sm:$0xff]  }
 0xfc7   : > { %3691 = vmatprep.mubr.bf16.mxu1 %v9423_v41  ;;  %4152 = vmatprep.mubr.bf16.mxu0 %v9423_v41  ;;  %9471 = vst [vmem:[#allocation36_spill] sm:$0xff] %v8512_v49 }
 0xfc8   : > { %5514 = vmatprep.subr.bf16.mxu0 %v8512_v49 }
 0xfd2   : > { %v3414_v39 = vpop.xlane.xlu0 %3413 }
 0xfd3   : > { %v3429_v0 = vmul.f32 0.0078125, %v3414_v39  ;;  %v6121_v39 = vld [vmem:[%s6787_s25 + $0xb0] sm:$0xff]  }
 0xfd4   : > { %v3416_v13 = vpop.xlane.xlu1 %3415 }
 0xfd5   : > { %v3441_v21 = vadd.f32 1e-12, %v3429_v0  ;;  %v3430_v10 = vmul.f32 0.0078125, %v3416_v13  ;;  %v8516_v0 = vld [vmem:[%s6787_s25 + $0x30] sm:$0xff]   ;;  %v6123_v13 = vld [vmem:[%s6787_s25 + $0xf8] sm:$0xff]  }
 0xfd6   : > { %v3418_v23 = vpop.xlane.xlu0 %3417  ;;  %9472 = vst [vmem:[#allocation37_spill] sm:$0xff] %v8516_v0  ;;  %5515 = vmatpush3.bf16.msra.mxu0 %v8516_v0 }
 0xfd7   : > { %6335 = vrsqrt.f32 %v3441_v21  ;;  %v3442_v36 = vadd.f32 1e-12, %v3430_v10  ;;  %v3431_v60 = vmul.f32 0.0078125, %v3418_v23  ;;  %v8522_v21 = vld [vmem:[%s6787_s25 + $0x78] sm:$0xff]  }
 0xfd8   : > { %v3420_v57 = vpop.xlane.xlu1 %3419  ;;  %9473 = vst [vmem:[#allocation38_spill] sm:$0xff] %v8522_v21  ;;  %v6125_v10 = vld [vmem:[%s6787_s25 + $0xb8] sm:$0xff]   ;;  %5516 = vmatprep.subr.bf16.mxu0 %v8522_v21 }
 0xfd9   : > { %6337 = vrsqrt.f32 %v3442_v36  ;;  %v3443_v33 = vadd.f32 1e-12, %v3431_v60  ;;  %v3432_v58 = vmul.f32 0.0078125, %v3420_v57  ;;  %v8526_v23 = vld [vmem:[%s6787_s25 + $0x38] sm:$0xff]   ;;  %v3527_v36 = vld [vmem:[%s6782_s27] sm:$0x3] }
 0xfda   : > { %9474 = vst [vmem:[#allocation39_spill] sm:$0xff] %v8526_v23  ;;  %5517 = vmatpush3.bf16.msra.mxu0 %v8526_v23  ;;  %v3988_v60 = vld [vmem:[%s6782_s27 + $0x2] sm:$0x3] }
 0xfdb   : > { %6339 = vrsqrt.f32 %v3443_v33  ;;  %v3444_v20 = vadd.f32 1e-12, %v3432_v58  ;;  %v9475_v57 = vld [vmem:[#allocation11_spill] sm:$0xff] }
 0xfdc   : > { %v8533_v33 = vrot.slane %v3527_v36, %v9475_v57  ;;  %v8536_v58 = vrot.slane %v3988_v60, %v9475_v57 }
 0xfdd   : > { %6341 = vrsqrt.f32 %v3444_v20  ;;  %v9478_v20 = vld [vmem:[#allocation12_spill] sm:$0xff] }
 0xfde   : > { %9476 = vst [vmem:[#allocation11_spill] sm:$0xff] %v8533_v33  ;;  %9477 = vst [vmem:[#allocation40_spill] sm:$0xff] %v8536_v58 }
 0xfe1   : > { %v6336_v63 = vpop.eup %6335 }
 0xfe2   : > { %v3465_v29 = vmul.f32 %v6336_v63, %v8338_v1  ;;  %v8539_v63 = vrot.slane %v3527_v36, %v9478_v20 }
 0xfe3   : > { %v6338_v59 = vpop.eup %6337 }
 0xfe4   : > { %v3466_v19 = vmul.f32 %v6338_v59, %v8341_v9  ;;  %v3483_v15 = vmul.f32 %v8362_v17, %v3465_v29  ;;  %9479 = vst [vmem:[#allocation12_spill] sm:$0xff] %v8539_v63  ;;  %v8542_v29 = vrot.slane %v3988_v60, %v9478_v20 }
 0xfe5   : > { %v6340_v27 = vpop.eup %6339 }
 0xfe6   : > { %v3484_v40 = vmul.f32 %v8362_v17, %v3466_v19  ;;  %v8432_v8 = vadd.f32 %v8372_v50, %v3483_v15  ;;  %v3467_v37 = vmul.f32 %v6340_v27, %v8346_v3  ;;  %9480 = vst [vmem:[#allocation41_spill] sm:$0xff] %v8542_v29 }
 0xfe7   : > { %v6342_v12 = vpop.eup %6341 }
 0xfe8   : > { %9456 = vst [vmem:[#allocation20_spill] sm:$0xff] %v8432_v8  ;;  %v8435_v34 = vadd.f32 %v8372_v50, %v3484_v40  ;;  %v3468_v1 = vmul.f32 %v6342_v12, %v8351_v14  ;;  %v3485_v55 = vmul.f32 %v8362_v17, %v3467_v37 }
 0xfea   : > { %9457 = vst [vmem:[#allocation18_spill] sm:$0xff] %v8435_v34  ;;  %v3509_v9 = vpack.c.bf16 %v8435_v34, %v8432_v8  ;;  %v3486_v47 = vmul.f32 %v8362_v17, %v3468_v1  ;;  %v8449_v14 = vadd.f32 %v8372_v50, %v3485_v55  ;;  %v6095_v17 = vld [vmem:[%s6787_s25 + $0xc0] sm:$0xff]  }
 0xfeb   : > { %5450 = vmatprep.subr.bf16.mxu1 %v6095_v17 }
 0xfec   : > { %3692 = vmatmul.mubr.bf16.gmra.mrb[76].mxu1 %v3509_v9  ;;  %4153 = vmatmul.mubr.bf16.gmra.mrb[100].mxu0 %v3509_v9  ;;  %v8446_v3 = vadd.f32 %v8372_v50, %v3486_v47  ;;  %9459 = vst [vmem:[#allocation21_spill] sm:$0xff] %v8449_v14  ;;  %v6099_v50 = vld [vmem:[%s6787_s25 + $0xc8] sm:$0xff]  }
 0xfed   : > { %3701 = vmatprep.mubr.bf16.mxu1 %v9423_v41  ;;  %4162 = vmatprep.mubr.bf16.mxu0 %v9423_v41  ;;  %v6097_v41 = vld [vmem:[%s6787_s25 + $0x80] sm:$0xff]  }
 0xfee   : > { %9458 = vst [vmem:[#allocation23_spill] sm:$0xff] %v8446_v3  ;;  %v3510_v22 = vpack.c.bf16 %v8446_v3, %v8449_v14  ;;  %5451 = vmatpush3.bf16.msra.mxu1 %v6097_v41 }
 0xfef   : > { %5452 = vmatprep.subr.bf16.mxu1 %v6099_v50 }
 0xff2   : > { %5453 = vmatpush3.bf16.msra.mxu1 %v6101_v44 }
 0xff3   : > { %5454 = vmatprep.subr.bf16.mxu1 %v6103_v61 }
 0xff4   : > { %3702 = vmatmul.mubr.bf16.gmra.mrb[80].mxu1 %v3510_v22  ;;  %4163 = vmatmul.mubr.bf16.gmra.mrb[104].mxu0 %v3510_v22 }
 0xff6   : > { %5455 = vmatpush3.bf16.msra.mxu1 %v6105_v4 }
 0xff7   : > { %5456 = vmatprep.subr.bf16.mxu1 %v6107_v24 }
 0xffa   : > { %5457 = vmatpush3.bf16.msra.mxu1 %v6109_v2 }
 0xffb   : > { %5458 = vmatprep.subr.bf16.mxu1 %v6111_v46 }
 0xffe   : > { %5459 = vmatpush3.bf16.msra.mxu1 %v6113_v30 }
 0xfff   : > { %5460 = vmatprep.subr.bf16.mxu1 %v6115_v11 }
0x1002   : > { %5461 = vmatpush3.bf16.msra.mxu1 %v6117_v31 }
0x1003   : > { %5462 = vmatprep.subr.bf16.mxu1 %v6119_v5 }
0x1006   : > { %5463 = vmatpush3.bf16.msra.mxu1 %v6121_v39 }
0x1007   : > { %5464 = vmatprep.subr.bf16.mxu1 %v6123_v13 }
0x100a   : > { %5465 = vmatpush3.bf16.msra.mxu1 %v6125_v10 }
0x100b   : > { %5802 = vmatprep.subr.bf16.mxu1 %v6096_v53 }
0x1081   : > { %v3653_v59 = vpop.f32.mrb[60].mxu1  ;;  %v4114_v19 = vpop.f32.mrb[84].mxu0 }
0x1082   : > { %v3654_v15 = vadd.f32 %v3653_v59, %v8533_v33  ;;  %v4115_v27 = vadd.f32 %v4114_v19, %v8536_v58  ;;  %v3655_v40 = vpop.f32.mrb[61].mxu1  ;;  %v4116_v12 = vpop.f32.mrb[85].mxu0 }
0x1083   : > { %v8547_v37 = vadd.f32 %v3655_v40, %v8539_v63  ;;  %v8550_v1 = vadd.f32 %v4116_v12, %v8542_v29  ;;  %v3657_v9 = vpop.f32.mrb[62].mxu1  ;;  %v4118_v47 = vpop.f32.mrb[86].mxu0 }
0x1084   : > { %v3736_v55 = vmul.f32 0.044715, %v3654_v15  ;;  %v4197_v22 = vmul.f32 0.044715, %v4115_v27  ;;  %v3658_v53 = vadd.f32 %v3657_v9, %v8533_v33  ;;  %v4119_v41 = vadd.f32 %v4118_v47, %v8536_v58  ;;  %v3659_v50 = vpop.f32.mrb[63].mxu1  ;;  %v4120_v44 = vpop.f32.mrb[87].mxu0 }
0x1085   : > { %v3737_v17 = vmul.f32 0.044715, %v8547_v37  ;;  %v4198_v24 = vmul.f32 0.044715, %v8550_v1  ;;  %v8557_v2 = vadd.f32 %v3659_v50, %v8539_v63  ;;  %v8560_v5 = vadd.f32 %v4120_v44, %v8542_v29 }
0x1086   : > { %v3760_v61 = vmul.f32 %v3736_v55, %v3654_v15  ;;  %v4221_v4 = vmul.f32 %v4197_v22, %v4115_v27  ;;  %v3738_v46 = vmul.f32 0.044715, %v3658_v53  ;;  %v4199_v31 = vmul.f32 0.044715, %v4119_v41 }
0x1087   : > { %v3761_v39 = vmul.f32 %v3737_v17, %v8547_v37  ;;  %v4222_v57 = vmul.f32 %v4198_v24, %v8550_v1  ;;  %v3739_v59 = vmul.f32 0.044715, %v8557_v2  ;;  %v8571_v50 = vmul.f32 0.5, %v3654_v15 }
0x1088   : > { %v3784_v30 = vmul.f32 %v3760_v61, %v3654_v15  ;;  %v4245_v11 = vmul.f32 %v4221_v4, %v4115_v27  ;;  %v3762_v13 = vmul.f32 %v3738_v46, %v3658_v53  ;;  %v4223_v20 = vmul.f32 %v4199_v31, %v4119_v41 }
0x1089   : > { %v3663_v10 = vpop.f32.mrb[64].mxu1  ;;  %v4124_v36 = vpop.f32.mrb[88].mxu0  ;;  %v8573_v44 = vmul.f32 0.5, %v4115_v27  ;;  %v4200_v4 = vmul.f32 0.044715, %v8560_v5  ;;  %v8589_v14 = vmul.f32 %v4222_v57, %v8550_v1 }
0x108a   : > { %v3808_v60 = vadd.f32 %v3784_v30, %v3654_v15  ;;  %v3665_v19 = vpop.f32.mrb[65].mxu1  ;;  %v4126_v40 = vpop.f32.mrb[89].mxu0  ;;  %v4269_v12 = vadd.f32 %v4245_v11, %v4115_v27  ;;  %v3786_v9 = vmul.f32 %v3762_v13, %v3658_v53  ;;  %v8566_v47 = vadd.f32 %v3663_v10, %v8533_v33 }
0x108b   : > { %v8569_v55 = vadd.f32 %v4124_v36, %v8536_v58  ;;  %v3667_v22 = vpop.f32.mrb[66].mxu1  ;;  %v4128_v17 = vpop.f32.mrb[90].mxu0  ;;  %v4247_v61 = vmul.f32 %v4223_v20, %v4119_v41  ;;  %v8576_v11 = vmul.f32 0.5, %v3658_v53  ;;  %v8578_v13 = vmul.f32 0.5, %v4119_v41 }
0x108c   : > { %9481 = vst [vmem:[#allocation42_spill] sm:$0xff] %v8566_v47  ;;  %v3669_v24 = vpop.f32.mrb[67].mxu1  ;;  %v4130_v46 = vpop.f32.mrb[91].mxu0  ;;  %v3832_v30 = vmul.f32 0.7978846, %v3808_v60  ;;  %v3810_v31 = vadd.f32 %v3786_v9, %v3658_v53  ;;  %v8583_v15 = vadd.f32 %v3665_v19, %v8539_v63  ;;  %v8586_v20 = vmul.f32 %v3761_v39, %v8547_v37 }
0x108d   : > { %v4271_v10 = vadd.f32 %v4247_v61, %v4119_v41  ;;  %v3740_v36 = vmul.f32 0.044715, %v8566_v47  ;;  %v4201_v3 = vmul.f32 0.044715, %v8569_v55  ;;  %v4293_v27 = vmul.f32 0.7978846, %v4269_v12 }
0x108e   : > { %v3763_v60 = vmul.f32 %v3739_v59, %v8557_v2  ;;  %v4224_v53 = vmul.f32 %v4200_v4, %v8560_v5  ;;  %v3741_v41 = vmul.f32 0.044715, %v8583_v15  ;;  %v8595_v9 = vadd.f32 %v4126_v40, %v8542_v29 }
0x108f   : > { %v8598_v61 = vadd.f32 %v3667_v22, %v8533_v33  ;;  %6343 = vtanh.f32 %v3832_v30  ;;  %v3834_v19 = vmul.f32 0.7978846, %v3810_v31  ;;  %v4295_v12 = vmul.f32 0.7978846, %v4271_v10 }
0x1090   : > { %v8601_v39 = vadd.f32 %v4128_v17, %v8536_v58  ;;  %v3764_v59 = vmul.f32 %v3740_v36, %v8566_v47  ;;  %v4225_v4 = vmul.f32 %v4201_v3, %v8569_v55  ;;  %v4202_v8 = vmul.f32 0.044715, %v8595_v9 }
0x1091   : > { %9482 = vst [vmem:[#allocation43_spill] sm:$0xff] %v8598_v61  ;;  %v3673_v57 = vpop.f32.mrb[68].mxu1  ;;  %v4134_v34 = vpop.f32.mrb[92].mxu0  ;;  %v3742_v40 = vmul.f32 0.044715, %v8598_v61  ;;  %v3765_v22 = vmul.f32 %v3741_v41, %v8583_v15  ;;  %v8610_v31 = vadd.f32 %v3669_v24, %v8539_v63  ;;  %v8613_v17 = vadd.f32 %v4130_v46, %v8542_v29 }
0x1092   : > { %9483 = vst [vmem:[#allocation44_spill] sm:$0xff] %v8601_v39  ;;  %v3675_v18 = vpop.f32.mrb[69].mxu1  ;;  %v4136_v26 = vpop.f32.mrb[93].mxu0  ;;  %v4203_v30 = vmul.f32 0.044715, %v8601_v39  ;;  %6345 = vtanh.f32 %v4293_v27  ;;  %v8616_v3 = vmul.f32 %v3763_v60, %v8557_v2  ;;  %v8619_v62 = vadd.f32 %v3673_v57, %v8533_v33 }
0x1093   : > { %v3677_v10 = vpop.f32.mrb[70].mxu1  ;;  %v4138_v36 = vpop.f32.mrb[94].mxu0  ;;  %v8622_v52 = vadd.f32 %v4134_v34, %v8536_v58  ;;  %6347 = vtanh.f32 %v3834_v19  ;;  %v8625_v24 = vmul.f32 %v4224_v53, %v8560_v5  ;;  %v4226_v46 = vmul.f32 %v4202_v8, %v8595_v9 }
0x1094   : > { %v3679_v41 = vpop.f32.mrb[71].mxu1  ;;  %v4140_v45 = vpop.f32.mrb[95].mxu0  ;;  %v3743_v43 = vmul.f32 0.044715, %v8610_v31  ;;  %v8630_v27 = vmul.f32 %v3764_v59, %v8566_v47  ;;  %v3766_v60 = vmul.f32 %v3742_v40, %v8598_v61  ;;  %v4204_v57 = vmul.f32 0.044715, %v8613_v17 }
0x1095   : > { %v8635_v34 = vadd.f32 %v3675_v18, %v8539_v63  ;;  %6349 = vtanh.f32 %v4295_v12  ;;  %v8638_v19 = vmul.f32 %v4225_v4, %v8569_v55  ;;  %v8641_v53 = vmul.f32 %v3765_v22, %v8583_v15 }
0x1096   : > { %9484 = vst [vmem:[#allocation45_spill] sm:$0xff] %v8630_v27  ;;  %v4227_v8 = vmul.f32 %v4203_v30, %v8601_v39  ;;  %v3744_v35 = vmul.f32 0.044715, %v8619_v62  ;;  %v4205_v59 = vmul.f32 0.044715, %v8622_v52  ;;  %v8647_v40 = vadd.f32 %v4136_v26, %v8542_v29 }
0x1097   : > { %9485 = vst [vmem:[#allocation46_spill] sm:$0xff] %v8638_v19  ;;  %v8650_v7 = vadd.f32 %v3677_v10, %v8533_v33  ;;  %v8653_v18 = vmul.f32 %v4226_v46, %v8595_v9  ;;  %v3767_v12 = vmul.f32 %v3743_v43, %v8610_v31  ;;  %v3745_v4 = vmul.f32 0.044715, %v8635_v34 }
0x1098   : > { %v8658_v22 = vadd.f32 %v4138_v36, %v8536_v58  ;;  %v8661_v21 = vmul.f32 %v3766_v60, %v8598_v61  ;;  %v4228_v26 = vmul.f32 %v4204_v57, %v8613_v17  ;;  %v4206_v10 = vmul.f32 0.044715, %v8647_v40 }
0x1099   : > { %v3683_v30 = vpop.f32.mrb[72].mxu1  ;;  %v4144_v23 = vpop.f32.mrb[96].mxu0  ;;  %v3746_v0 = vmul.f32 0.044715, %v8650_v7  ;;  %v8670_v36 = vadd.f32 %v3679_v41, %v8539_v63  ;;  %v8673_v42 = vadd.f32 %v4140_v45, %v8542_v29  ;;  %v8679_v51 = vmul.f32 %v4227_v8, %v8601_v39 }
0x109a   : > { %9486 = vst [vmem:[#allocation47_spill] sm:$0xff] %v8661_v21  ;;  %v3685_v46 = vpop.f32.mrb[73].mxu1  ;;  %v4146_v49 = vpop.f32.mrb[97].mxu0  ;;  %v4207_v43 = vmul.f32 0.044715, %v8658_v22  ;;  %v8676_v60 = vadd.f32 %v3683_v30, %v8533_v33  ;;  %v3768_v32 = vmul.f32 %v3744_v35, %v8619_v62  ;;  %v4229_v48 = vmul.f32 %v4205_v59, %v8622_v52 }
0x109b   : > { %v8666_v6 = vpop.eup %6343  ;;  %v3687_v57 = vpop.f32.mrb[74].mxu1  ;;  %9488 = vst [vmem:[#allocation49_spill] sm:$0xff] %v8679_v51  ;;  %v8684_v25 = vadd.f32 %v4144_v23, %v8536_v58  ;;  %v8687_v45 = vmul.f32 %v3767_v12, %v8610_v31  ;;  %v3747_v30 = vmul.f32 0.044715, %v8670_v36  ;;  %v4208_v28 = vmul.f32 0.044715, %v8673_v42 }
0x109c   : > { %9487 = vst [vmem:[#allocation48_spill] sm:$0xff] %v8676_v60  ;;  %v4148_v16 = vpop.f32.mrb[98].mxu0  ;;  %v3689_v41 = vpop.f32.mrb[75].mxu1  ;;  %v3748_v54 = vmul.f32 0.044715, %v8676_v60  ;;  %v8693_v38 = vmul.f32 %v4228_v26, %v8613_v17  ;;  %v3769_v35 = vmul.f32 %v3745_v4, %v8635_v34  ;;  %v8698_v59 = vadd.f32 %v3685_v46, %v8539_v63 }
0x109d   : > { %v4150_v56 = vpop.f32.mrb[99].mxu0  ;;  %v6346_v8 = vpop.eup %6345  ;;  %v4209_v23 = vmul.f32 0.044715, %v8684_v25  ;;  %v4230_v12 = vmul.f32 %v4206_v10, %v8647_v40  ;;  %v3770_v61 = vmul.f32 %v3746_v0, %v8650_v7  ;;  %v4231_v27 = vmul.f32 %v4207_v43, %v8658_v22 }
0x109e   : > { %v6348_v21 = vpop.eup %6347  ;;  %v3771_v47 = vmul.f32 %v3747_v30, %v8670_v36  ;;  %v4232_v51 = vmul.f32 %v4208_v28, %v8673_v42  ;;  %v3749_v26 = vmul.f32 0.044715, %v8698_v59  ;;  %v8707_v4 = vadd.f32 %v4146_v49, %v8542_v29 }
0x109f   : > { %v8710_v39 = vadd.f32 %v3687_v57, %v8533_v33  ;;  %v6350_v46 = vpop.eup %6349  ;;  %v8713_v19 = vmul.f32 %v3768_v32, %v8619_v62  ;;  %v8716_v0 = vmul.f32 %v4229_v48, %v8622_v52  ;;  %v3772_v10 = vmul.f32 %v3748_v54, %v8676_v60 }
0x10a0   : > { %v8720_v43 = vadd.f32 %v4148_v16, %v8536_v58  ;;  %v8723_v28 = vmul.f32 %v3769_v35, %v8635_v34  ;;  %v4233_v49 = vmul.f32 %v4209_v23, %v8684_v25  ;;  %v3773_v57 = vmul.f32 %v3749_v26, %v8698_v59 }
0x10a1   : > { %v4210_v30 = vmul.f32 0.044715, %v8707_v4  ;;  %v8729_v32 = vmul.f32 %v4230_v12, %v8647_v40  ;;  %v8732_v48 = vmul.f32 %v3770_v61, %v8650_v7  ;;  %v3750_v54 = vmul.f32 0.044715, %v8710_v39 }
0x10a2   : > { %v4211_v16 = vmul.f32 0.044715, %v8720_v43  ;;  %v8737_v58 = vmul.f32 %v4231_v27, %v8658_v22  ;;  %v8740_v35 = vmul.f32 %v3771_v47, %v8670_v36  ;;  %v8743_v23 = vmul.f32 %v4232_v51, %v8673_v42 }
0x10a3   : > { %v8746_v26 = vadd.f32 %v3689_v41, %v8539_v63  ;;  %v8749_v12 = vmul.f32 %v3772_v10, %v8676_v60  ;;  %v4234_v61 = vmul.f32 %v4210_v30, %v8707_v4  ;;  %v8753_v33 = vadd.f32 %v4150_v56, %v8542_v29 }
0x10a4   : > { %v4270_v27 = vadd.f32 %v8589_v14, %v8550_v1  ;;  %v8758_v47 = vmul.f32 %v4233_v49, %v8684_v25  ;;  %v8761_v51 = vmul.f32 %v3773_v57, %v8698_v59  ;;  %v8764_v41 = vmul.f32 0.5, %v8550_v1 }
0x10a5   : > { %9489 = vst [vmem:[#allocation50_spill] sm:$0xff] %v8749_v12  ;;  %v4272_v10 = vadd.f32 %v8625_v24, %v8560_v5  ;;  %v3774_v30 = vmul.f32 %v3750_v54, %v8710_v39  ;;  %v4235_v56 = vmul.f32 %v4211_v16, %v8720_v43  ;;  %v8771_v63 = vmul.f32 0.5, %v8560_v5 }
0x10a6   : > { %v4294_v14 = vmul.f32 0.7978846, %v4270_v27  ;;  %v3751_v49 = vmul.f32 0.044715, %v8746_v26  ;;  %v3809_v57 = vadd.f32 %v8586_v20, %v8547_v37  ;;  %v3811_v1 = vadd.f32 %v8616_v3, %v8557_v2 }
0x10a7   : > { %v4296_v29 = vmul.f32 0.7978846, %v4272_v10  ;;  %v8779_v12 = vmul.f32 %v4234_v61, %v8707_v4  ;;  %v4212_v24 = vmul.f32 0.044715, %v8753_v33  ;;  %v4341_v54 = vadd.f32 1.0, %v6346_v8 }
0x10a8   : > { %6351 = vtanh.f32 %v4294_v14  ;;  %v3833_v5 = vmul.f32 0.7978846, %v3809_v57  ;;  %v3835_v16 = vmul.f32 0.7978846, %v3811_v1  ;;  %v4343_v27 = vadd.f32 1.0, %v6350_v46  ;;  %v9490_v57 = vld [vmem:[#allocation46_spill] sm:$0xff] }
0x10a9   : > { %6353 = vtanh.f32 %v4296_v29  ;;  %v8783_v60 = vmul.f32 %v3774_v30, %v8710_v39  ;;  %v8786_v10 = vmul.f32 0.5, %v8547_v37  ;;  %v3880_v20 = vadd.f32 1.0, %v8666_v6 }
0x10aa   : > { %v3882_v3 = vadd.f32 1.0, %v6348_v21  ;;  %6355 = vtanh.f32 %v3833_v5  ;;  %v8790_v61 = vmul.f32 %v4341_v54, %v8573_v44  ;;  %v8793_v14 = vmul.f32 %v4343_v27, %v8578_v13  ;;  %v9491_v5 = vld [vmem:[#allocation44_spill] sm:$0xff] }
0x10ab   : > { %v4274_v29 = vadd.f32 %v8653_v18, %v8595_v9  ;;  %6357 = vtanh.f32 %v3835_v16  ;;  %v8798_v8 = vmul.f32 %v3880_v20, %v8571_v50  ;;  %v4276_v6 = vadd.f32 %v8693_v38, %v8613_v17  ;;  %v9492_v16 = vld [vmem:[#allocation49_spill] sm:$0xff]  ;;  %v9493_v20 = vld [vmem:[#allocation42_spill] sm:$0xff] }
0x10ac   : > { %v8801_v37 = vmul.f32 %v3882_v3, %v8576_v11  ;;  %v3775_v21 = vmul.f32 %v3751_v49, %v8746_v26  ;;  %v4236_v44 = vmul.f32 %v4212_v24, %v8753_v33  ;;  %v4389_v13 = vpack.c.bf16 %v8793_v14, %v8790_v61  ;;  %v9494_v3 = vld [vmem:[#allocation45_spill] sm:$0xff] }
0x10ad   : > { %v4298_v46 = vmul.f32 0.7978846, %v4274_v29  ;;  %v4300_v30 = vmul.f32 0.7978846, %v4276_v6  ;;  %v3813_v50 = vadd.f32 %v8641_v53, %v8583_v15  ;;  %v3815_v11 = vadd.f32 %v8687_v45, %v8610_v31  ;;  %v9495_v6 = vld [vmem:[#allocation43_spill] sm:$0xff] }
0x10ae   : > { %v3928_v18 = vpack.c.bf16 %v8801_v37, %v8798_v8  ;;  %v8816_v38 = vmul.f32 %v4235_v56, %v8720_v43  ;;  %v3715_v49 = vmul.f32 0.5, %v8557_v2  ;;  %v4273_v1 = vadd.f32 %v9490_v57, %v8569_v55 }
0x10af   : > { %6359 = vtanh.f32 %v4298_v46  ;;  %v3837_v24 = vmul.f32 0.7978846, %v3813_v50  ;;  %v3839_v54 = vmul.f32 0.7978846, %v3815_v11  ;;  %v4275_v27 = vadd.f32 %v9492_v16, %v9491_v5  ;;  %v9496_v46 = vld [vmem:[#allocation47_spill] sm:$0xff] }
0x10b0   : > { %6361 = vtanh.f32 %v4300_v30  ;;  %v8824_v53 = vmul.f32 %v3775_v21, %v8746_v26  ;;  %v8827_v45 = vmul.f32 %v4236_v44, %v8753_v33  ;;  %v4297_v56 = vmul.f32 0.7978846, %v4273_v1 }
0x10b1   : > { %v3812_v2 = vadd.f32 %v9494_v3, %v9493_v20  ;;  %v4178_v14 = vmul.f32 0.5, %v8595_v9  ;;  %6363 = vtanh.f32 %v3837_v24  ;;  %v4299_v29 = vmul.f32 0.7978846, %v4275_v27 }
0x10b2   : > { %v6352_v61 = vpop.eup %6351  ;;  %v3814_v30 = vadd.f32 %v9496_v46, %v9495_v6  ;;  %v4180_v21 = vmul.f32 0.5, %v8613_v17  ;;  %6365 = vtanh.f32 %v3839_v54  ;;  %v4278_v16 = vadd.f32 %v8729_v32, %v8647_v40 }
0x10b3   : > { %v6354_v50 = vpop.eup %6353  ;;  %v4342_v11 = vadd.f32 1.0, %v6352_v61  ;;  %v3836_v57 = vmul.f32 0.7978846, %v3812_v2  ;;  %6367 = vtanh.f32 %v4297_v56  ;;  %v3717_v24 = vmul.f32 0.5, %v8583_v15 }
0x10b4   : > { %v4344_v44 = vadd.f32 1.0, %v6354_v50  ;;  %v3838_v1 = vmul.f32 0.7978846, %v3814_v30  ;;  %v6356_v3 = vpop.eup %6355  ;;  %6369 = vtanh.f32 %v4299_v29  ;;  %v4280_v27 = vadd.f32 %v8743_v23, %v8673_v42 }
0x10b5   : > { %v4366_v9 = vmul.f32 %v4342_v11, %v8764_v41  ;;  %v6358_v61 = vpop.eup %6357  ;;  %v3881_v54 = vadd.f32 1.0, %v6356_v3  ;;  %6371 = vtanh.f32 %v3836_v57  ;;  %v4302_v2 = vmul.f32 0.7978846, %v4278_v16 }
0x10b6   : > { %v4368_v17 = vmul.f32 %v4344_v44, %v8771_v63  ;;  %v3883_v56 = vadd.f32 1.0, %v6358_v61  ;;  %v3719_v46 = vmul.f32 0.5, %v8610_v31  ;;  %6373 = vtanh.f32 %v3838_v1 }
0x10b7   : > { %v4304_v32 = vmul.f32 0.7978846, %v4280_v27  ;;  %v4177_v41 = vmul.f32 0.5, %v8569_v55  ;;  %6375 = vtanh.f32 %v4302_v2  ;;  %v3817_v15 = vadd.f32 %v8723_v28, %v8635_v34  ;;  %v9497_v27 = vld [vmem:[#allocation24_spill] sm:$0xff] }
0x10b8   : > { %v4390_v30 = vpack.c.bf16 %v4368_v17, %v4366_v9  ;;  %v3905_v23 = vmul.f32 %v3881_v54, %v8786_v10  ;;  %v3907_v50 = vmul.f32 %v3883_v56, %v3715_v49  ;;  %v3819_v63 = vadd.f32 %v8740_v35, %v8670_v36 }
0x10b9   : > { %v6360_v29 = vpop.eup %6359  ;;  %6377 = vtanh.f32 %v4304_v32  ;;  %v4179_v57 = vmul.f32 0.5, %v9491_v5  ;;  %v3841_v44 = vmul.f32 0.7978846, %v3817_v15  ;;  %v4277_v55 = vadd.f32 %v8716_v0, %v8622_v52 }
0x10ba   : > { %v6362_v11 = vpop.eup %6361  ;;  %4561 = vmatprep.mubr.bf16.mxu1 %v4390_v30  ;;  %v4346_v31 = vadd.f32 1.0, %v6360_v29  ;;  %v3929_v1 = vpack.c.bf16 %v3907_v50, %v3905_v23  ;;  %v3843_v16 = vmul.f32 0.7978846, %v3819_v63  ;;  %v4279_v10 = vadd.f32 %v8737_v58, %v8658_v22 }
0x10bb   : > { %4562 = vmatmul.mubr.bf16.vlgmr.msra.gmra.mrb[84].mxu1 %v4389_v13  ;;  %v4348_v28 = vadd.f32 1.0, %v6362_v11  ;;  %v6364_v49 = vpop.eup %6363  ;;  %v3716_v35 = vmul.f32 0.5, %v9493_v20  ;;  %6379 = vtanh.f32 %v3841_v44  ;;  %v4301_v9 = vmul.f32 0.7978846, %v4277_v55  ;;  %v9498_v13 = vld [vmem:[#allocation22_spill] sm:$0xff]  ;;  %v9499_v11 = vld [vmem:[#allocation27_spill] sm:$0xff] }
0x10bc   : > { %v4370_v3 = vmul.f32 %v4346_v31, %v4178_v14  ;;  %5810 = vmatpush3.bf16.msra.mxu1 %v9497_v27  ;;  %v6366_v5 = vpop.eup %6365  ;;  %4738 = vmatprep.mubr.bf16.mxu0 %v3929_v1  ;;  %v3885_v17 = vadd.f32 1.0, %v6364_v49  ;;  %6381 = vtanh.f32 %v3843_v16  ;;  %v4303_v0 = vmul.f32 0.7978846, %v4279_v10 }
0x10bd   : > { %v4372_v61 = vmul.f32 %v4348_v28, %v4180_v21  ;;  %5803 = vmatprep.subr.bf16.mxu1 %v9498_v13  ;;  %v6368_v54 = vpop.eup %6367  ;;  %4739 = vmatmul.mubr.bf16.vlgmr.msra.gmra.mrb[108].mxu0 %v3928_v18  ;;  %v3887_v58 = vadd.f32 1.0, %v6366_v5  ;;  %v3718_v20 = vmul.f32 0.5, %v9495_v6  ;;  %6383 = vtanh.f32 %v4301_v9 }
0x10be   : > { %v3816_v14 = vadd.f32 %v8713_v19, %v8619_v62  ;;  %v6370_v56 = vpop.eup %6369  ;;  %v3909_v30 = vmul.f32 %v3885_v17, %v3717_v24  ;;  %v4345_v15 = vadd.f32 1.0, %v6368_v54  ;;  %6385 = vtanh.f32 %v4303_v0  ;;  %v9501_v0 = vld [vmem:[#allocation29_spill] sm:$0xff] }
0x10bf   : > { %v8863_v2 = vpop.f32.mrb[76].mxu1  ;;  %v8865_v21 = vpop.f32.mrb[100].mxu0  ;;  %v4392_v32 = vpack.c.bf16 %v4372_v61, %v4370_v3  ;;  %v3911_v18 = vmul.f32 %v3887_v58, %v3719_v46  ;;  %v4347_v6 = vadd.f32 1.0, %v6370_v56  ;;  %v3818_v23 = vadd.f32 %v8732_v48, %v8650_v7  ;;  %v9500_v48 = vld [vmem:[#allocation28_spill] sm:$0xff]  ;;  %v9502_v58 = vld [vmem:[#allocation30_spill] sm:$0xff] }
0x10c0   : > { %v8867_v29 = vpop.f32.mrb[77].mxu1  ;;  %v8869_v8 = vpop.f32.mrb[101].mxu0  ;;  %v3840_v19 = vmul.f32 0.7978846, %v3816_v14  ;;  %5811 = vmatpush3.bf16.msra.mxu1 %v9499_v11  ;;  %v4369_v31 = vmul.f32 %v4345_v15, %v4177_v41  ;;  %v4182_v55 = vmul.f32 0.5, %v8647_v40  ;;  %v4184_v1 = vmul.f32 0.5, %v8673_v42 }
0x10c1   : > { %v6372_v37 = vpop.eup %6371  ;;  %v8873_v50 = vpop.f32.mrb[78].mxu1  ;;  %4569 = vmatprep.mubr.bf16.mxu1 %v4392_v32  ;;  %5804 = vmatprep.subr.bf16.mxu1 %v9500_v48  ;;  %v3931_v10 = vpack.c.bf16 %v3911_v18, %v3909_v30  ;;  %v4371_v49 = vmul.f32 %v4347_v6, %v4179_v57  ;;  %v3842_v9 = vmul.f32 0.7978846, %v3818_v23  ;;  %v4282_v40 = vadd.f32 %v8779_v12, %v8707_v4 }
0x10c2   : > { %v8875_v63 = vpop.f32.mrb[102].mxu0  ;;  %v6374_v24 = vpop.eup %6373  ;;  %v3884_v44 = vadd.f32 1.0, %v6372_v37  ;;  %6387 = vtanh.f32 %v3840_v19  ;;  %v3721_v13 = vmul.f32 0.5, %v8635_v34  ;;  %v3723_v57 = vmul.f32 0.5, %v8670_v36 }
0x10c3   : > { %v8880_v46 = vpop.f32.mrb[79].mxu1  ;;  %v8882_v28 = vpop.f32.mrb[103].mxu0  ;;  %v3886_v3 = vadd.f32 1.0, %v6374_v24  ;;  %4746 = vmatprep.mubr.bf16.mxu0 %v3931_v10  ;;  %v4391_v42 = vpack.c.bf16 %v4371_v49, %v4369_v31  ;;  %6389 = vtanh.f32 %v3842_v9  ;;  %v4284_v54 = vadd.f32 %v8827_v45, %v8753_v33 }
0x10c4   : > { %v6376_v16 = vpop.eup %6375  ;;  %v3908_v5 = vmul.f32 %v3884_v44, %v3716_v35  ;;  %5812 = vmatpush3.bf16.msra.mxu1 %v9501_v0  ;;  %v4306_v35 = vmul.f32 0.7978846, %v4282_v40  ;;  %v3823_v45 = vadd.f32 %v8824_v53, %v8746_v26  ;;  %v4183_v53 = vmul.f32 0.5, %v8658_v22 }
0x10c5   : > { %v6378_v27 = vpop.eup %6377  ;;  %v4350_v61 = vadd.f32 1.0, %v6376_v16  ;;  %v3910_v41 = vmul.f32 %v3886_v3, %v3718_v20  ;;  %5805 = vmatprep.subr.bf16.mxu1 %v9502_v58  ;;  %4570 = vmatmul.mubr.bf16.gmra.mrb[88].mxu1 %v4391_v42  ;;  %v3821_v20 = vadd.f32 %v8761_v51, %v8698_v59  ;;  %v4308_v37 = vmul.f32 0.7978846, %v4284_v54  ;;  %v9504_v3 = vld [vmem:[#allocation32_spill] sm:$0xff] }
0x10c6   : > { %v4352_v17 = vadd.f32 1.0, %v6378_v27  ;;  %v6380_v14 = vpop.eup %6379  ;;  %6391 = vtanh.f32 %v4306_v35  ;;  %v4181_v51 = vmul.f32 0.5, %v8622_v52  ;;  %v3847_v16 = vmul.f32 0.7978846, %v3823_v45  ;;  %v9507_v35 = vld [vmem:[#allocation50_spill] sm:$0xff] }
0x10c7   : > { %v3930_v12 = vpack.c.bf16 %v3910_v41, %v3908_v5  ;;  %v4374_v56 = vmul.f32 %v4350_v61, %v4182_v55  ;;  %v8895_v30 = vpop.f32.mrb[80].mxu1  ;;  %v8897_v15 = vpop.f32.mrb[104].mxu0  ;;  %v3889_v36 = vadd.f32 1.0, %v6380_v14  ;;  %v3845_v24 = vmul.f32 0.7978846, %v3821_v20  ;;  %v9503_v55 = vld [vmem:[#allocation31_spill] sm:$0xff] }
0x10c8   : > { %v4376_v32 = vmul.f32 %v4352_v17, %v4184_v1  ;;  %v6382_v34 = vpop.eup %6381  ;;  %v8901_v18 = vpop.f32.mrb[81].mxu1  ;;  %5813 = vmatpush3.bf16.msra.mxu1 %v9503_v55  ;;  %6393 = vtanh.f32 %v4308_v37  ;;  %v4281_v5 = vadd.f32 %v8758_v47, %v8684_v25  ;;  %v4283_v22 = vadd.f32 %v8816_v38, %v8720_v43  ;;  %v9505_v17 = vld [vmem:[#allocation33_spill] sm:$0xff]  ;;  %v9508_v47 = vld [vmem:[#allocation34_spill] sm:$0xff] }
0x10c9   : > { %v8903_v6 = vpop.f32.mrb[105].mxu0  ;;  %v6384_v23 = vpop.eup %6383  ;;  %4747 = vmatmul.mubr.bf16.gmra.mrb[112].mxu0 %v3930_v12  ;;  %v3891_v11 = vadd.f32 1.0, %v6382_v34  ;;  %5806 = vmatprep.subr.bf16.mxu1 %v9504_v3  ;;  %v3913_v52 = vmul.f32 %v3889_v36, %v3721_v13  ;;  %6395 = vtanh.f32 %v3845_v24  ;;  %v3720_v41 = vmul.f32 0.5, %v8619_v62  ;;  %v9509_v62 = vld [vmem:[#allocation11_spill] sm:$0xff]  ;;  %v9513_v3 = vld [vmem:[#allocation41_spill] sm:$0xff] }
0x10ca   : > { %v4394_v19 = vpack.c.bf16 %v4376_v32, %v4374_v56  ;;  %v8906_v31 = vpop.f32.mrb[82].mxu1  ;;  %v8908_v44 = vpop.f32.mrb[106].mxu0  ;;  %v4349_v48 = vadd.f32 1.0, %v6384_v23  ;;  %6397 = vtanh.f32 %v3847_v16  ;;  %v4305_v54 = vmul.f32 0.7978846, %v4281_v5 }
0x10cb   : > { %v6386_v1 = vpop.eup %6385  ;;  %v8912_v10 = vpop.f32.mrb[83].mxu1  ;;  %v3915_v9 = vmul.f32 %v3891_v11, %v3723_v57  ;;  %v4307_v13 = vmul.f32 0.7978846, %v4283_v22  ;;  %v9506_v57 = vld [vmem:[#allocation48_spill] sm:$0xff]  ;;  %v3822_v14 = vadd.f32 %v8783_v60, %v8710_v39  ;;  %v3722_v56 = vmul.f32 0.5, %v8650_v7  ;;  %v9511_v7 = vld [vmem:[#allocation35_spill] sm:$0xff] }
0x10cc   : > { %v8914_v49 = vpop.f32.mrb[107].mxu0  ;;  %4577 = vmatprep.mubr.bf16.mxu1 %v4394_v19  ;;  %v4351_v27 = vadd.f32 1.0, %v6386_v1  ;;  %v4373_v40 = vmul.f32 %v4349_v48, %v4181_v51  ;;  %5814 = vmatpush3.bf16.msra.mxu1 %v9505_v17  ;;  %v6388_v0 = vpop.eup %6387  ;;  %v3820_v58 = vadd.f32 %v9507_v35, %v9506_v57  ;;  %v3694_v20 = vadd.f32 %v8863_v2, %v9509_v62  ;;  %v9510_v11 = vld [vmem:[#allocation40_spill] sm:$0xff] }
0x10cd   : > { %v3933_v61 = vpack.c.bf16 %v3915_v9, %v3913_v52  ;;  %5807 = vmatprep.subr.bf16.mxu1 %v9508_v47  ;;  %v6390_v12 = vpop.eup %6389  ;;  %v3888_v32 = vadd.f32 1.0, %v6388_v0  ;;  %6399 = vtanh.f32 %v4305_v54  ;;  %v3846_v37 = vmul.f32 0.7978846, %v3822_v14  ;;  %v9512_v1 = vld [vmem:[#allocation36_spill] sm:$0xff] }
0x10ce   : > { %v4375_v42 = vmul.f32 %v4351_v27, %v4183_v53  ;;  %v3890_v34 = vadd.f32 1.0, %v6390_v12  ;;  %v3844_v36 = vmul.f32 0.7978846, %v3820_v58  ;;  %6401 = vtanh.f32 %v4307_v13  ;;  %v9515_v54 = vld [vmem:[#allocation12_spill] sm:$0xff] }
0x10cf   : > { %4754 = vmatprep.mubr.bf16.mxu0 %v3933_v61  ;;  %v3752_v45 = vmul.f32 0.044715, %v3694_v20  ;;  %v3912_v60 = vmul.f32 %v3888_v32, %v3720_v41  ;;  %v8933_v51 = vadd.f32 %v8865_v21, %v9510_v11  ;;  %v4186_v24 = vmul.f32 0.5, %v8707_v4  ;;  %v9514_v41 = vld [vmem:[#allocation37_spill] sm:$0xff] }
0x10d0   : > { %v4393_v38 = vpack.c.bf16 %v4375_v42, %v4373_v40  ;;  %v6392_v23 = vpop.eup %6391  ;;  %v3914_v19 = vmul.f32 %v3890_v34, %v3722_v56  ;;  %6403 = vtanh.f32 %v3844_v36  ;;  %5815 = vmatpush3.bf16.msra.mxu1 %v9511_v7  ;;  %v4188_v16 = vmul.f32 0.5, %v8753_v33  ;;  %v9517_v34 = vld [vmem:[#allocation39_spill] sm:$0xff] }
0x10d1   : > { %v4354_v2 = vadd.f32 1.0, %v6392_v23  ;;  %6405 = vtanh.f32 %v3846_v37  ;;  %v3776_v55 = vmul.f32 %v3752_v45, %v3694_v20  ;;  %5808 = vmatprep.subr.bf16.mxu1 %v9512_v1  ;;  %v8941_v52 = vadd.f32 %v8869_v8, %v9513_v3 }
0x10d2   : > { %4578 = vmatmul.mubr.bf16.gmra.mrb[92].mxu1 %v4393_v38  ;;  %v6394_v53 = vpop.eup %6393  ;;  %v3932_v48 = vpack.c.bf16 %v3914_v19, %v3912_v60  ;;  %v8945_v21 = vadd.f32 %v8873_v50, %v9509_v62  ;;  %v3725_v4 = vmul.f32 0.5, %v8698_v59  ;;  %v3727_v5 = vmul.f32 0.5, %v8746_v26  ;;  %v9516_v26 = vld [vmem:[#allocation38_spill] sm:$0xff] }
0x10d3   : > { %v6396_v9 = vpop.eup %6395  ;;  %v4356_v27 = vadd.f32 1.0, %v6394_v53  ;;  %v3800_v22 = vmul.f32 %v3776_v55, %v3694_v20  ;;  %v4185_v33 = vmul.f32 0.5, %v8684_v25  ;;  %v4187_v42 = vmul.f32 0.5, %v8720_v43 }
0x10d4   : > { %v6398_v61 = vpop.eup %6397  ;;  %4755 = vmatmul.mubr.bf16.gmra.mrb[116].mxu0 %v3932_v48  ;;  %v3893_v40 = vadd.f32 1.0, %v6396_v9  ;;  %v4213_v8 = vmul.f32 0.044715, %v8933_v51  ;;  %5816 = vmatpush3.bf16.msra.mxu1 %v9514_v41  ;;  %v4378_v50 = vmul.f32 %v4354_v2, %v4186_v24  ;;  %v8955_v59 = vadd.f32 %v8867_v29, %v9515_v54 }
0x10d5   : > { %v4380_v17 = vmul.f32 %v4356_v27, %v4188_v16  ;;  %v3895_v0 = vadd.f32 1.0, %v6398_v61  ;;  %5809 = vmatprep.subr.bf16.mxu1 %v9516_v26  ;;  %v3724_v13 = vmul.f32 0.5, %v9506_v57  ;;  %v3824_v35 = vadd.f32 %v3800_v22, %v3694_v20 }
0x10d6   : > { %v4214_v25 = vmul.f32 0.044715, %v8941_v52  ;;  %v3754_v43 = vmul.f32 0.044715, %v8945_v21  ;;  %v3917_v14 = vmul.f32 %v3893_v40, %v3725_v4  ;;  %v8963_v12 = vadd.f32 %v8875_v63, %v9510_v11 }
0x10d7   : > { %v4396_v58 = vpack.c.bf16 %v4380_v17, %v4378_v50  ;;  %v3919_v47 = vmul.f32 %v3895_v0, %v3727_v5  ;;  %v6400_v38 = vpop.eup %6399  ;;  %v3726_v29 = vmul.f32 0.5, %v8710_v39  ;;  %v8966_v56 = vmul.f32 0.5, %v3694_v20 }
0x10d8   : > { %v3778_v32 = vmul.f32 %v3754_v43, %v8945_v21  ;;  %v8971_v57 = vadd.f32 %v8882_v28, %v9513_v3  ;;  %5817 = vmatpush3.bf16.msra.mxu1 %v9517_v34  ;;  %v6402_v36 = vpop.eup %6401  ;;  %v4353_v45 = vadd.f32 1.0, %v6400_v38  ;;  %v4237_v63 = vmul.f32 %v4213_v8, %v8933_v51 }
0x10d9   : > { %4585 = vmatprep.mubr.bf16.mxu1 %v4396_v58  ;;  %v3935_v37 = vpack.c.bf16 %v3919_v47, %v3917_v14  ;;  %v3753_v23 = vmul.f32 0.044715, %v8955_v59  ;;  %v4355_v39 = vadd.f32 1.0, %v6402_v36  ;;  %v3848_v20 = vmul.f32 0.7978846, %v3824_v35 }
0x10da   : > { %v6404_v60 = vpop.eup %6403  ;;  %v4238_v19 = vmul.f32 %v4214_v25, %v8941_v52  ;;  %v3802_v7 = vmul.f32 %v3778_v32, %v8945_v21  ;;  %v4215_v2 = vmul.f32 0.044715, %v8963_v12  ;;  %v8981_v55 = vadd.f32 %v8880_v46, %v9515_v54 }
0x10db   : > { %v6406_v24 = vpop.eup %6405  ;;  %4762 = vmatprep.mubr.bf16.mxu0 %v3935_v37  ;;  %v3892_v28 = vadd.f32 1.0, %v6404_v60  ;;  %v4216_v1 = vmul.f32 0.044715, %v8971_v57  ;;  %v4377_v53 = vmul.f32 %v4353_v45, %v4185_v33  ;;  %v4379_v48 = vmul.f32 %v4355_v39, %v4187_v42 }
0x10dc   : > { %v3894_v16 = vadd.f32 1.0, %v6406_v24  ;;  %v3826_v9 = vadd.f32 %v3802_v7, %v8945_v21  ;;  %v4261_v4 = vmul.f32 %v4237_v63, %v8933_v51  ;;  %v8989_v22 = vadd.f32 %v8895_v30, %v9509_v62 }
0x10dd   : > { %v3916_v27 = vmul.f32 %v3892_v28, %v3724_v13  ;;  %v4240_v5 = vmul.f32 %v4216_v1, %v8971_v57  ;;  %v4395_v61 = vpack.c.bf16 %v4379_v48, %v4377_v53  ;;  %v8993_v8 = vadd.f32 %v8897_v15, %v9510_v11 }
0x10de   : > { %v3918_v40 = vmul.f32 %v3894_v16, %v3726_v29  ;;  %v3850_v46 = vmul.f32 0.7978846, %v3826_v9  ;;  %6407 = vtanh.f32 %v3848_v20  ;;  %v3777_v33 = vmul.f32 %v3753_v23, %v8955_v59 }
0x10df   : > { %v4262_v42 = vmul.f32 %v4238_v19, %v8941_v52  ;;  %v3755_v41 = vmul.f32 0.044715, %v8981_v55  ;;  %4586 = vmatmul.mubr.bf16.gmra.mrb[96].mxu1 %v4395_v61  ;;  %v4239_v17 = vmul.f32 %v4215_v2, %v8963_v12  ;;  %v4217_v30 = vmul.f32 0.044715, %v8993_v8 }
0x10e0   : > { %v3934_v50 = vpack.c.bf16 %v3918_v40, %v3916_v27  ;;  %v9002_v0 = vadd.f32 %v8903_v6, %v9513_v3  ;;  %v3756_v15 = vmul.f32 0.044715, %v8989_v22  ;;  %v9007_v26 = vadd.f32 %v8901_v18, %v9515_v54 }
0x10e1   : > { %v9011_v13 = vadd.f32 %v8908_v44, %v9510_v11  ;;  %v9015_v35 = vadd.f32 %v8912_v10, %v9515_v54  ;;  %6409 = vtanh.f32 %v3850_v46  ;;  %v4264_v25 = vmul.f32 %v4240_v5, %v8971_v57 }
0x10e2   : > { %4763 = vmatmul.mubr.bf16.gmra.mrb[120].mxu0 %v3934_v50  ;;  %v4218_v6 = vmul.f32 0.044715, %v9002_v0  ;;  %v9021_v43 = vadd.f32 %v8914_v49, %v9513_v3  ;;  %v3779_v18 = vmul.f32 %v3755_v41, %v8981_v55  ;;  %v4241_v58 = vmul.f32 %v4217_v30, %v8993_v8 }
0x10e3   : > { %v9027_v44 = vadd.f32 %v8906_v31, %v9509_v62  ;;  %v4219_v10 = vmul.f32 0.044715, %v9011_v13  ;;  %v3730_v11 = vmul.f32 0.5, %v8945_v21  ;;  %v4263_v54 = vmul.f32 %v4239_v17, %v8963_v12 }
0x10e4   : > { %v4242_v14 = vmul.f32 %v4218_v6, %v9002_v0  ;;  %v4220_v47 = vmul.f32 0.044715, %v9021_v43  ;;  %v3780_v49 = vmul.f32 %v3756_v15, %v8989_v22  ;;  %v3757_v3 = vmul.f32 0.044715, %v9007_v26 }
0x10e5   : > { %v4243_v38 = vmul.f32 %v4219_v10, %v9011_v13  ;;  %v3759_v29 = vmul.f32 0.044715, %v9015_v35  ;;  %v4286_v21 = vadd.f32 %v4262_v42, %v8941_v52  ;;  %v4288_v32 = vadd.f32 %v4264_v25, %v8971_v57 }
0x10e6   : > { %v4266_v31 = vmul.f32 %v4242_v14, %v9002_v0  ;;  %v4244_v62 = vmul.f32 %v4220_v47, %v9021_v43  ;;  %v3801_v34 = vmul.f32 %v3777_v33, %v8955_v59  ;;  %v3803_v36 = vmul.f32 %v3779_v18, %v8981_v55 }
0x10e7   : > { %v4265_v37 = vmul.f32 %v4241_v58, %v8993_v8  ;;  %v3758_v45 = vmul.f32 0.044715, %v9027_v44  ;;  %v4267_v63 = vmul.f32 %v4243_v38, %v9011_v13  ;;  %v4310_v60 = vmul.f32 0.7978846, %v4286_v21 }
0x10e8   : > { %v4268_v23 = vmul.f32 %v4244_v62, %v9021_v43  ;;  %v4312_v39 = vmul.f32 0.7978846, %v4288_v32  ;;  %v6408_v20 = vpop.eup %6407  ;;  %v3781_v19 = vmul.f32 %v3757_v3, %v9007_v26  ;;  %v3783_v7 = vmul.f32 %v3759_v29, %v9015_v35 }
0x10e9   : > { %v4285_v24 = vadd.f32 %v4261_v4, %v8933_v51  ;;  %v4287_v28 = vadd.f32 %v4263_v54, %v8963_v12  ;;  %v3804_v2 = vmul.f32 %v3780_v49, %v8989_v22  ;;  %6411 = vtanh.f32 %v4310_v60 }
0x10ea   : > { %v4290_v1 = vadd.f32 %v4266_v31, %v9002_v0  ;;  %v4292_v53 = vadd.f32 %v4268_v23, %v9021_v43  ;;  %v3782_v48 = vmul.f32 %v3758_v45, %v9027_v44  ;;  %6413 = vtanh.f32 %v4312_v39 }
0x10eb   : > { %v4309_v16 = vmul.f32 0.7978846, %v4285_v24  ;;  %v4311_v9 = vmul.f32 0.7978846, %v4287_v28  ;;  %v6410_v27 = vpop.eup %6409  ;;  %v4289_v40 = vadd.f32 %v4265_v37, %v8993_v8  ;;  %v4291_v4 = vadd.f32 %v4267_v63, %v9011_v13 }
0x10ec   : > { %v4314_v5 = vmul.f32 0.7978846, %v4290_v1  ;;  %v4316_v61 = vmul.f32 0.7978846, %v4292_v53  ;;  %v3805_v46 = vmul.f32 %v3781_v19, %v9007_v26  ;;  %v3807_v33 = vmul.f32 %v3783_v7, %v9015_v35 }
0x10ed   : > { %6415 = vtanh.f32 %v4309_v16  ;;  %v3825_v42 = vadd.f32 %v3801_v34, %v8955_v59  ;;  %v4313_v41 = vmul.f32 0.7978846, %v4289_v40  ;;  %v4315_v50 = vmul.f32 0.7978846, %v4291_v4 }
0x10ee   : > { %6417 = vtanh.f32 %v4311_v9  ;;  %v3827_v17 = vadd.f32 %v3803_v36, %v8981_v55  ;;  %v3896_v15 = vadd.f32 1.0, %v6408_v20  ;;  %v3898_v25 = vadd.f32 1.0, %v6410_v27 }
0x10ef   : > { %6419 = vtanh.f32 %v4314_v5  ;;  %v3849_v30 = vmul.f32 0.7978846, %v3825_v42  ;;  %v3806_v6 = vmul.f32 %v3782_v48, %v9027_v44  ;;  %v3829_v54 = vadd.f32 %v3805_v46, %v9007_v26 }
0x10f0   : > { %6421 = vtanh.f32 %v4316_v61  ;;  %v3851_v18 = vmul.f32 0.7978846, %v3827_v17  ;;  %v9064_v58 = vmul.f32 %v3896_v15, %v8966_v56  ;;  %v9066_v10 = vmul.f32 %v3898_v25, %v3730_v11 }
0x10f1   : > { %6423 = vtanh.f32 %v4313_v41  ;;  %v3831_v14 = vadd.f32 %v3807_v33, %v9015_v35  ;;  %v3853_v49 = vmul.f32 0.7978846, %v3829_v54  ;;  %v3828_v3 = vadd.f32 %v3804_v2, %v8989_v22 }
0x10f2   : > { %6425 = vtanh.f32 %v4315_v50  ;;  %v3936_v47 = vpack.c.bf16 %v9066_v10, %v9064_v58  ;;  %v3830_v56 = vadd.f32 %v3806_v6, %v9027_v44  ;;  %v4190_v11 = vmul.f32 0.5, %v8941_v52 }
0x10f3   : > { %6427 = vtanh.f32 %v3849_v30  ;;  %v6412_v38 = vpop.eup %6411  ;;  %v3855_v29 = vmul.f32 0.7978846, %v3831_v14  ;;  %v3852_v21 = vmul.f32 0.7978846, %v3828_v3  ;;  %v4192_v32 = vmul.f32 0.5, %v8971_v57 }
0x10f4   : > { %6429 = vtanh.f32 %v3851_v18  ;;  %v6414_v31 = vpop.eup %6413  ;;  %v4358_v62 = vadd.f32 1.0, %v6412_v38  ;;  %v3854_v36 = vmul.f32 0.7978846, %v3830_v56  ;;  %v4189_v20 = vmul.f32 0.5, %v8933_v51 }
0x10f5   : > { %6431 = vtanh.f32 %v3853_v49  ;;  %v4360_v34 = vadd.f32 1.0, %v6414_v31  ;;  %v4191_v52 = vmul.f32 0.5, %v8963_v12  ;;  %v4194_v57 = vmul.f32 0.5, %v9002_v0 }
0x10f6   : > { %6433 = vtanh.f32 %v3855_v29  ;;  %v4382_v63 = vmul.f32 %v4358_v62, %v4190_v11  ;;  %v4196_v48 = vmul.f32 0.5, %v9021_v43  ;;  %v4193_v27 = vmul.f32 0.5, %v8993_v8 }
0x10f7   : > { %v6416_v37 = vpop.eup %6415  ;;  %6435 = vtanh.f32 %v3852_v21  ;;  %v4384_v23 = vmul.f32 %v4360_v34, %v4192_v32  ;;  %v4195_v51 = vmul.f32 0.5, %v9011_v13  ;;  %v3729_v33 = vmul.f32 0.5, %v8955_v59 }
0x10f8   : > { %v6418_v45 = vpop.eup %6417  ;;  %v4357_v60 = vadd.f32 1.0, %v6416_v37  ;;  %6437 = vtanh.f32 %v3854_v36  ;;  %v3731_v42 = vmul.f32 0.5, %v8981_v55  ;;  %v3733_v13 = vmul.f32 0.5, %v9007_v26 }
0x10f9   : > { %v6420_v39 = vpop.eup %6419  ;;  %v4359_v19 = vadd.f32 1.0, %v6418_v45  ;;  %v4398_v24 = vpack.c.bf16 %v4384_v23, %v4382_v63  ;;  %v3735_v25 = vmul.f32 0.5, %v9015_v35  ;;  %v3732_v3 = vmul.f32 0.5, %v8989_v22 }
0x10fa   : > { %v6422_v7 = vpop.eup %6421  ;;  %v4362_v28 = vadd.f32 1.0, %v6420_v39  ;;  %v4381_v1 = vmul.f32 %v4357_v60, %v4189_v20  ;;  %v3734_v38 = vmul.f32 0.5, %v9027_v44  ;;  %v9096_v20 = vld [vmem:[%s725_s30] ss:$0 sm:$0xff] }
0x10fb   : > { %v6424_v2 = vpop.eup %6423  ;;  %v4383_v53 = vmul.f32 %v4359_v19, %v4191_v52  ;;  %v4364_v16 = vadd.f32 1.0, %v6422_v7  ;;  %4593 = vmatprep.mubr.bf16.mxu1 %v4398_v24 }
0x10fc   : > { %v6426_v9 = vpop.eup %6425  ;;  %v4361_v5 = vadd.f32 1.0, %v6424_v2  ;;  %v4386_v40 = vmul.f32 %v4362_v28, %v4194_v57  ;;  %v9518_v57 = vld [vmem:[#allocation26_spill] sm:$0xff] }
0x10fd   : > { %v6428_v12 = vpop.eup %6427  ;;  %v4397_v61 = vpack.c.bf16 %v4383_v53, %v4381_v1  ;;  %v4388_v4 = vmul.f32 %v4364_v16, %v4196_v48  ;;  %v4363_v46 = vadd.f32 1.0, %v6426_v9  ;;  %v9519_v16 = vld [vmem:[#allocation25_spill] sm:$0xff] }
0x10fe   : > { %v6430_v0 = vpop.eup %6429  ;;  %v3897_v41 = vadd.f32 1.0, %v6428_v12  ;;  %v4385_v17 = vmul.f32 %v4361_v5, %v4193_v27 }
0x10ff   : > { %v6432_v43 = vpop.eup %6431  ;;  %4594 = vmatmul.mubr.bf16.gmra.mrb[100].mxu1 %v4397_v61  ;;  %v4400_v50 = vpack.c.bf16 %v4388_v4, %v4386_v40  ;;  %v4387_v30 = vmul.f32 %v4363_v46, %v4195_v51  ;;  %v3899_v8 = vadd.f32 1.0, %v6430_v0 }
0x1100   : > { %v6434_v15 = vpop.eup %6433  ;;  %v3901_v6 = vadd.f32 1.0, %v6432_v43  ;;  %v3921_v14 = vmul.f32 %v3897_v41, %v3729_v33  ;;  %v9520_v43 = vld [vmem:[#allocation13_spill] sm:$0xff] }
0x1101   : > { %v6436_v18 = vpop.eup %6435  ;;  %4601 = vmatprep.mubr.bf16.mxu1 %v4400_v50  ;;  %v4399_v54 = vpack.c.bf16 %v4387_v30, %v4385_v17  ;;  %v3923_v59 = vmul.f32 %v3899_v8, %v3731_v42  ;;  %v3903_v49 = vadd.f32 1.0, %v6434_v15  ;;  %v9521_v15 = vld [vmem:[#allocation15_spill] sm:$0xff] }
0x1102   : > { %v6438_v55 = vpop.eup %6437  ;;  %v3900_v29 = vadd.f32 1.0, %v6436_v18  ;;  %v3925_v31 = vmul.f32 %v3901_v6, %v3733_v13 }
0x1103   : > { %v3937_v56 = vpack.c.bf16 %v3923_v59, %v3921_v14  ;;  %v3927_v11 = vmul.f32 %v3903_v49, %v3735_v25  ;;  %v3902_v62 = vadd.f32 1.0, %v6438_v55 }
0x1104   : > { %v3924_v21 = vmul.f32 %v3900_v29, %v3732_v3 }
0x1105   : > { %v3939_v26 = vpack.c.bf16 %v3927_v11, %v3925_v31  ;;  %v3926_v35 = vmul.f32 %v3902_v62, %v3734_v38  ;;  %v9522_v31 = vld [vmem:[#allocation14_spill] sm:$0xff]  ;;  %v9523_v62 = vld [vmem:[#allocation16_spill] sm:$0xff] }
0x1107   : > { %4602 = vmatmul.mubr.bf16.gmra.mrb[104].mxu1 %v4399_v54  ;;  %v3938_v32 = vpack.c.bf16 %v3926_v35, %v3924_v21 }
0x1108   : > { %4770 = vmatprep.mubr.bf16.mxu1 %v3937_v56 }
0x110f   : > { %4771 = vmatmul.mubr.bf16.vlgmr.msra.gmra.mrb[108].mxu1 %v3936_v47 }
0x1110   : > { %4778 = vmatprep.mubr.bf16.mxu1 %v3939_v26 }
0x1117   : > { %4779 = vmatmul.mubr.bf16.gmra.mrb[112].mxu1 %v3938_v32 }
0x118e   : > { %v5466_v22 = vpop.f32.mrb[84].mxu1 }
0x118f   : > { %v5467_v44 = vpop.f32.mrb[85].mxu1 }
0x1190   : > { %v5468_v34 = vadd.f32 %v5467_v44, %v5466_v22  ;;  %v5469_v36 = vpop.f32.mrb[86].mxu1  ;;  %v5518_v37 = vpop.f32.mrb[108].mxu0 }
0x1191   : > { %v5470_v45 = vpop.f32.mrb[87].mxu1  ;;  %v5519_v63 = vpop.f32.mrb[109].mxu0 }
0x1192   : > { %v5471_v23 = vadd.f32 %v5470_v45, %v5469_v36  ;;  %v5520_v60 = vadd.f32 %v5519_v63, %v5518_v37  ;;  %v5521_v39 = vpop.f32.mrb[110].mxu0 }
0x1193   : > { %v5522_v58 = vpop.f32.mrb[111].mxu0 }
0x1194   : > { %v4741_v10 = vadd.f32 %v5520_v60, %v5468_v34  ;;  %v5523_v47 = vadd.f32 %v5522_v58, %v5521_v39 }
0x1196   : > { %v4794_v52 = vadd.f32 %v9096_v20, %v4741_v10  ;;  %v4744_v19 = vadd.f32 %v5523_v47, %v5471_v23 }
0x1198   : > { %v4795_v7 = vadd.f32 %v9096_v20, %v4744_v19  ;;  %v5472_v24 = vpop.f32.mrb[88].mxu1  ;;  %v9101_v28 = vadd.f32 %v4794_v52, %v9518_v57  ;;  %v9524_v52 = vld [vmem:[#allocation17_spill] sm:$0xff] }
0x1199   : > { %v5473_v2 = vpop.f32.mrb[89].mxu1 }
0x119a   : > { %v5474_v53 = vadd.f32 %v5473_v2, %v5472_v24  ;;  %v5475_v48 = vpop.f32.mrb[90].mxu1  ;;  %4820 = vadd.xlane.f32.xlu0 %v9101_v28  ;;  %v9105_v9 = vadd.f32 %v4795_v7, %v9519_v16  ;;  %v9525_v7 = vld [vmem:[#allocation19_spill] sm:$0xff] }
0x119b   : > { %v5476_v51 = vpop.f32.mrb[91].mxu1 }
0x119c   : > { %v5524_v1 = vpop.f32.mrb[112].mxu0  ;;  %v5477_v61 = vadd.f32 %v5476_v51, %v5475_v48  ;;  %4822 = vadd.xlane.f32.xlu1 %v9105_v9 }
0x119d   : > { %v5525_v27 = vpop.f32.mrb[113].mxu0 }
0x119e   : > { %v5526_v5 = vadd.f32 %v5525_v27, %v5524_v1  ;;  %v5527_v12 = vpop.f32.mrb[114].mxu0 }
0x119f   : > { %v5528_v40 = vpop.f32.mrb[115].mxu0 }
0x11a0   : > { %v4749_v4 = vadd.f32 %v5526_v5, %v5474_v53  ;;  %v5529_v46 = vadd.f32 %v5528_v40, %v5527_v12 }
0x11a2   : > { %v4796_v0 = vadd.f32 %v9096_v20, %v4749_v4  ;;  %v4752_v33 = vadd.f32 %v5529_v46, %v5477_v61 }
0x11a4   : > { %v4797_v42 = vadd.f32 %v9096_v20, %v4752_v33  ;;  %v9111_v50 = vadd.f32 %v4796_v0, %v9520_v43 }
0x11a5   : > { %v5478_v41 = vpop.f32.mrb[92].mxu1 }
0x11a6   : > { %v5479_v17 = vpop.f32.mrb[93].mxu1  ;;  %4824 = vadd.xlane.f32.xlu0 %v9111_v50  ;;  %v9115_v13 = vadd.f32 %v4797_v42, %v9521_v15 }
0x11a7   : > { %v5480_v30 = vadd.f32 %v5479_v17, %v5478_v41  ;;  %v5481_v8 = vpop.f32.mrb[94].mxu1  ;;  %v5530_v18 = vpop.f32.mrb[116].mxu0 }
0x11a8   : > { %v5482_v25 = vpop.f32.mrb[95].mxu1  ;;  %4826 = vadd.xlane.f32.xlu1 %v9115_v13  ;;  %v5531_v54 = vpop.f32.mrb[117].mxu0 }
0x11a9   : > { %v5483_v6 = vadd.f32 %v5482_v25, %v5481_v8  ;;  %v5532_v14 = vadd.f32 %v5531_v54, %v5530_v18  ;;  %v5533_v59 = vpop.f32.mrb[118].mxu0  ;;  %v9526_v25 = vld [vmem:[#allocation20_spill] sm:$0xff] }
0x11aa   : > { %v5534_v49 = vpop.f32.mrb[119].mxu0 }
0x11ab   : > { %v4757_v55 = vadd.f32 %v5532_v14, %v5480_v30  ;;  %v5535_v3 = vadd.f32 %v5534_v49, %v5533_v59  ;;  %v9527_v59 = vld [vmem:[#allocation18_spill] sm:$0xff] }
0x11ad   : > { %v4798_v38 = vadd.f32 %v9096_v20, %v4757_v55  ;;  %v4760_v29 = vadd.f32 %v5535_v3, %v5483_v6 }
0x11af   : > { %v4799_v56 = vadd.f32 %v9096_v20, %v4760_v29  ;;  %v9121_v11 = vadd.f32 %v4798_v38, %v9522_v31 }
0x11b1   : > { %4828 = vadd.xlane.f32.xlu0 %v9121_v11  ;;  %v9125_v26 = vadd.f32 %v4799_v56, %v9523_v62  ;;  %v9528_v62 = vld [vmem:[#allocation21_spill] sm:$0xff] }
0x11b2   : > { %v5484_v21 = vpop.f32.mrb[96].mxu1 }
0x11b3   : > { %4830 = vadd.xlane.f32.xlu1 %v9125_v26  ;;  %v5485_v35 = vpop.f32.mrb[97].mxu1 }
0x11b4   : > { %v5486_v22 = vadd.f32 %v5485_v35, %v5484_v21  ;;  %v5487_v44 = vpop.f32.mrb[98].mxu1  ;;  %v9529_v35 = vld [vmem:[#allocation23_spill] sm:$0xff] }
0x11b5   : > { %v5536_v32 = vpop.f32.mrb[120].mxu0  ;;  %v5488_v36 = vpop.f32.mrb[99].mxu1 }
0x11b6   : > { %v5537_v34 = vpop.f32.mrb[121].mxu0  ;;  %v5489_v63 = vadd.f32 %v5488_v36, %v5487_v44 }
0x11b7   : > { %v5538_v37 = vadd.f32 %v5537_v34, %v5536_v32  ;;  %v5539_v45 = vpop.f32.mrb[122].mxu0 }
0x11b8   : > { %v5540_v23 = vpop.f32.mrb[123].mxu0 }
0x11b9   : > { %v4765_v60 = vadd.f32 %v5538_v37, %v5486_v22  ;;  %v5541_v39 = vadd.f32 %v5540_v23, %v5539_v45 }
0x11bb   : > { %v4800_v58 = vadd.f32 %v9096_v20, %v4765_v60  ;;  %v4768_v10 = vadd.f32 %v5541_v39, %v5489_v63 }
0x11bd   : > { %v4801_v47 = vadd.f32 %v9096_v20, %v4768_v10  ;;  %v9131_v19 = vadd.f32 %v4800_v58, %v9524_v52 }
0x11bf   : > { %4832 = vadd.xlane.f32.xlu0 %v9131_v19  ;;  %v9135_v24 = vadd.f32 %v4801_v47, %v9525_v7 }
0x11c1   : > { %4834 = vadd.xlane.f32.xlu1 %v9135_v24 }
0x11d2   : > { %v5490_v57 = vpop.f32.mrb[100].mxu1 }
0x11d3   : > { %v5491_v2 = vpop.f32.mrb[101].mxu1 }
0x11d4   : > { %v5492_v1 = vadd.f32 %v5491_v2, %v5490_v57  ;;  %v5493_v53 = vpop.f32.mrb[102].mxu1 }
0x11d5   : > { %v5494_v48 = vpop.f32.mrb[103].mxu1 }
0x11d6   : > { %v5495_v16 = vadd.f32 %v5494_v48, %v5493_v53 }
0x11da   : > { %v5496_v27 = vpop.f32.mrb[104].mxu1 }
0x11db   : > { %v5497_v51 = vpop.f32.mrb[105].mxu1 }
0x11dc   : > { %v5498_v5 = vadd.f32 %v5497_v51, %v5496_v27  ;;  %v5499_v12 = vpop.f32.mrb[106].mxu1 }
0x11dd   : > { %v5500_v61 = vpop.f32.mrb[107].mxu1 }
0x11de   : > { %v5501_v40 = vadd.f32 %v5500_v61, %v5499_v12 }
0x11e2   : > { %v5542_v4 = vpop.f32.mrb[108].mxu1 }
0x11e3   : > { %v5543_v46 = vpop.f32.mrb[109].mxu1 }
0x11e4   : > { %v5544_v0 = vadd.f32 %v5543_v46, %v5542_v4  ;;  %v5545_v33 = vpop.f32.mrb[110].mxu1 }
0x11e5   : > { %v5546_v42 = vpop.f32.mrb[111].mxu1 }
0x11e6   : > { %v4773_v41 = vadd.f32 %v5544_v0, %v5492_v1  ;;  %v5547_v43 = vadd.f32 %v5546_v42, %v5545_v33 }
0x11e8   : > { %v4802_v17 = vadd.f32 %v9096_v20, %v4773_v41  ;;  %v4776_v30 = vadd.f32 %v5547_v43, %v5495_v16 }
0x11ea   : > { %v4803_v8 = vadd.f32 %v9096_v20, %v4776_v30  ;;  %v5548_v15 = vpop.f32.mrb[112].mxu1  ;;  %v4814_v6 = vadd.f32 %v4802_v17, %v9526_v25 }
0x11eb   : > { %v5549_v18 = vpop.f32.mrb[113].mxu1 }
0x11ec   : > { %v5550_v54 = vadd.f32 %v5549_v18, %v5548_v15  ;;  %4836 = vadd.xlane.f32.xlu0 %v4814_v6  ;;  %v5551_v14 = vpop.f32.mrb[114].mxu1  ;;  %v4815_v49 = vadd.f32 %v4803_v8, %v9527_v59 }
0x11ed   : > { %v5552_v55 = vpop.f32.mrb[115].mxu1 }
0x11ee   : > { %v4781_v3 = vadd.f32 %v5550_v54, %v5498_v5  ;;  %v5553_v38 = vadd.f32 %v5552_v55, %v5551_v14  ;;  %4838 = vadd.xlane.f32.xlu1 %v4815_v49 }
0x11f0   : > { %v4804_v29 = vadd.f32 %v9096_v20, %v4781_v3  ;;  %v4784_v56 = vadd.f32 %v5553_v38, %v5501_v40 }
0x11f2   : > { %v4805_v31 = vadd.f32 %v9096_v20, %v4784_v56  ;;  %v4816_v21 = vadd.f32 %v4804_v29, %v9528_v62  ;;  %v9207_v62 = vld [vmem:[%s728_s19] ss:$0 sm:$0xff] }
0x11f4   : > { %4840 = vadd.xlane.f32.xlu0 %v4816_v21  ;;  %v4817_v32 = vadd.f32 %v4805_v31, %v9529_v35 }
0x11f6   : > { %4842 = vadd.xlane.f32.xlu1 %v4817_v32 }
0x1227   : > { %v4821_v22 = vpop.xlane.xlu0 %4820 }
0x1228   : > { %v4844_v44 = vmul.f32 0.0078125, %v4821_v22  ;;  %v9215_v22 = vld [vmem:[%s731_s11] ss:$0 sm:$0xff] }
0x1229   : > { %v4823_v34 = vpop.xlane.xlu1 %4822 }
0x122a   : > { %v9147_v36 = vsub.f32 %v9101_v28, %v4844_v44  ;;  %v4845_v37 = vmul.f32 0.0078125, %v4823_v34 }
0x122c   : > { %v9150_v45 = vsub.f32 %v9105_v9, %v4845_v37  ;;  %v4868_v63 = vmul.f32 %v9147_v36, %v9147_v36 }
0x122e   : > { %4880 = vadd.xlane.f32.xlu0 %v4868_v63  ;;  %v4869_v20 = vmul.f32 %v9150_v45, %v9150_v45 }
0x1230   : > { %4882 = vadd.xlane.f32.xlu1 %v4869_v20 }
0x1233   : > { %v4825_v23 = vpop.xlane.xlu0 %4824 }
0x1234   : > { %v4846_v60 = vmul.f32 0.0078125, %v4825_v23 }
0x1235   : > { %v4827_v39 = vpop.xlane.xlu1 %4826 }
0x1236   : > { %v9157_v58 = vsub.f32 %v9111_v50, %v4846_v60  ;;  %v4847_v28 = vmul.f32 0.0078125, %v4827_v39 }
0x1238   : > { %v9160_v10 = vsub.f32 %v9115_v13, %v4847_v28  ;;  %v4870_v9 = vmul.f32 %v9157_v58, %v9157_v58 }
0x123a   : > { %4884 = vadd.xlane.f32.xlu0 %v4870_v9  ;;  %v4871_v47 = vmul.f32 %v9160_v10, %v9160_v10 }
0x123c   : > { %4886 = vadd.xlane.f32.xlu1 %v4871_v47 }
0x123e   : > { %v4829_v52 = vpop.xlane.xlu0 %4828 }
0x123f   : > { %v4848_v7 = vmul.f32 0.0078125, %v4829_v52 }
0x1240   : > { %v4831_v57 = vpop.xlane.xlu1 %4830 }
0x1241   : > { %v9167_v2 = vsub.f32 %v9121_v11, %v4848_v7  ;;  %v4849_v50 = vmul.f32 0.0078125, %v4831_v57 }
0x1243   : > { %v9170_v1 = vsub.f32 %v9125_v26, %v4849_v50  ;;  %v4872_v13 = vmul.f32 %v9167_v2, %v9167_v2 }
0x1245   : > { %4888 = vadd.xlane.f32.xlu0 %v4872_v13  ;;  %v4873_v53 = vmul.f32 %v9170_v1, %v9170_v1 }
0x1247   : > { %4890 = vadd.xlane.f32.xlu1 %v4873_v53 }
0x124c   : > { %v4833_v48 = vpop.xlane.xlu0 %4832 }
0x124d   : > { %v4850_v16 = vmul.f32 0.0078125, %v4833_v48 }
0x124e   : > { %v4835_v27 = vpop.xlane.xlu1 %4834 }
0x124f   : > { %v9177_v51 = vsub.f32 %v9131_v19, %v4850_v16  ;;  %v4851_v11 = vmul.f32 0.0078125, %v4835_v27 }
0x1251   : > { %v9180_v5 = vsub.f32 %v9135_v24, %v4851_v11  ;;  %v4874_v26 = vmul.f32 %v9177_v51, %v9177_v51 }
0x1253   : > { %4892 = vadd.xlane.f32.xlu0 %v4874_v26  ;;  %v4875_v12 = vmul.f32 %v9180_v5, %v9180_v5 }
0x1255   : > { %4894 = vadd.xlane.f32.xlu1 %v4875_v12 }
0x1279   : > { %v4837_v61 = vpop.xlane.xlu0 %4836 }
0x127a   : > { %v4852_v40 = vmul.f32 0.0078125, %v4837_v61 }
0x127b   : > { %v4839_v4 = vpop.xlane.xlu1 %4838 }
0x127c   : > { %v9186_v46 = vsub.f32 %v4814_v6, %v4852_v40  ;;  %v4853_v0 = vmul.f32 0.0078125, %v4839_v4 }
0x127e   : > { %v9188_v19 = vsub.f32 %v4815_v49, %v4853_v0  ;;  %v4876_v24 = vmul.f32 %v9186_v46, %v9186_v46 }
0x1280   : > { %4896 = vadd.xlane.f32.xlu0 %v4876_v24  ;;  %v4877_v33 = vmul.f32 %v9188_v19, %v9188_v19 }
0x1281   : > { %v4841_v42 = vpop.xlane.xlu0 %4840 }
0x1282   : > { %v4854_v41 = vmul.f32 0.0078125, %v4841_v42  ;;  %4898 = vadd.xlane.f32.xlu1 %v4877_v33 }
0x1283   : > { %v4843_v43 = vpop.xlane.xlu1 %4842 }
0x1284   : > { %v9194_v17 = vsub.f32 %v4816_v21, %v4854_v41  ;;  %v4855_v30 = vmul.f32 0.0078125, %v4843_v43 }
0x1286   : > { %v9196_v8 = vsub.f32 %v4817_v32, %v4855_v30  ;;  %v4878_v15 = vmul.f32 %v9194_v17, %v9194_v17 }
0x1288   : > { %4900 = vadd.xlane.f32.xlu0 %v4878_v15  ;;  %v4879_v25 = vmul.f32 %v9196_v8, %v9196_v8 }
0x128a   : > { %4902 = vadd.xlane.f32.xlu1 %v4879_v25 }
0x12bb   : > { %v4881_v6 = vpop.xlane.xlu0 %4880 }
0x12bc   : > { %v4904_v18 = vmul.f32 0.0078125, %v4881_v6 }
0x12bd   : > { %v4883_v54 = vpop.xlane.xlu1 %4882 }
0x12be   : > { %v4916_v14 = vadd.f32 1e-12, %v4904_v18  ;;  %v4905_v59 = vmul.f32 0.0078125, %v4883_v54 }
0x12c0   : > { %6439 = vrsqrt.f32 %v4916_v14  ;;  %v4917_v49 = vadd.f32 1e-12, %v4905_v59 }
0x12c2   : > { %6441 = vrsqrt.f32 %v4917_v49 }
0x12c7   : > { %v4885_v55 = vpop.xlane.xlu0 %4884 }
0x12c8   : > { %v4906_v3 = vmul.f32 0.0078125, %v4885_v55 }
0x12c9   : > { %v4887_v38 = vpop.xlane.xlu1 %4886 }
0x12ca   : > { %v4918_v29 = vadd.f32 1e-12, %v4906_v3  ;;  %v4907_v56 = vmul.f32 0.0078125, %v4887_v38  ;;  %v6440_v31 = vpop.eup %6439 }
0x12cb   : > { %v4940_v35 = vmul.f32 %v6440_v31, %v9147_v36 }
0x12cc   : > { %6443 = vrsqrt.f32 %v4918_v29  ;;  %v4919_v21 = vadd.f32 1e-12, %v4907_v56  ;;  %v6442_v32 = vpop.eup %6441 }
0x12cd   : > { %v4958_v44 = vmul.f32 %v9207_v62, %v4940_v35  ;;  %v4941_v34 = vmul.f32 %v6442_v32, %v9150_v45 }
0x12ce   : > { %6445 = vrsqrt.f32 %v4919_v21 }
0x12cf   : > { %v4976_v37 = vadd.f32 %v9215_v22, %v4958_v44  ;;  %v4959_v63 = vmul.f32 %v9207_v62, %v4941_v34 }
0x12d1   : > { %4988 = vst [vmem:[%s9406_s21] sm:$0xff] %v4976_v37  ;;  %v4977_v36 = vadd.f32 %v9215_v22, %v4959_v63 }
0x12d2   : > { %v4889_v20 = vpop.xlane.xlu0 %4888 }
0x12d3   : > { %4989 = vst [vmem:[%s9406_s21 + $0x8] sm:$0xff] %v4977_v36  ;;  %v4908_v23 = vmul.f32 0.0078125, %v4889_v20 }
0x12d4   : > { %v4891_v39 = vpop.xlane.xlu1 %4890 }
0x12d5   : > { %v4920_v28 = vadd.f32 1e-12, %v4908_v23  ;;  %v4909_v9 = vmul.f32 0.0078125, %v4891_v39 }
0x12d6   : > { %v6444_v60 = vpop.eup %6443 }
0x12d7   : > { %v4942_v45 = vmul.f32 %v6444_v60, %v9157_v58  ;;  %6447 = vrsqrt.f32 %v4920_v28  ;;  %v4921_v57 = vadd.f32 1e-12, %v4909_v9 }
0x12d8   : > { %v6446_v47 = vpop.eup %6445 }
0x12d9   : > { %v4960_v52 = vmul.f32 %v9207_v62, %v4942_v45  ;;  %v4943_v7 = vmul.f32 %v6446_v47, %v9160_v10  ;;  %6449 = vrsqrt.f32 %v4921_v57 }
0x12db   : > { %v4978_v50 = vadd.f32 %v9215_v22, %v4960_v52  ;;  %v4961_v13 = vmul.f32 %v9207_v62, %v4943_v7 }
0x12dd   : > { %4990 = vst [vmem:[%s9406_s21 + $0x10] sm:$0xff] %v4978_v50  ;;  %v4979_v58 = vadd.f32 %v9215_v22, %v4961_v13 }
0x12df   : > { %4991 = vst [vmem:[%s9406_s21 + $0x18] sm:$0xff] %v4979_v58 }
0x12e0   : > { %v4893_v53 = vpop.xlane.xlu0 %4892 }
0x12e1   : > { %v6448_v48 = vpop.eup %6447  ;;  %v4910_v10 = vmul.f32 0.0078125, %v4893_v53 }
0x12e2   : > { %v4944_v16 = vmul.f32 %v6448_v48, %v9167_v2  ;;  %v4895_v27 = vpop.xlane.xlu1 %4894 }
0x12e3   : > { %v6450_v11 = vpop.eup %6449  ;;  %v4922_v26 = vadd.f32 1e-12, %v4910_v10  ;;  %v4911_v12 = vmul.f32 0.0078125, %v4895_v27 }
0x12e4   : > { %v4962_v61 = vmul.f32 %v9207_v62, %v4944_v16  ;;  %v4945_v40 = vmul.f32 %v6450_v11, %v9170_v1 }
0x12e5   : > { %6451 = vrsqrt.f32 %v4922_v26  ;;  %v4923_v4 = vadd.f32 1e-12, %v4911_v12 }
0x12e6   : > { %v4980_v0 = vadd.f32 %v9215_v22, %v4962_v61  ;;  %v4963_v24 = vmul.f32 %v9207_v62, %v4945_v40 }
0x12e7   : > { %6453 = vrsqrt.f32 %v4923_v4 }
0x12e8   : > { %4992 = vst [vmem:[%s9406_s21 + $0x20] sm:$0xff] %v4980_v0  ;;  %v4981_v2 = vadd.f32 %v9215_v22, %v4963_v24 }
0x12ea   : > { %4993 = vst [vmem:[%s9406_s21 + $0x28] sm:$0xff] %v4981_v2 }
0x12ef   : > { %v6452_v33 = vpop.eup %6451 }
0x12f0   : > { %v4946_v1 = vmul.f32 %v6452_v33, %v9177_v51 }
0x12f1   : > { %v6454_v42 = vpop.eup %6453 }
0x12f2   : > { %v4964_v41 = vmul.f32 %v9207_v62, %v4946_v1  ;;  %v4947_v43 = vmul.f32 %v6454_v42, %v9180_v5 }
0x12f4   : > { %v4982_v30 = vadd.f32 %v9215_v22, %v4964_v41  ;;  %v4965_v15 = vmul.f32 %v9207_v62, %v4947_v43 }
0x12f6   : > { %4994 = vst [vmem:[%s9406_s21 + $0x30] sm:$0xff] %v4982_v30  ;;  %v4983_v25 = vadd.f32 %v9215_v22, %v4965_v15 }
0x12f8   : > { %4995 = vst [vmem:[%s9406_s21 + $0x38] sm:$0xff] %v4983_v25 }
0x130d   : > { %v4897_v51 = vpop.xlane.xlu0 %4896 }
0x130e   : > { %v4912_v6 = vmul.f32 0.0078125, %v4897_v51 }
0x130f   : > { %v4899_v18 = vpop.xlane.xlu1 %4898 }
0x1310   : > { %v4924_v54 = vadd.f32 1e-12, %v4912_v6  ;;  %v4913_v14 = vmul.f32 0.0078125, %v4899_v18 }
0x1312   : > { %6455 = vrsqrt.f32 %v4924_v54  ;;  %v4925_v5 = vadd.f32 1e-12, %v4913_v14 }
0x1314   : > { %6457 = vrsqrt.f32 %v4925_v5 }
0x1315   : > { %v4901_v59 = vpop.xlane.xlu0 %4900 }
0x1316   : > { %v4914_v49 = vmul.f32 0.0078125, %v4901_v59 }
0x1317   : > { %v4903_v55 = vpop.xlane.xlu1 %4902 }
0x1318   : > { %v4926_v3 = vadd.f32 1e-12, %v4914_v49  ;;  %v4915_v38 = vmul.f32 0.0078125, %v4903_v55 }
0x131a   : > { %6459 = vrsqrt.f32 %v4926_v3  ;;  %v4927_v29 = vadd.f32 1e-12, %v4915_v38 }
0x131c   : > { %v6456_v56 = vpop.eup %6455  ;;  %6461 = vrsqrt.f32 %v4927_v29 }
0x131d   : > { %v4948_v31 = vmul.f32 %v6456_v56, %v9186_v46 }
0x131e   : > { %v6458_v21 = vpop.eup %6457 }
0x131f   : > { %v4966_v35 = vmul.f32 %v9207_v62, %v4948_v31  ;;  %v4949_v32 = vmul.f32 %v6458_v21, %v9188_v19 }
0x1321   : > { %v4984_v44 = vadd.f32 %v9215_v22, %v4966_v35  ;;  %v4967_v34 = vmul.f32 %v9207_v62, %v4949_v32 }
0x1323   : > { %4996 = vst [vmem:[%s9406_s21 + $0x40] sm:$0xff] %v4984_v44  ;;  %v4985_v37 = vadd.f32 %v9215_v22, %v4967_v34 }
0x1324   : > { %v6460_v63 = vpop.eup %6459 }
0x1325   : > { %4997 = vst [vmem:[%s9406_s21 + $0x48] sm:$0xff] %v4985_v37  ;;  %v4950_v46 = vmul.f32 %v6460_v63, %v9194_v17 }
0x1326   : > { %v6462_v36 = vpop.eup %6461 }
0x1327   : > { %v4968_v19 = vmul.f32 %v9207_v62, %v4950_v46  ;;  %v4951_v20 = vmul.f32 %v6462_v36, %v9196_v8 }
0x1329   : > { %v4986_v23 = vadd.f32 %v9215_v22, %v4968_v19  ;;  %v4969_v60 = vmul.f32 %v9207_v62, %v4951_v20 }
0x132b   : > { %4998 = vst [vmem:[%s9406_s21 + $0x50] sm:$0xff] %v4986_v23  ;;  %v4987_v39 = vadd.f32 %v9215_v22, %v4969_v60 }
0x132d   : > { %4999 = vst [vmem:[%s9406_s21 + $0x58] sm:$0xff] %v4987_v39 }
0x132e PF: > { %s9530_s27 = sld [smem:[#allocation8_spill]]  ;;  %s9531_s24 = sld [smem:[#allocation6_spill]] }
0x132f   : > { %s9532_s25 = sld [smem:[#allocation7_spill]]  ;;  %s9533_s26 = sld [smem:[#allocation9_spill]] }
0x1334   : > { %p27_p8 = scmp.ge.s32.totalorder %s9530_s27, 4  }
0x1336   :  { %29 = sbr.rel (!%p27_p8) target bundleno = 13 (0xd), region = 161 }
0x133d   :  { %5011 = vsyncpa [#allocation4], 1 }
0x133e   :  { %5013 = vsyncpa [#allocation4 + $0x1], 1 }

</bundles_post_ra>
